<compile_context>
chip_gen: v7x
topology: tpu7x:2x2x1
jax: 0.10.0
libtpu: 0.0.40
codegen_flags: <defaults>
</compile_context>

<pallas_src>
import jax
import jax.numpy as jnp
from jax.experimental import pallas as pl
from jax.experimental.pallas import tpu as pltpu

BN_EPS = 1e-5
_LANE_PAD = 128   # zero-pad width on the lane axis (>= W+1, multiple of 128)


def _make_kernel(N, C, H, W):
    HW = H * W
    L = N * HW                       # lane extent of the activation slab
    n_w = 9 * C                      # columns per conv-weight block in the slab
    inv_count = 1.0 / float(N * HW)  # BatchNorm normalizer (stats over N,H,W)

    def kernel(x_ref, p_ref, o_ref):
        x = x_ref[...]               # (C, L) float32, lane-dense
        P = p_ref[...]               # (C, 2*n_w + 6) packed parameters

        # ---- boundary masks, hoisted once and shared by both convs ---------
        q = jax.lax.broadcasted_iota(jnp.int32, (C, L), 1)   # lane index
        pix = q % HW                 # y*W + x   (pixel index inside one image)
        col = q % W                  # x coordinate
        ok_top = pix >= W            # y - 1 >= 0
        ok_bot = pix < HW - W        # y + 1 <= H - 1
        ok_lft = col >= 1            # x - 1 >= 0
        ok_rgt = col < W - 1         # x + 1 <= W - 1

        def tap_mask(ky, kx):
            m = None
            if ky == -1:
                m = ok_top
            elif ky == 1:
                m = ok_bot
            if kx == -1:
                m = ok_lft if m is None else jnp.logical_and(m, ok_lft)
            elif kx == 1:
                m = ok_rgt if m is None else jnp.logical_and(m, ok_rgt)
            return m

        zpad = jnp.zeros((C, _LANE_PAD), jnp.float32)

        def conv3x3(v, wofs, b_col):
            """'same' 3x3 conv.  v: (C, L); weights at P[:, wofs : wofs+9*C]."""
            # Zero-padded slab (tile-aligned concat); 9 static lane-shifted
            # views of it give the 9 taps, masked at image/row boundaries.
            vp = jnp.concatenate([zpad, v, zpad], axis=1)     # (C, L + 2*PAD)
            out = None
            for ky in (-1, 0, 1):
                for kx in (-1, 0, 1):
                    t = (ky + 1) * 3 + (kx + 1)
                    s = ky * W + kx
                    sh = vp[:, _LANE_PAD + s:_LANE_PAD + s + L]   # (C, L)
                    m = tap_mask(ky, kx)
                    if m is not None:
                        sh = jnp.where(m, sh, 0.0)
                    # Per-tap contraction over input channels (depth C):
                    #   tap[co, :] = sum_ci  w[co, t*C+ci] * sh[ci, :]
                    # Exact f32 on the VPU (full-lane rows, hoisted columns).
                    tap = None
                    for ci in range(C):
                        base = wofs + t * C + ci
                        wcol = P[:, base:base + 1]            # (C, 1)
                        term = wcol * sh[ci:ci + 1, :]        # (C, L)
                        tap = term if tap is None else tap + term
                    out = tap if out is None else out + tap
            return out + b_col

        def batch_norm(y, g_col, bt_col):
            # training-mode BatchNorm2d, biased variance, eps=1e-5.
            # Single pass: E[y] and E[y^2] are per-row lane reductions.
            mean = jnp.sum(y, axis=1, keepdims=True) * inv_count      # (C, 1)
            ex2 = jnp.sum(y * y, axis=1, keepdims=True) * inv_count   # (C, 1)
            var = ex2 - mean * mean
            inv_std = jax.lax.rsqrt(var + BN_EPS)
            return g_col * (y - mean) * inv_std + bt_col

        b1 = P[:, 2 * n_w + 0:2 * n_w + 1]
        g1 = P[:, 2 * n_w + 1:2 * n_w + 2]
        bt1 = P[:, 2 * n_w + 2:2 * n_w + 3]
        b2 = P[:, 2 * n_w + 3:2 * n_w + 4]
        g2 = P[:, 2 * n_w + 4:2 * n_w + 5]
        bt2 = P[:, 2 * n_w + 5:2 * n_w + 6]

        # conv1 -> bn1 -> relu -> conv2 -> bn2 -> +residual -> relu
        y = conv3x3(x, 0, b1)
        y = jnp.maximum(batch_norm(y, g1, bt1), 0.0)
        z = conv3x3(y, n_w, b2)
        z = batch_norm(z, g2, bt2) + x          # residual = block input
        o_ref[...] = jnp.maximum(z, 0.0)

    return kernel


def residual_block_forward(x_nchw, params):
    """NCHW in / NCHW out wrapper: layout plumbing + one pallas_call."""
    N, C, H, W = x_nchw.shape
    L = N * H * W

    # lane-dense activation slab: (C, N*H*W)
    x2 = jnp.transpose(x_nchw.astype(jnp.float32), (1, 0, 2, 3)).reshape(C, L)

    # Pack ALL parameters into one (C, 9*C + 9*C + 6) slab -> single DMA.
    def pack_w(w):   # torch (Cout, Cin, 3, 3) -> (Cout, 9*Cin), col = t*Cin+ci
        return jnp.transpose(w.astype(jnp.float32), (0, 2, 3, 1)).reshape(C, 9 * C)

    def pack_c(v):
        return v.astype(jnp.float32).reshape(C, 1)

    pslab = jnp.concatenate(
        [pack_w(params["w1"]), pack_w(params["w2"]),
         pack_c(params["b1"]), pack_c(params["g1"]), pack_c(params["bt1"]),
         pack_c(params["b2"]), pack_c(params["g2"]), pack_c(params["bt2"])],
        axis=1)                                              # (C, 18*C + 6)

    vmem = pl.BlockSpec(memory_space=pltpu.MemorySpace.VMEM)
    out2 = pl.pallas_call(
        _make_kernel(N, C, H, W),
        out_shape=jax.ShapeDtypeStruct((C, L), jnp.float32),
        in_specs=[vmem, vmem],
        out_specs=vmem,
    )(x2, pslab)

    # back to NCHW
    return jnp.transpose(out2.reshape(C, N, H, W), (1, 0, 2, 3))


def reference_forward(x_nchw, params):
    """Pure-JAX reference (lax conv at HIGHEST precision) of the same forward."""
    x = jnp.transpose(x_nchw, (0, 2, 3, 1)).astype(jnp.float32)

    def conv(y, w, b):
        w_hwio = jnp.transpose(w, (2, 3, 1, 0))
        out = jax.lax.conv_general_dilated(
            y, w_hwio, window_strides=(1, 1), padding="SAME",
            dimension_numbers=("NHWC", "HWIO", "NHWC"),
            precision=jax.lax.Precision.HIGHEST)
        return out + b.reshape(1, 1, 1, -1)

    def bn(y, g, bt):
        mean = jnp.mean(y, axis=(0, 1, 2), keepdims=True)
        var = jnp.mean((y - mean) ** 2, axis=(0, 1, 2), keepdims=True)
        return (g.reshape(1, 1, 1, -1) * (y - mean) / jnp.sqrt(var + BN_EPS)
                + bt.reshape(1, 1, 1, -1))

    r = x
    y = jnp.maximum(bn(conv(x, params["w1"], params["b1"]),
                       params["g1"], params["bt1"]), 0.0)
    z = bn(conv(y, params["w2"], params["b2"]),
           params["g2"], params["bt2"]) + r
    z = jnp.maximum(z, 0.0)
    return jnp.transpose(z, (0, 3, 1, 2))


if __name__ == "__main__":
    key = jax.random.PRNGKey(0)
    N, C, H, W = 2, 4, 16, 16            # num_channels = 4
    ks = jax.random.split(key, 9)

    fan_in = C * 3 * 3
    bound = 1.0 / (fan_in ** 0.5)
    params = {
        "w1": jax.random.uniform(ks[0], (C, C, 3, 3), jnp.float32, -bound, bound),
        "b1": jax.random.uniform(ks[1], (C,), jnp.float32, -bound, bound),
        "w2": jax.random.uniform(ks[2], (C, C, 3, 3), jnp.float32, -bound, bound),
        "b2": jax.random.uniform(ks[3], (C,), jnp.float32, -bound, bound),
        "g1": 1.0 + 0.1 * jax.random.normal(ks[4], (C,), jnp.float32),
        "bt1": 0.1 * jax.random.normal(ks[5], (C,), jnp.float32),
        "g2": 1.0 + 0.1 * jax.random.normal(ks[6], (C,), jnp.float32),
        "bt2": 0.1 * jax.random.normal(ks[7], (C,), jnp.float32),
    }
    x = jax.random.normal(ks[8], (N, C, H, W), jnp.float32)

    out = jax.block_until_ready(residual_block_forward(x, params))
    ref = jax.block_until_ready(reference_forward(x, params))

    assert out.shape == (N, C, H, W)
    err = float(jnp.max(jnp.abs(out - ref)))
    if err < 1e-3:
        print("KERNEL_OK")
    else:
        print(f"MISMATCH max_abs_err={err}")
</pallas_src>

<mosaic_0001>
module attributes {stable_mosaic.version = 11 : i64} {
  func.func @kernel(%arg0: memref<4x512xf32, #tpu.memory_space<vmem>>, %arg1: memref<4x78xf32, #tpu.memory_space<vmem>>, %arg2: memref<4x512xf32, #tpu.memory_space<vmem>>) attributes {dimension_semantics = [], scalar_prefetch = 0 : i64, scratch_operands = 0 : i64, tpu.core_type = #tpu.core_type<tc>} {
    %c0 = arith.constant 0 : index
    %c0_0 = arith.constant 0 : index
    %0 = vector.load %arg0[%c0, %c0_0] : memref<4x512xf32, #tpu.memory_space<vmem>>, vector<4x512xf32>
    %c0_1 = arith.constant 0 : index
    %c0_2 = arith.constant 0 : index
    %1 = vector.load %arg1[%c0_1, %c0_2] : memref<4x78xf32, #tpu.memory_space<vmem>>, vector<4x78xf32>
    %2 = tpu.iota {dimensions = array<i32: 1>} : vector<4x512xi32>
    %c256_i32 = arith.constant 256 : i32
    %c0_i32 = arith.constant 0 : i32
    %3 = arith.cmpi eq, %c256_i32, %c0_i32 : i32
    %c1_i32 = arith.constant 1 : i32
    %4 = arith.select %3, %c1_i32, %c256_i32 : i32
    %5 = vector.broadcast %4 : i32 to vector<4x512xi32>
    %6 = arith.remsi %2, %5 : vector<4x512xi32>
    %c0_i32_3 = arith.constant 0 : i32
    %7 = vector.broadcast %c0_i32_3 : i32 to vector<4x512xi32>
    %8 = arith.cmpi ne, %6, %7 : vector<4x512xi32>
    %c0_i32_4 = arith.constant 0 : i32
    %9 = vector.broadcast %c0_i32_4 : i32 to vector<4x512xi32>
    %10 = arith.cmpi slt, %6, %9 : vector<4x512xi32>
    %c0_i32_5 = arith.constant 0 : i32
    %11 = arith.cmpi slt, %4, %c0_i32_5 : i32
    %12 = vector.broadcast %11 : i1 to vector<4x512xi1>
    %13 = vector.broadcast %12 : vector<4x512xi1> to vector<4x512xi1>
    %14 = arith.xori %10, %13 : vector<4x512xi1>
    %15 = arith.andi %14, %8 : vector<4x512xi1>
    %16 = vector.broadcast %4 : i32 to vector<4x512xi32>
    %17 = arith.addi %6, %16 : vector<4x512xi32>
    %18 = arith.select %15, %17, %6 : vector<4x512xi1>, vector<4x512xi32>
    %c16_i32 = arith.constant 16 : i32
    %c0_i32_6 = arith.constant 0 : i32
    %19 = arith.cmpi eq, %c16_i32, %c0_i32_6 : i32
    %c1_i32_7 = arith.constant 1 : i32
    %20 = arith.select %19, %c1_i32_7, %c16_i32 : i32
    %21 = vector.broadcast %20 : i32 to vector<4x512xi32>
    %22 = arith.remsi %2, %21 : vector<4x512xi32>
    %c0_i32_8 = arith.constant 0 : i32
    %23 = vector.broadcast %c0_i32_8 : i32 to vector<4x512xi32>
    %24 = arith.cmpi ne, %22, %23 : vector<4x512xi32>
    %c0_i32_9 = arith.constant 0 : i32
    %25 = vector.broadcast %c0_i32_9 : i32 to vector<4x512xi32>
    %26 = arith.cmpi slt, %22, %25 : vector<4x512xi32>
    %c0_i32_10 = arith.constant 0 : i32
    %27 = arith.cmpi slt, %20, %c0_i32_10 : i32
    %28 = vector.broadcast %27 : i1 to vector<4x512xi1>
    %29 = vector.broadcast %28 : vector<4x512xi1> to vector<4x512xi1>
    %30 = arith.xori %26, %29 : vector<4x512xi1>
    %31 = arith.andi %30, %24 : vector<4x512xi1>
    %32 = vector.broadcast %20 : i32 to vector<4x512xi32>
    %33 = arith.addi %22, %32 : vector<4x512xi32>
    %34 = arith.select %31, %33, %22 : vector<4x512xi1>, vector<4x512xi32>
    %c16_i32_11 = arith.constant 16 : i32
    %35 = vector.broadcast %c16_i32_11 : i32 to vector<4x512xi32>
    %36 = arith.cmpi sge, %18, %35 : vector<4x512xi32>
    %c240_i32 = arith.constant 240 : i32
    %37 = vector.broadcast %c240_i32 : i32 to vector<4x512xi32>
    %38 = arith.cmpi slt, %18, %37 : vector<4x512xi32>
    %c1_i32_12 = arith.constant 1 : i32
    %39 = vector.broadcast %c1_i32_12 : i32 to vector<4x512xi32>
    %40 = arith.cmpi sge, %34, %39 : vector<4x512xi32>
    %c15_i32 = arith.constant 15 : i32
    %41 = vector.broadcast %c15_i32 : i32 to vector<4x512xi32>
    %42 = arith.cmpi slt, %34, %41 : vector<4x512xi32>
    %cst = arith.constant 0.000000e+00 : f32
    %43 = vector.broadcast %cst : f32 to vector<4x128xf32>
    %44 = vector.extract_strided_slice %1 {offsets = [0, 72], sizes = [4, 1], strides = [1, 1]} : vector<4x78xf32> to vector<4x1xf32>
    %45 = vector.extract_strided_slice %1 {offsets = [0, 73], sizes = [4, 1], strides = [1, 1]} : vector<4x78xf32> to vector<4x1xf32>
    %46 = vector.extract_strided_slice %1 {offsets = [0, 74], sizes = [4, 1], strides = [1, 1]} : vector<4x78xf32> to vector<4x1xf32>
    %47 = vector.extract_strided_slice %1 {offsets = [0, 75], sizes = [4, 1], strides = [1, 1]} : vector<4x78xf32> to vector<4x1xf32>
    %48 = vector.extract_strided_slice %1 {offsets = [0, 76], sizes = [4, 1], strides = [1, 1]} : vector<4x78xf32> to vector<4x1xf32>
    %49 = vector.extract_strided_slice %1 {offsets = [0, 77], sizes = [4, 1], strides = [1, 1]} : vector<4x78xf32> to vector<4x1xf32>
    %50 = tpu.concatenate %43, %0, %43 in 1 : vector<4x128xf32>, vector<4x512xf32>, vector<4x128xf32> -> vector<4x768xf32>
    %51 = vector.extract_strided_slice %50 {offsets = [0, 111], sizes = [4, 512], strides = [1, 1]} : vector<4x768xf32> to vector<4x512xf32>
    %52 = arith.andi %36, %40 : vector<4x512xi1>
    %cst_13 = arith.constant 0.000000e+00 : f32
    %53 = vector.broadcast %cst_13 : f32 to vector<4x512xf32>
    %54 = arith.select %52, %51, %53 : vector<4x512xi1>, vector<4x512xf32>
    %55 = vector.extract_strided_slice %1 {offsets = [0, 0], sizes = [4, 1], strides = [1, 1]} : vector<4x78xf32> to vector<4x1xf32>
    %56 = vector.extract_strided_slice %54 {offsets = [0, 0], sizes = [1, 512], strides = [1, 1]} : vector<4x512xf32> to vector<1x512xf32>
    %57 = vector.broadcast %55 : vector<4x1xf32> to vector<4x512xf32>
    %58 = vector.broadcast %56 : vector<1x512xf32> to vector<4x512xf32>
    %59 = arith.mulf %57, %58 : vector<4x512xf32>
    %60 = vector.extract_strided_slice %1 {offsets = [0, 1], sizes = [4, 1], strides = [1, 1]} : vector<4x78xf32> to vector<4x1xf32>
    %61 = vector.extract_strided_slice %54 {offsets = [1, 0], sizes = [1, 512], strides = [1, 1]} : vector<4x512xf32> to vector<1x512xf32>
    %62 = vector.broadcast %60 : vector<4x1xf32> to vector<4x512xf32>
    %63 = vector.broadcast %61 : vector<1x512xf32> to vector<4x512xf32>
    %64 = arith.mulf %62, %63 : vector<4x512xf32>
    %65 = arith.addf %59, %64 : vector<4x512xf32>
    %66 = vector.extract_strided_slice %1 {offsets = [0, 2], sizes = [4, 1], strides = [1, 1]} : vector<4x78xf32> to vector<4x1xf32>
    %67 = vector.extract_strided_slice %54 {offsets = [2, 0], sizes = [1, 512], strides = [1, 1]} : vector<4x512xf32> to vector<1x512xf32>
    %68 = vector.broadcast %66 : vector<4x1xf32> to vector<4x512xf32>
    %69 = vector.broadcast %67 : vector<1x512xf32> to vector<4x512xf32>
    %70 = arith.mulf %68, %69 : vector<4x512xf32>
    %71 = arith.addf %65, %70 : vector<4x512xf32>
    %72 = vector.extract_strided_slice %1 {offsets = [0, 3], sizes = [4, 1], strides = [1, 1]} : vector<4x78xf32> to vector<4x1xf32>
    %73 = vector.extract_strided_slice %54 {offsets = [3, 0], sizes = [1, 512], strides = [1, 1]} : vector<4x512xf32> to vector<1x512xf32>
    %74 = vector.broadcast %72 : vector<4x1xf32> to vector<4x512xf32>
    %75 = vector.broadcast %73 : vector<1x512xf32> to vector<4x512xf32>
    %76 = arith.mulf %74, %75 : vector<4x512xf32>
    %77 = arith.addf %71, %76 : vector<4x512xf32>
    %78 = vector.extract_strided_slice %50 {offsets = [0, 112], sizes = [4, 512], strides = [1, 1]} : vector<4x768xf32> to vector<4x512xf32>
    %cst_14 = arith.constant 0.000000e+00 : f32
    %79 = vector.broadcast %cst_14 : f32 to vector<4x512xf32>
    %80 = arith.select %36, %78, %79 : vector<4x512xi1>, vector<4x512xf32>
    %81 = vector.extract_strided_slice %1 {offsets = [0, 4], sizes = [4, 1], strides = [1, 1]} : vector<4x78xf32> to vector<4x1xf32>
    %82 = vector.extract_strided_slice %80 {offsets = [0, 0], sizes = [1, 512], strides = [1, 1]} : vector<4x512xf32> to vector<1x512xf32>
    %83 = vector.broadcast %81 : vector<4x1xf32> to vector<4x512xf32>
    %84 = vector.broadcast %82 : vector<1x512xf32> to vector<4x512xf32>
    %85 = arith.mulf %83, %84 : vector<4x512xf32>
    %86 = vector.extract_strided_slice %1 {offsets = [0, 5], sizes = [4, 1], strides = [1, 1]} : vector<4x78xf32> to vector<4x1xf32>
    %87 = vector.extract_strided_slice %80 {offsets = [1, 0], sizes = [1, 512], strides = [1, 1]} : vector<4x512xf32> to vector<1x512xf32>
    %88 = vector.broadcast %86 : vector<4x1xf32> to vector<4x512xf32>
    %89 = vector.broadcast %87 : vector<1x512xf32> to vector<4x512xf32>
    %90 = arith.mulf %88, %89 : vector<4x512xf32>
    %91 = arith.addf %85, %90 : vector<4x512xf32>
    %92 = vector.extract_strided_slice %1 {offsets = [0, 6], sizes = [4, 1], strides = [1, 1]} : vector<4x78xf32> to vector<4x1xf32>
    %93 = vector.extract_strided_slice %80 {offsets = [2, 0], sizes = [1, 512], strides = [1, 1]} : vector<4x512xf32> to vector<1x512xf32>
    %94 = vector.broadcast %92 : vector<4x1xf32> to vector<4x512xf32>
    %95 = vector.broadcast %93 : vector<1x512xf32> to vector<4x512xf32>
    %96 = arith.mulf %94, %95 : vector<4x512xf32>
    %97 = arith.addf %91, %96 : vector<4x512xf32>
    %98 = vector.extract_strided_slice %1 {offsets = [0, 7], sizes = [4, 1], strides = [1, 1]} : vector<4x78xf32> to vector<4x1xf32>
    %99 = vector.extract_strided_slice %80 {offsets = [3, 0], sizes = [1, 512], strides = [1, 1]} : vector<4x512xf32> to vector<1x512xf32>
    %100 = vector.broadcast %98 : vector<4x1xf32> to vector<4x512xf32>
    %101 = vector.broadcast %99 : vector<1x512xf32> to vector<4x512xf32>
    %102 = arith.mulf %100, %101 : vector<4x512xf32>
    %103 = arith.addf %97, %102 : vector<4x512xf32>
    %104 = arith.addf %77, %103 : vector<4x512xf32>
    %105 = vector.extract_strided_slice %50 {offsets = [0, 113], sizes = [4, 512], strides = [1, 1]} : vector<4x768xf32> to vector<4x512xf32>
    %106 = arith.andi %36, %42 : vector<4x512xi1>
    %cst_15 = arith.constant 0.000000e+00 : f32
    %107 = vector.broadcast %cst_15 : f32 to vector<4x512xf32>
    %108 = arith.select %106, %105, %107 : vector<4x512xi1>, vector<4x512xf32>
    %109 = vector.extract_strided_slice %1 {offsets = [0, 8], sizes = [4, 1], strides = [1, 1]} : vector<4x78xf32> to vector<4x1xf32>
    %110 = vector.extract_strided_slice %108 {offsets = [0, 0], sizes = [1, 512], strides = [1, 1]} : vector<4x512xf32> to vector<1x512xf32>
    %111 = vector.broadcast %109 : vector<4x1xf32> to vector<4x512xf32>
    %112 = vector.broadcast %110 : vector<1x512xf32> to vector<4x512xf32>
    %113 = arith.mulf %111, %112 : vector<4x512xf32>
    %114 = vector.extract_strided_slice %1 {offsets = [0, 9], sizes = [4, 1], strides = [1, 1]} : vector<4x78xf32> to vector<4x1xf32>
    %115 = vector.extract_strided_slice %108 {offsets = [1, 0], sizes = [1, 512], strides = [1, 1]} : vector<4x512xf32> to vector<1x512xf32>
    %116 = vector.broadcast %114 : vector<4x1xf32> to vector<4x512xf32>
    %117 = vector.broadcast %115 : vector<1x512xf32> to vector<4x512xf32>
    %118 = arith.mulf %116, %117 : vector<4x512xf32>
    %119 = arith.addf %113, %118 : vector<4x512xf32>
    %120 = vector.extract_strided_slice %1 {offsets = [0, 10], sizes = [4, 1], strides = [1, 1]} : vector<4x78xf32> to vector<4x1xf32>
    %121 = vector.extract_strided_slice %108 {offsets = [2, 0], sizes = [1, 512], strides = [1, 1]} : vector<4x512xf32> to vector<1x512xf32>
    %122 = vector.broadcast %120 : vector<4x1xf32> to vector<4x512xf32>
    %123 = vector.broadcast %121 : vector<1x512xf32> to vector<4x512xf32>
    %124 = arith.mulf %122, %123 : vector<4x512xf32>
    %125 = arith.addf %119, %124 : vector<4x512xf32>
    %126 = vector.extract_strided_slice %1 {offsets = [0, 11], sizes = [4, 1], strides = [1, 1]} : vector<4x78xf32> to vector<4x1xf32>
    %127 = vector.extract_strided_slice %108 {offsets = [3, 0], sizes = [1, 512], strides = [1, 1]} : vector<4x512xf32> to vector<1x512xf32>
    %128 = vector.broadcast %126 : vector<4x1xf32> to vector<4x512xf32>
    %129 = vector.broadcast %127 : vector<1x512xf32> to vector<4x512xf32>
    %130 = arith.mulf %128, %129 : vector<4x512xf32>
    %131 = arith.addf %125, %130 : vector<4x512xf32>
    %132 = arith.addf %104, %131 : vector<4x512xf32>
    %133 = vector.extract_strided_slice %50 {offsets = [0, 127], sizes = [4, 512], strides = [1, 1]} : vector<4x768xf32> to vector<4x512xf32>
    %cst_16 = arith.constant 0.000000e+00 : f32
    %134 = vector.broadcast %cst_16 : f32 to vector<4x512xf32>
    %135 = arith.select %40, %133, %134 : vector<4x512xi1>, vector<4x512xf32>
    %136 = vector.extract_strided_slice %1 {offsets = [0, 12], sizes = [4, 1], strides = [1, 1]} : vector<4x78xf32> to vector<4x1xf32>
    %137 = vector.extract_strided_slice %135 {offsets = [0, 0], sizes = [1, 512], strides = [1, 1]} : vector<4x512xf32> to vector<1x512xf32>
    %138 = vector.broadcast %136 : vector<4x1xf32> to vector<4x512xf32>
    %139 = vector.broadcast %137 : vector<1x512xf32> to vector<4x512xf32>
    %140 = arith.mulf %138, %139 : vector<4x512xf32>
    %141 = vector.extract_strided_slice %1 {offsets = [0, 13], sizes = [4, 1], strides = [1, 1]} : vector<4x78xf32> to vector<4x1xf32>
    %142 = vector.extract_strided_slice %135 {offsets = [1, 0], sizes = [1, 512], strides = [1, 1]} : vector<4x512xf32> to vector<1x512xf32>
    %143 = vector.broadcast %141 : vector<4x1xf32> to vector<4x512xf32>
    %144 = vector.broadcast %142 : vector<1x512xf32> to vector<4x512xf32>
    %145 = arith.mulf %143, %144 : vector<4x512xf32>
    %146 = arith.addf %140, %145 : vector<4x512xf32>
    %147 = vector.extract_strided_slice %1 {offsets = [0, 14], sizes = [4, 1], strides = [1, 1]} : vector<4x78xf32> to vector<4x1xf32>
    %148 = vector.extract_strided_slice %135 {offsets = [2, 0], sizes = [1, 512], strides = [1, 1]} : vector<4x512xf32> to vector<1x512xf32>
    %149 = vector.broadcast %147 : vector<4x1xf32> to vector<4x512xf32>
    %150 = vector.broadcast %148 : vector<1x512xf32> to vector<4x512xf32>
    %151 = arith.mulf %149, %150 : vector<4x512xf32>
    %152 = arith.addf %146, %151 : vector<4x512xf32>
    %153 = vector.extract_strided_slice %1 {offsets = [0, 15], sizes = [4, 1], strides = [1, 1]} : vector<4x78xf32> to vector<4x1xf32>
    %154 = vector.extract_strided_slice %135 {offsets = [3, 0], sizes = [1, 512], strides = [1, 1]} : vector<4x512xf32> to vector<1x512xf32>
    %155 = vector.broadcast %153 : vector<4x1xf32> to vector<4x512xf32>
    %156 = vector.broadcast %154 : vector<1x512xf32> to vector<4x512xf32>
    %157 = arith.mulf %155, %156 : vector<4x512xf32>
    %158 = arith.addf %152, %157 : vector<4x512xf32>
    %159 = arith.addf %132, %158 : vector<4x512xf32>
    %160 = vector.extract_strided_slice %50 {offsets = [0, 128], sizes = [4, 512], strides = [1, 1]} : vector<4x768xf32> to vector<4x512xf32>
    %161 = vector.extract_strided_slice %1 {offsets = [0, 16], sizes = [4, 1], strides = [1, 1]} : vector<4x78xf32> to vector<4x1xf32>
    %162 = vector.extract_strided_slice %160 {offsets = [0, 0], sizes = [1, 512], strides = [1, 1]} : vector<4x512xf32> to vector<1x512xf32>
    %163 = vector.broadcast %161 : vector<4x1xf32> to vector<4x512xf32>
    %164 = vector.broadcast %162 : vector<1x512xf32> to vector<4x512xf32>
    %165 = arith.mulf %163, %164 : vector<4x512xf32>
    %166 = vector.extract_strided_slice %1 {offsets = [0, 17], sizes = [4, 1], strides = [1, 1]} : vector<4x78xf32> to vector<4x1xf32>
    %167 = vector.extract_strided_slice %160 {offsets = [1, 0], sizes = [1, 512], strides = [1, 1]} : vector<4x512xf32> to vector<1x512xf32>
    %168 = vector.broadcast %166 : vector<4x1xf32> to vector<4x512xf32>
    %169 = vector.broadcast %167 : vector<1x512xf32> to vector<4x512xf32>
    %170 = arith.mulf %168, %169 : vector<4x512xf32>
    %171 = arith.addf %165, %170 : vector<4x512xf32>
    %172 = vector.extract_strided_slice %1 {offsets = [0, 18], sizes = [4, 1], strides = [1, 1]} : vector<4x78xf32> to vector<4x1xf32>
    %173 = vector.extract_strided_slice %160 {offsets = [2, 0], sizes = [1, 512], strides = [1, 1]} : vector<4x512xf32> to vector<1x512xf32>
    %174 = vector.broadcast %172 : vector<4x1xf32> to vector<4x512xf32>
    %175 = vector.broadcast %173 : vector<1x512xf32> to vector<4x512xf32>
    %176 = arith.mulf %174, %175 : vector<4x512xf32>
    %177 = arith.addf %171, %176 : vector<4x512xf32>
    %178 = vector.extract_strided_slice %1 {offsets = [0, 19], sizes = [4, 1], strides = [1, 1]} : vector<4x78xf32> to vector<4x1xf32>
    %179 = vector.extract_strided_slice %160 {offsets = [3, 0], sizes = [1, 512], strides = [1, 1]} : vector<4x512xf32> to vector<1x512xf32>
    %180 = vector.broadcast %178 : vector<4x1xf32> to vector<4x512xf32>
    %181 = vector.broadcast %179 : vector<1x512xf32> to vector<4x512xf32>
    %182 = arith.mulf %180, %181 : vector<4x512xf32>
    %183 = arith.addf %177, %182 : vector<4x512xf32>
    %184 = arith.addf %159, %183 : vector<4x512xf32>
    %185 = vector.extract_strided_slice %50 {offsets = [0, 129], sizes = [4, 512], strides = [1, 1]} : vector<4x768xf32> to vector<4x512xf32>
    %cst_17 = arith.constant 0.000000e+00 : f32
    %186 = vector.broadcast %cst_17 : f32 to vector<4x512xf32>
    %187 = arith.select %42, %185, %186 : vector<4x512xi1>, vector<4x512xf32>
    %188 = vector.extract_strided_slice %1 {offsets = [0, 20], sizes = [4, 1], strides = [1, 1]} : vector<4x78xf32> to vector<4x1xf32>
    %189 = vector.extract_strided_slice %187 {offsets = [0, 0], sizes = [1, 512], strides = [1, 1]} : vector<4x512xf32> to vector<1x512xf32>
    %190 = vector.broadcast %188 : vector<4x1xf32> to vector<4x512xf32>
    %191 = vector.broadcast %189 : vector<1x512xf32> to vector<4x512xf32>
    %192 = arith.mulf %190, %191 : vector<4x512xf32>
    %193 = vector.extract_strided_slice %1 {offsets = [0, 21], sizes = [4, 1], strides = [1, 1]} : vector<4x78xf32> to vector<4x1xf32>
    %194 = vector.extract_strided_slice %187 {offsets = [1, 0], sizes = [1, 512], strides = [1, 1]} : vector<4x512xf32> to vector<1x512xf32>
    %195 = vector.broadcast %193 : vector<4x1xf32> to vector<4x512xf32>
    %196 = vector.broadcast %194 : vector<1x512xf32> to vector<4x512xf32>
    %197 = arith.mulf %195, %196 : vector<4x512xf32>
    %198 = arith.addf %192, %197 : vector<4x512xf32>
    %199 = vector.extract_strided_slice %1 {offsets = [0, 22], sizes = [4, 1], strides = [1, 1]} : vector<4x78xf32> to vector<4x1xf32>
    %200 = vector.extract_strided_slice %187 {offsets = [2, 0], sizes = [1, 512], strides = [1, 1]} : vector<4x512xf32> to vector<1x512xf32>
    %201 = vector.broadcast %199 : vector<4x1xf32> to vector<4x512xf32>
    %202 = vector.broadcast %200 : vector<1x512xf32> to vector<4x512xf32>
    %203 = arith.mulf %201, %202 : vector<4x512xf32>
    %204 = arith.addf %198, %203 : vector<4x512xf32>
    %205 = vector.extract_strided_slice %1 {offsets = [0, 23], sizes = [4, 1], strides = [1, 1]} : vector<4x78xf32> to vector<4x1xf32>
    %206 = vector.extract_strided_slice %187 {offsets = [3, 0], sizes = [1, 512], strides = [1, 1]} : vector<4x512xf32> to vector<1x512xf32>
    %207 = vector.broadcast %205 : vector<4x1xf32> to vector<4x512xf32>
    %208 = vector.broadcast %206 : vector<1x512xf32> to vector<4x512xf32>
    %209 = arith.mulf %207, %208 : vector<4x512xf32>
    %210 = arith.addf %204, %209 : vector<4x512xf32>
    %211 = arith.addf %184, %210 : vector<4x512xf32>
    %212 = vector.extract_strided_slice %50 {offsets = [0, 143], sizes = [4, 512], strides = [1, 1]} : vector<4x768xf32> to vector<4x512xf32>
    %213 = arith.andi %38, %40 : vector<4x512xi1>
    %cst_18 = arith.constant 0.000000e+00 : f32
    %214 = vector.broadcast %cst_18 : f32 to vector<4x512xf32>
    %215 = arith.select %213, %212, %214 : vector<4x512xi1>, vector<4x512xf32>
    %216 = vector.extract_strided_slice %1 {offsets = [0, 24], sizes = [4, 1], strides = [1, 1]} : vector<4x78xf32> to vector<4x1xf32>
    %217 = vector.extract_strided_slice %215 {offsets = [0, 0], sizes = [1, 512], strides = [1, 1]} : vector<4x512xf32> to vector<1x512xf32>
    %218 = vector.broadcast %216 : vector<4x1xf32> to vector<4x512xf32>
    %219 = vector.broadcast %217 : vector<1x512xf32> to vector<4x512xf32>
    %220 = arith.mulf %218, %219 : vector<4x512xf32>
    %221 = vector.extract_strided_slice %1 {offsets = [0, 25], sizes = [4, 1], strides = [1, 1]} : vector<4x78xf32> to vector<4x1xf32>
    %222 = vector.extract_strided_slice %215 {offsets = [1, 0], sizes = [1, 512], strides = [1, 1]} : vector<4x512xf32> to vector<1x512xf32>
    %223 = vector.broadcast %221 : vector<4x1xf32> to vector<4x512xf32>
    %224 = vector.broadcast %222 : vector<1x512xf32> to vector<4x512xf32>
    %225 = arith.mulf %223, %224 : vector<4x512xf32>
    %226 = arith.addf %220, %225 : vector<4x512xf32>
    %227 = vector.extract_strided_slice %1 {offsets = [0, 26], sizes = [4, 1], strides = [1, 1]} : vector<4x78xf32> to vector<4x1xf32>
    %228 = vector.extract_strided_slice %215 {offsets = [2, 0], sizes = [1, 512], strides = [1, 1]} : vector<4x512xf32> to vector<1x512xf32>
    %229 = vector.broadcast %227 : vector<4x1xf32> to vector<4x512xf32>
    %230 = vector.broadcast %228 : vector<1x512xf32> to vector<4x512xf32>
    %231 = arith.mulf %229, %230 : vector<4x512xf32>
    %232 = arith.addf %226, %231 : vector<4x512xf32>
    %233 = vector.extract_strided_slice %1 {offsets = [0, 27], sizes = [4, 1], strides = [1, 1]} : vector<4x78xf32> to vector<4x1xf32>
    %234 = vector.extract_strided_slice %215 {offsets = [3, 0], sizes = [1, 512], strides = [1, 1]} : vector<4x512xf32> to vector<1x512xf32>
    %235 = vector.broadcast %233 : vector<4x1xf32> to vector<4x512xf32>
    %236 = vector.broadcast %234 : vector<1x512xf32> to vector<4x512xf32>
    %237 = arith.mulf %235, %236 : vector<4x512xf32>
    %238 = arith.addf %232, %237 : vector<4x512xf32>
    %239 = arith.addf %211, %238 : vector<4x512xf32>
    %240 = vector.extract_strided_slice %50 {offsets = [0, 144], sizes = [4, 512], strides = [1, 1]} : vector<4x768xf32> to vector<4x512xf32>
    %cst_19 = arith.constant 0.000000e+00 : f32
    %241 = vector.broadcast %cst_19 : f32 to vector<4x512xf32>
    %242 = arith.select %38, %240, %241 : vector<4x512xi1>, vector<4x512xf32>
    %243 = vector.extract_strided_slice %1 {offsets = [0, 28], sizes = [4, 1], strides = [1, 1]} : vector<4x78xf32> to vector<4x1xf32>
    %244 = vector.extract_strided_slice %242 {offsets = [0, 0], sizes = [1, 512], strides = [1, 1]} : vector<4x512xf32> to vector<1x512xf32>
    %245 = vector.broadcast %243 : vector<4x1xf32> to vector<4x512xf32>
    %246 = vector.broadcast %244 : vector<1x512xf32> to vector<4x512xf32>
    %247 = arith.mulf %245, %246 : vector<4x512xf32>
    %248 = vector.extract_strided_slice %1 {offsets = [0, 29], sizes = [4, 1], strides = [1, 1]} : vector<4x78xf32> to vector<4x1xf32>
    %249 = vector.extract_strided_slice %242 {offsets = [1, 0], sizes = [1, 512], strides = [1, 1]} : vector<4x512xf32> to vector<1x512xf32>
    %250 = vector.broadcast %248 : vector<4x1xf32> to vector<4x512xf32>
    %251 = vector.broadcast %249 : vector<1x512xf32> to vector<4x512xf32>
    %252 = arith.mulf %250, %251 : vector<4x512xf32>
    %253 = arith.addf %247, %252 : vector<4x512xf32>
    %254 = vector.extract_strided_slice %1 {offsets = [0, 30], sizes = [4, 1], strides = [1, 1]} : vector<4x78xf32> to vector<4x1xf32>
    %255 = vector.extract_strided_slice %242 {offsets = [2, 0], sizes = [1, 512], strides = [1, 1]} : vector<4x512xf32> to vector<1x512xf32>
    %256 = vector.broadcast %254 : vector<4x1xf32> to vector<4x512xf32>
    %257 = vector.broadcast %255 : vector<1x512xf32> to vector<4x512xf32>
    %258 = arith.mulf %256, %257 : vector<4x512xf32>
    %259 = arith.addf %253, %258 : vector<4x512xf32>
    %260 = vector.extract_strided_slice %1 {offsets = [0, 31], sizes = [4, 1], strides = [1, 1]} : vector<4x78xf32> to vector<4x1xf32>
    %261 = vector.extract_strided_slice %242 {offsets = [3, 0], sizes = [1, 512], strides = [1, 1]} : vector<4x512xf32> to vector<1x512xf32>
    %262 = vector.broadcast %260 : vector<4x1xf32> to vector<4x512xf32>
    %263 = vector.broadcast %261 : vector<1x512xf32> to vector<4x512xf32>
    %264 = arith.mulf %262, %263 : vector<4x512xf32>
    %265 = arith.addf %259, %264 : vector<4x512xf32>
    %266 = arith.addf %239, %265 : vector<4x512xf32>
    %267 = vector.extract_strided_slice %50 {offsets = [0, 145], sizes = [4, 512], strides = [1, 1]} : vector<4x768xf32> to vector<4x512xf32>
    %268 = arith.andi %38, %42 : vector<4x512xi1>
    %cst_20 = arith.constant 0.000000e+00 : f32
    %269 = vector.broadcast %cst_20 : f32 to vector<4x512xf32>
    %270 = arith.select %268, %267, %269 : vector<4x512xi1>, vector<4x512xf32>
    %271 = vector.extract_strided_slice %1 {offsets = [0, 32], sizes = [4, 1], strides = [1, 1]} : vector<4x78xf32> to vector<4x1xf32>
    %272 = vector.extract_strided_slice %270 {offsets = [0, 0], sizes = [1, 512], strides = [1, 1]} : vector<4x512xf32> to vector<1x512xf32>
    %273 = vector.broadcast %271 : vector<4x1xf32> to vector<4x512xf32>
    %274 = vector.broadcast %272 : vector<1x512xf32> to vector<4x512xf32>
    %275 = arith.mulf %273, %274 : vector<4x512xf32>
    %276 = vector.extract_strided_slice %1 {offsets = [0, 33], sizes = [4, 1], strides = [1, 1]} : vector<4x78xf32> to vector<4x1xf32>
    %277 = vector.extract_strided_slice %270 {offsets = [1, 0], sizes = [1, 512], strides = [1, 1]} : vector<4x512xf32> to vector<1x512xf32>
    %278 = vector.broadcast %276 : vector<4x1xf32> to vector<4x512xf32>
    %279 = vector.broadcast %277 : vector<1x512xf32> to vector<4x512xf32>
    %280 = arith.mulf %278, %279 : vector<4x512xf32>
    %281 = arith.addf %275, %280 : vector<4x512xf32>
    %282 = vector.extract_strided_slice %1 {offsets = [0, 34], sizes = [4, 1], strides = [1, 1]} : vector<4x78xf32> to vector<4x1xf32>
    %283 = vector.extract_strided_slice %270 {offsets = [2, 0], sizes = [1, 512], strides = [1, 1]} : vector<4x512xf32> to vector<1x512xf32>
    %284 = vector.broadcast %282 : vector<4x1xf32> to vector<4x512xf32>
    %285 = vector.broadcast %283 : vector<1x512xf32> to vector<4x512xf32>
    %286 = arith.mulf %284, %285 : vector<4x512xf32>
    %287 = arith.addf %281, %286 : vector<4x512xf32>
    %288 = vector.extract_strided_slice %1 {offsets = [0, 35], sizes = [4, 1], strides = [1, 1]} : vector<4x78xf32> to vector<4x1xf32>
    %289 = vector.extract_strided_slice %270 {offsets = [3, 0], sizes = [1, 512], strides = [1, 1]} : vector<4x512xf32> to vector<1x512xf32>
    %290 = vector.broadcast %288 : vector<4x1xf32> to vector<4x512xf32>
    %291 = vector.broadcast %289 : vector<1x512xf32> to vector<4x512xf32>
    %292 = arith.mulf %290, %291 : vector<4x512xf32>
    %293 = arith.addf %287, %292 : vector<4x512xf32>
    %294 = arith.addf %266, %293 : vector<4x512xf32>
    %295 = vector.broadcast %44 : vector<4x1xf32> to vector<4x512xf32>
    %296 = arith.addf %294, %295 : vector<4x512xf32>
    %cst_21 = arith.constant dense<0.000000e+00> : vector<4xf32>
    %297 = vector.multi_reduction <add>, %296, %cst_21 [1] : vector<4x512xf32> to vector<4xf32>
    %298 = vector.shape_cast %297 : vector<4xf32> to vector<4x1xf32>
    %cst_22 = arith.constant 0.001953125 : f32
    %299 = vector.broadcast %cst_22 : f32 to vector<4x1xf32>
    %300 = arith.mulf %298, %299 : vector<4x1xf32>
    %301 = arith.mulf %296, %296 : vector<4x512xf32>
    %cst_23 = arith.constant dense<0.000000e+00> : vector<4xf32>
    %302 = vector.multi_reduction <add>, %301, %cst_23 [1] : vector<4x512xf32> to vector<4xf32>
    %303 = vector.shape_cast %302 : vector<4xf32> to vector<4x1xf32>
    %cst_24 = arith.constant 0.001953125 : f32
    %304 = vector.broadcast %cst_24 : f32 to vector<4x1xf32>
    %305 = arith.mulf %303, %304 : vector<4x1xf32>
    %306 = arith.mulf %300, %300 : vector<4x1xf32>
    %307 = arith.subf %305, %306 : vector<4x1xf32>
    %cst_25 = arith.constant 9.99999974E-6 : f32
    %308 = vector.broadcast %cst_25 : f32 to vector<4x1xf32>
    %309 = arith.addf %307, %308 : vector<4x1xf32>
    %310 = math.rsqrt %309 : vector<4x1xf32>
    %311 = vector.broadcast %300 : vector<4x1xf32> to vector<4x512xf32>
    %312 = arith.subf %296, %311 : vector<4x512xf32>
    %313 = vector.broadcast %45 : vector<4x1xf32> to vector<4x512xf32>
    %314 = arith.mulf %313, %312 : vector<4x512xf32>
    %315 = vector.broadcast %310 : vector<4x1xf32> to vector<4x512xf32>
    %316 = arith.mulf %314, %315 : vector<4x512xf32>
    %317 = vector.broadcast %46 : vector<4x1xf32> to vector<4x512xf32>
    %318 = arith.addf %316, %317 : vector<4x512xf32>
    %cst_26 = arith.constant 0.000000e+00 : f32
    %319 = vector.broadcast %cst_26 : f32 to vector<4x512xf32>
    %320 = arith.maximumf %318, %319 : vector<4x512xf32>
    %321 = tpu.concatenate %43, %320, %43 in 1 : vector<4x128xf32>, vector<4x512xf32>, vector<4x128xf32> -> vector<4x768xf32>
    %322 = vector.extract_strided_slice %321 {offsets = [0, 111], sizes = [4, 512], strides = [1, 1]} : vector<4x768xf32> to vector<4x512xf32>
    %323 = arith.andi %36, %40 : vector<4x512xi1>
    %cst_27 = arith.constant 0.000000e+00 : f32
    %324 = vector.broadcast %cst_27 : f32 to vector<4x512xf32>
    %325 = arith.select %323, %322, %324 : vector<4x512xi1>, vector<4x512xf32>
    %326 = vector.extract_strided_slice %1 {offsets = [0, 36], sizes = [4, 1], strides = [1, 1]} : vector<4x78xf32> to vector<4x1xf32>
    %327 = vector.extract_strided_slice %325 {offsets = [0, 0], sizes = [1, 512], strides = [1, 1]} : vector<4x512xf32> to vector<1x512xf32>
    %328 = vector.broadcast %326 : vector<4x1xf32> to vector<4x512xf32>
    %329 = vector.broadcast %327 : vector<1x512xf32> to vector<4x512xf32>
    %330 = arith.mulf %328, %329 : vector<4x512xf32>
    %331 = vector.extract_strided_slice %1 {offsets = [0, 37], sizes = [4, 1], strides = [1, 1]} : vector<4x78xf32> to vector<4x1xf32>
    %332 = vector.extract_strided_slice %325 {offsets = [1, 0], sizes = [1, 512], strides = [1, 1]} : vector<4x512xf32> to vector<1x512xf32>
    %333 = vector.broadcast %331 : vector<4x1xf32> to vector<4x512xf32>
    %334 = vector.broadcast %332 : vector<1x512xf32> to vector<4x512xf32>
    %335 = arith.mulf %333, %334 : vector<4x512xf32>
    %336 = arith.addf %330, %335 : vector<4x512xf32>
    %337 = vector.extract_strided_slice %1 {offsets = [0, 38], sizes = [4, 1], strides = [1, 1]} : vector<4x78xf32> to vector<4x1xf32>
    %338 = vector.extract_strided_slice %325 {offsets = [2, 0], sizes = [1, 512], strides = [1, 1]} : vector<4x512xf32> to vector<1x512xf32>
    %339 = vector.broadcast %337 : vector<4x1xf32> to vector<4x512xf32>
    %340 = vector.broadcast %338 : vector<1x512xf32> to vector<4x512xf32>
    %341 = arith.mulf %339, %340 : vector<4x512xf32>
    %342 = arith.addf %336, %341 : vector<4x512xf32>
    %343 = vector.extract_strided_slice %1 {offsets = [0, 39], sizes = [4, 1], strides = [1, 1]} : vector<4x78xf32> to vector<4x1xf32>
    %344 = vector.extract_strided_slice %325 {offsets = [3, 0], sizes = [1, 512], strides = [1, 1]} : vector<4x512xf32> to vector<1x512xf32>
    %345 = vector.broadcast %343 : vector<4x1xf32> to vector<4x512xf32>
    %346 = vector.broadcast %344 : vector<1x512xf32> to vector<4x512xf32>
    %347 = arith.mulf %345, %346 : vector<4x512xf32>
    %348 = arith.addf %342, %347 : vector<4x512xf32>
    %349 = vector.extract_strided_slice %321 {offsets = [0, 112], sizes = [4, 512], strides = [1, 1]} : vector<4x768xf32> to vector<4x512xf32>
    %cst_28 = arith.constant 0.000000e+00 : f32
    %350 = vector.broadcast %cst_28 : f32 to vector<4x512xf32>
    %351 = arith.select %36, %349, %350 : vector<4x512xi1>, vector<4x512xf32>
    %352 = vector.extract_strided_slice %1 {offsets = [0, 40], sizes = [4, 1], strides = [1, 1]} : vector<4x78xf32> to vector<4x1xf32>
    %353 = vector.extract_strided_slice %351 {offsets = [0, 0], sizes = [1, 512], strides = [1, 1]} : vector<4x512xf32> to vector<1x512xf32>
    %354 = vector.broadcast %352 : vector<4x1xf32> to vector<4x512xf32>
    %355 = vector.broadcast %353 : vector<1x512xf32> to vector<4x512xf32>
    %356 = arith.mulf %354, %355 : vector<4x512xf32>
    %357 = vector.extract_strided_slice %1 {offsets = [0, 41], sizes = [4, 1], strides = [1, 1]} : vector<4x78xf32> to vector<4x1xf32>
    %358 = vector.extract_strided_slice %351 {offsets = [1, 0], sizes = [1, 512], strides = [1, 1]} : vector<4x512xf32> to vector<1x512xf32>
    %359 = vector.broadcast %357 : vector<4x1xf32> to vector<4x512xf32>
    %360 = vector.broadcast %358 : vector<1x512xf32> to vector<4x512xf32>
    %361 = arith.mulf %359, %360 : vector<4x512xf32>
    %362 = arith.addf %356, %361 : vector<4x512xf32>
    %363 = vector.extract_strided_slice %1 {offsets = [0, 42], sizes = [4, 1], strides = [1, 1]} : vector<4x78xf32> to vector<4x1xf32>
    %364 = vector.extract_strided_slice %351 {offsets = [2, 0], sizes = [1, 512], strides = [1, 1]} : vector<4x512xf32> to vector<1x512xf32>
    %365 = vector.broadcast %363 : vector<4x1xf32> to vector<4x512xf32>
    %366 = vector.broadcast %364 : vector<1x512xf32> to vector<4x512xf32>
    %367 = arith.mulf %365, %366 : vector<4x512xf32>
    %368 = arith.addf %362, %367 : vector<4x512xf32>
    %369 = vector.extract_strided_slice %1 {offsets = [0, 43], sizes = [4, 1], strides = [1, 1]} : vector<4x78xf32> to vector<4x1xf32>
    %370 = vector.extract_strided_slice %351 {offsets = [3, 0], sizes = [1, 512], strides = [1, 1]} : vector<4x512xf32> to vector<1x512xf32>
    %371 = vector.broadcast %369 : vector<4x1xf32> to vector<4x512xf32>
    %372 = vector.broadcast %370 : vector<1x512xf32> to vector<4x512xf32>
    %373 = arith.mulf %371, %372 : vector<4x512xf32>
    %374 = arith.addf %368, %373 : vector<4x512xf32>
    %375 = arith.addf %348, %374 : vector<4x512xf32>
    %376 = vector.extract_strided_slice %321 {offsets = [0, 113], sizes = [4, 512], strides = [1, 1]} : vector<4x768xf32> to vector<4x512xf32>
    %377 = arith.andi %36, %42 : vector<4x512xi1>
    %cst_29 = arith.constant 0.000000e+00 : f32
    %378 = vector.broadcast %cst_29 : f32 to vector<4x512xf32>
    %379 = arith.select %377, %376, %378 : vector<4x512xi1>, vector<4x512xf32>
    %380 = vector.extract_strided_slice %1 {offsets = [0, 44], sizes = [4, 1], strides = [1, 1]} : vector<4x78xf32> to vector<4x1xf32>
    %381 = vector.extract_strided_slice %379 {offsets = [0, 0], sizes = [1, 512], strides = [1, 1]} : vector<4x512xf32> to vector<1x512xf32>
    %382 = vector.broadcast %380 : vector<4x1xf32> to vector<4x512xf32>
    %383 = vector.broadcast %381 : vector<1x512xf32> to vector<4x512xf32>
    %384 = arith.mulf %382, %383 : vector<4x512xf32>
    %385 = vector.extract_strided_slice %1 {offsets = [0, 45], sizes = [4, 1], strides = [1, 1]} : vector<4x78xf32> to vector<4x1xf32>
    %386 = vector.extract_strided_slice %379 {offsets = [1, 0], sizes = [1, 512], strides = [1, 1]} : vector<4x512xf32> to vector<1x512xf32>
    %387 = vector.broadcast %385 : vector<4x1xf32> to vector<4x512xf32>
    %388 = vector.broadcast %386 : vector<1x512xf32> to vector<4x512xf32>
    %389 = arith.mulf %387, %388 : vector<4x512xf32>
    %390 = arith.addf %384, %389 : vector<4x512xf32>
    %391 = vector.extract_strided_slice %1 {offsets = [0, 46], sizes = [4, 1], strides = [1, 1]} : vector<4x78xf32> to vector<4x1xf32>
    %392 = vector.extract_strided_slice %379 {offsets = [2, 0], sizes = [1, 512], strides = [1, 1]} : vector<4x512xf32> to vector<1x512xf32>
    %393 = vector.broadcast %391 : vector<4x1xf32> to vector<4x512xf32>
    %394 = vector.broadcast %392 : vector<1x512xf32> to vector<4x512xf32>
    %395 = arith.mulf %393, %394 : vector<4x512xf32>
    %396 = arith.addf %390, %395 : vector<4x512xf32>
    %397 = vector.extract_strided_slice %1 {offsets = [0, 47], sizes = [4, 1], strides = [1, 1]} : vector<4x78xf32> to vector<4x1xf32>
    %398 = vector.extract_strided_slice %379 {offsets = [3, 0], sizes = [1, 512], strides = [1, 1]} : vector<4x512xf32> to vector<1x512xf32>
    %399 = vector.broadcast %397 : vector<4x1xf32> to vector<4x512xf32>
    %400 = vector.broadcast %398 : vector<1x512xf32> to vector<4x512xf32>
    %401 = arith.mulf %399, %400 : vector<4x512xf32>
    %402 = arith.addf %396, %401 : vector<4x512xf32>
    %403 = arith.addf %375, %402 : vector<4x512xf32>
    %404 = vector.extract_strided_slice %321 {offsets = [0, 127], sizes = [4, 512], strides = [1, 1]} : vector<4x768xf32> to vector<4x512xf32>
    %cst_30 = arith.constant 0.000000e+00 : f32
    %405 = vector.broadcast %cst_30 : f32 to vector<4x512xf32>
    %406 = arith.select %40, %404, %405 : vector<4x512xi1>, vector<4x512xf32>
    %407 = vector.extract_strided_slice %1 {offsets = [0, 48], sizes = [4, 1], strides = [1, 1]} : vector<4x78xf32> to vector<4x1xf32>
    %408 = vector.extract_strided_slice %406 {offsets = [0, 0], sizes = [1, 512], strides = [1, 1]} : vector<4x512xf32> to vector<1x512xf32>
    %409 = vector.broadcast %407 : vector<4x1xf32> to vector<4x512xf32>
    %410 = vector.broadcast %408 : vector<1x512xf32> to vector<4x512xf32>
    %411 = arith.mulf %409, %410 : vector<4x512xf32>
    %412 = vector.extract_strided_slice %1 {offsets = [0, 49], sizes = [4, 1], strides = [1, 1]} : vector<4x78xf32> to vector<4x1xf32>
    %413 = vector.extract_strided_slice %406 {offsets = [1, 0], sizes = [1, 512], strides = [1, 1]} : vector<4x512xf32> to vector<1x512xf32>
    %414 = vector.broadcast %412 : vector<4x1xf32> to vector<4x512xf32>
    %415 = vector.broadcast %413 : vector<1x512xf32> to vector<4x512xf32>
    %416 = arith.mulf %414, %415 : vector<4x512xf32>
    %417 = arith.addf %411, %416 : vector<4x512xf32>
    %418 = vector.extract_strided_slice %1 {offsets = [0, 50], sizes = [4, 1], strides = [1, 1]} : vector<4x78xf32> to vector<4x1xf32>
    %419 = vector.extract_strided_slice %406 {offsets = [2, 0], sizes = [1, 512], strides = [1, 1]} : vector<4x512xf32> to vector<1x512xf32>
    %420 = vector.broadcast %418 : vector<4x1xf32> to vector<4x512xf32>
    %421 = vector.broadcast %419 : vector<1x512xf32> to vector<4x512xf32>
    %422 = arith.mulf %420, %421 : vector<4x512xf32>
    %423 = arith.addf %417, %422 : vector<4x512xf32>
    %424 = vector.extract_strided_slice %1 {offsets = [0, 51], sizes = [4, 1], strides = [1, 1]} : vector<4x78xf32> to vector<4x1xf32>
    %425 = vector.extract_strided_slice %406 {offsets = [3, 0], sizes = [1, 512], strides = [1, 1]} : vector<4x512xf32> to vector<1x512xf32>
    %426 = vector.broadcast %424 : vector<4x1xf32> to vector<4x512xf32>
    %427 = vector.broadcast %425 : vector<1x512xf32> to vector<4x512xf32>
    %428 = arith.mulf %426, %427 : vector<4x512xf32>
    %429 = arith.addf %423, %428 : vector<4x512xf32>
    %430 = arith.addf %403, %429 : vector<4x512xf32>
    %431 = vector.extract_strided_slice %321 {offsets = [0, 128], sizes = [4, 512], strides = [1, 1]} : vector<4x768xf32> to vector<4x512xf32>
    %432 = vector.extract_strided_slice %1 {offsets = [0, 52], sizes = [4, 1], strides = [1, 1]} : vector<4x78xf32> to vector<4x1xf32>
    %433 = vector.extract_strided_slice %431 {offsets = [0, 0], sizes = [1, 512], strides = [1, 1]} : vector<4x512xf32> to vector<1x512xf32>
    %434 = vector.broadcast %432 : vector<4x1xf32> to vector<4x512xf32>
    %435 = vector.broadcast %433 : vector<1x512xf32> to vector<4x512xf32>
    %436 = arith.mulf %434, %435 : vector<4x512xf32>
    %437 = vector.extract_strided_slice %1 {offsets = [0, 53], sizes = [4, 1], strides = [1, 1]} : vector<4x78xf32> to vector<4x1xf32>
    %438 = vector.extract_strided_slice %431 {offsets = [1, 0], sizes = [1, 512], strides = [1, 1]} : vector<4x512xf32> to vector<1x512xf32>
    %439 = vector.broadcast %437 : vector<4x1xf32> to vector<4x512xf32>
    %440 = vector.broadcast %438 : vector<1x512xf32> to vector<4x512xf32>
    %441 = arith.mulf %439, %440 : vector<4x512xf32>
    %442 = arith.addf %436, %441 : vector<4x512xf32>
    %443 = vector.extract_strided_slice %1 {offsets = [0, 54], sizes = [4, 1], strides = [1, 1]} : vector<4x78xf32> to vector<4x1xf32>
    %444 = vector.extract_strided_slice %431 {offsets = [2, 0], sizes = [1, 512], strides = [1, 1]} : vector<4x512xf32> to vector<1x512xf32>
    %445 = vector.broadcast %443 : vector<4x1xf32> to vector<4x512xf32>
    %446 = vector.broadcast %444 : vector<1x512xf32> to vector<4x512xf32>
    %447 = arith.mulf %445, %446 : vector<4x512xf32>
    %448 = arith.addf %442, %447 : vector<4x512xf32>
    %449 = vector.extract_strided_slice %1 {offsets = [0, 55], sizes = [4, 1], strides = [1, 1]} : vector<4x78xf32> to vector<4x1xf32>
    %450 = vector.extract_strided_slice %431 {offsets = [3, 0], sizes = [1, 512], strides = [1, 1]} : vector<4x512xf32> to vector<1x512xf32>
    %451 = vector.broadcast %449 : vector<4x1xf32> to vector<4x512xf32>
    %452 = vector.broadcast %450 : vector<1x512xf32> to vector<4x512xf32>
    %453 = arith.mulf %451, %452 : vector<4x512xf32>
    %454 = arith.addf %448, %453 : vector<4x512xf32>
    %455 = arith.addf %430, %454 : vector<4x512xf32>
    %456 = vector.extract_strided_slice %321 {offsets = [0, 129], sizes = [4, 512], strides = [1, 1]} : vector<4x768xf32> to vector<4x512xf32>
    %cst_31 = arith.constant 0.000000e+00 : f32
    %457 = vector.broadcast %cst_31 : f32 to vector<4x512xf32>
    %458 = arith.select %42, %456, %457 : vector<4x512xi1>, vector<4x512xf32>
    %459 = vector.extract_strided_slice %1 {offsets = [0, 56], sizes = [4, 1], strides = [1, 1]} : vector<4x78xf32> to vector<4x1xf32>
    %460 = vector.extract_strided_slice %458 {offsets = [0, 0], sizes = [1, 512], strides = [1, 1]} : vector<4x512xf32> to vector<1x512xf32>
    %461 = vector.broadcast %459 : vector<4x1xf32> to vector<4x512xf32>
    %462 = vector.broadcast %460 : vector<1x512xf32> to vector<4x512xf32>
    %463 = arith.mulf %461, %462 : vector<4x512xf32>
    %464 = vector.extract_strided_slice %1 {offsets = [0, 57], sizes = [4, 1], strides = [1, 1]} : vector<4x78xf32> to vector<4x1xf32>
    %465 = vector.extract_strided_slice %458 {offsets = [1, 0], sizes = [1, 512], strides = [1, 1]} : vector<4x512xf32> to vector<1x512xf32>
    %466 = vector.broadcast %464 : vector<4x1xf32> to vector<4x512xf32>
    %467 = vector.broadcast %465 : vector<1x512xf32> to vector<4x512xf32>
    %468 = arith.mulf %466, %467 : vector<4x512xf32>
    %469 = arith.addf %463, %468 : vector<4x512xf32>
    %470 = vector.extract_strided_slice %1 {offsets = [0, 58], sizes = [4, 1], strides = [1, 1]} : vector<4x78xf32> to vector<4x1xf32>
    %471 = vector.extract_strided_slice %458 {offsets = [2, 0], sizes = [1, 512], strides = [1, 1]} : vector<4x512xf32> to vector<1x512xf32>
    %472 = vector.broadcast %470 : vector<4x1xf32> to vector<4x512xf32>
    %473 = vector.broadcast %471 : vector<1x512xf32> to vector<4x512xf32>
    %474 = arith.mulf %472, %473 : vector<4x512xf32>
    %475 = arith.addf %469, %474 : vector<4x512xf32>
    %476 = vector.extract_strided_slice %1 {offsets = [0, 59], sizes = [4, 1], strides = [1, 1]} : vector<4x78xf32> to vector<4x1xf32>
    %477 = vector.extract_strided_slice %458 {offsets = [3, 0], sizes = [1, 512], strides = [1, 1]} : vector<4x512xf32> to vector<1x512xf32>
    %478 = vector.broadcast %476 : vector<4x1xf32> to vector<4x512xf32>
    %479 = vector.broadcast %477 : vector<1x512xf32> to vector<4x512xf32>
    %480 = arith.mulf %478, %479 : vector<4x512xf32>
    %481 = arith.addf %475, %480 : vector<4x512xf32>
    %482 = arith.addf %455, %481 : vector<4x512xf32>
    %483 = vector.extract_strided_slice %321 {offsets = [0, 143], sizes = [4, 512], strides = [1, 1]} : vector<4x768xf32> to vector<4x512xf32>
    %484 = arith.andi %38, %40 : vector<4x512xi1>
    %cst_32 = arith.constant 0.000000e+00 : f32
    %485 = vector.broadcast %cst_32 : f32 to vector<4x512xf32>
    %486 = arith.select %484, %483, %485 : vector<4x512xi1>, vector<4x512xf32>
    %487 = vector.extract_strided_slice %1 {offsets = [0, 60], sizes = [4, 1], strides = [1, 1]} : vector<4x78xf32> to vector<4x1xf32>
    %488 = vector.extract_strided_slice %486 {offsets = [0, 0], sizes = [1, 512], strides = [1, 1]} : vector<4x512xf32> to vector<1x512xf32>
    %489 = vector.broadcast %487 : vector<4x1xf32> to vector<4x512xf32>
    %490 = vector.broadcast %488 : vector<1x512xf32> to vector<4x512xf32>
    %491 = arith.mulf %489, %490 : vector<4x512xf32>
    %492 = vector.extract_strided_slice %1 {offsets = [0, 61], sizes = [4, 1], strides = [1, 1]} : vector<4x78xf32> to vector<4x1xf32>
    %493 = vector.extract_strided_slice %486 {offsets = [1, 0], sizes = [1, 512], strides = [1, 1]} : vector<4x512xf32> to vector<1x512xf32>
    %494 = vector.broadcast %492 : vector<4x1xf32> to vector<4x512xf32>
    %495 = vector.broadcast %493 : vector<1x512xf32> to vector<4x512xf32>
    %496 = arith.mulf %494, %495 : vector<4x512xf32>
    %497 = arith.addf %491, %496 : vector<4x512xf32>
    %498 = vector.extract_strided_slice %1 {offsets = [0, 62], sizes = [4, 1], strides = [1, 1]} : vector<4x78xf32> to vector<4x1xf32>
    %499 = vector.extract_strided_slice %486 {offsets = [2, 0], sizes = [1, 512], strides = [1, 1]} : vector<4x512xf32> to vector<1x512xf32>
    %500 = vector.broadcast %498 : vector<4x1xf32> to vector<4x512xf32>
    %501 = vector.broadcast %499 : vector<1x512xf32> to vector<4x512xf32>
    %502 = arith.mulf %500, %501 : vector<4x512xf32>
    %503 = arith.addf %497, %502 : vector<4x512xf32>
    %504 = vector.extract_strided_slice %1 {offsets = [0, 63], sizes = [4, 1], strides = [1, 1]} : vector<4x78xf32> to vector<4x1xf32>
    %505 = vector.extract_strided_slice %486 {offsets = [3, 0], sizes = [1, 512], strides = [1, 1]} : vector<4x512xf32> to vector<1x512xf32>
    %506 = vector.broadcast %504 : vector<4x1xf32> to vector<4x512xf32>
    %507 = vector.broadcast %505 : vector<1x512xf32> to vector<4x512xf32>
    %508 = arith.mulf %506, %507 : vector<4x512xf32>
    %509 = arith.addf %503, %508 : vector<4x512xf32>
    %510 = arith.addf %482, %509 : vector<4x512xf32>
    %511 = vector.extract_strided_slice %321 {offsets = [0, 144], sizes = [4, 512], strides = [1, 1]} : vector<4x768xf32> to vector<4x512xf32>
    %cst_33 = arith.constant 0.000000e+00 : f32
    %512 = vector.broadcast %cst_33 : f32 to vector<4x512xf32>
    %513 = arith.select %38, %511, %512 : vector<4x512xi1>, vector<4x512xf32>
    %514 = vector.extract_strided_slice %1 {offsets = [0, 64], sizes = [4, 1], strides = [1, 1]} : vector<4x78xf32> to vector<4x1xf32>
    %515 = vector.extract_strided_slice %513 {offsets = [0, 0], sizes = [1, 512], strides = [1, 1]} : vector<4x512xf32> to vector<1x512xf32>
    %516 = vector.broadcast %514 : vector<4x1xf32> to vector<4x512xf32>
    %517 = vector.broadcast %515 : vector<1x512xf32> to vector<4x512xf32>
    %518 = arith.mulf %516, %517 : vector<4x512xf32>
    %519 = vector.extract_strided_slice %1 {offsets = [0, 65], sizes = [4, 1], strides = [1, 1]} : vector<4x78xf32> to vector<4x1xf32>
    %520 = vector.extract_strided_slice %513 {offsets = [1, 0], sizes = [1, 512], strides = [1, 1]} : vector<4x512xf32> to vector<1x512xf32>
    %521 = vector.broadcast %519 : vector<4x1xf32> to vector<4x512xf32>
    %522 = vector.broadcast %520 : vector<1x512xf32> to vector<4x512xf32>
    %523 = arith.mulf %521, %522 : vector<4x512xf32>
    %524 = arith.addf %518, %523 : vector<4x512xf32>
    %525 = vector.extract_strided_slice %1 {offsets = [0, 66], sizes = [4, 1], strides = [1, 1]} : vector<4x78xf32> to vector<4x1xf32>
    %526 = vector.extract_strided_slice %513 {offsets = [2, 0], sizes = [1, 512], strides = [1, 1]} : vector<4x512xf32> to vector<1x512xf32>
    %527 = vector.broadcast %525 : vector<4x1xf32> to vector<4x512xf32>
    %528 = vector.broadcast %526 : vector<1x512xf32> to vector<4x512xf32>
    %529 = arith.mulf %527, %528 : vector<4x512xf32>
    %530 = arith.addf %524, %529 : vector<4x512xf32>
    %531 = vector.extract_strided_slice %1 {offsets = [0, 67], sizes = [4, 1], strides = [1, 1]} : vector<4x78xf32> to vector<4x1xf32>
    %532 = vector.extract_strided_slice %513 {offsets = [3, 0], sizes = [1, 512], strides = [1, 1]} : vector<4x512xf32> to vector<1x512xf32>
    %533 = vector.broadcast %531 : vector<4x1xf32> to vector<4x512xf32>
    %534 = vector.broadcast %532 : vector<1x512xf32> to vector<4x512xf32>
    %535 = arith.mulf %533, %534 : vector<4x512xf32>
    %536 = arith.addf %530, %535 : vector<4x512xf32>
    %537 = arith.addf %510, %536 : vector<4x512xf32>
    %538 = vector.extract_strided_slice %321 {offsets = [0, 145], sizes = [4, 512], strides = [1, 1]} : vector<4x768xf32> to vector<4x512xf32>
    %539 = arith.andi %38, %42 : vector<4x512xi1>
    %cst_34 = arith.constant 0.000000e+00 : f32
    %540 = vector.broadcast %cst_34 : f32 to vector<4x512xf32>
    %541 = arith.select %539, %538, %540 : vector<4x512xi1>, vector<4x512xf32>
    %542 = vector.extract_strided_slice %1 {offsets = [0, 68], sizes = [4, 1], strides = [1, 1]} : vector<4x78xf32> to vector<4x1xf32>
    %543 = vector.extract_strided_slice %541 {offsets = [0, 0], sizes = [1, 512], strides = [1, 1]} : vector<4x512xf32> to vector<1x512xf32>
    %544 = vector.broadcast %542 : vector<4x1xf32> to vector<4x512xf32>
    %545 = vector.broadcast %543 : vector<1x512xf32> to vector<4x512xf32>
    %546 = arith.mulf %544, %545 : vector<4x512xf32>
    %547 = vector.extract_strided_slice %1 {offsets = [0, 69], sizes = [4, 1], strides = [1, 1]} : vector<4x78xf32> to vector<4x1xf32>
    %548 = vector.extract_strided_slice %541 {offsets = [1, 0], sizes = [1, 512], strides = [1, 1]} : vector<4x512xf32> to vector<1x512xf32>
    %549 = vector.broadcast %547 : vector<4x1xf32> to vector<4x512xf32>
    %550 = vector.broadcast %548 : vector<1x512xf32> to vector<4x512xf32>
    %551 = arith.mulf %549, %550 : vector<4x512xf32>
    %552 = arith.addf %546, %551 : vector<4x512xf32>
    %553 = vector.extract_strided_slice %1 {offsets = [0, 70], sizes = [4, 1], strides = [1, 1]} : vector<4x78xf32> to vector<4x1xf32>
    %554 = vector.extract_strided_slice %541 {offsets = [2, 0], sizes = [1, 512], strides = [1, 1]} : vector<4x512xf32> to vector<1x512xf32>
    %555 = vector.broadcast %553 : vector<4x1xf32> to vector<4x512xf32>
    %556 = vector.broadcast %554 : vector<1x512xf32> to vector<4x512xf32>
    %557 = arith.mulf %555, %556 : vector<4x512xf32>
    %558 = arith.addf %552, %557 : vector<4x512xf32>
    %559 = vector.extract_strided_slice %1 {offsets = [0, 71], sizes = [4, 1], strides = [1, 1]} : vector<4x78xf32> to vector<4x1xf32>
    %560 = vector.extract_strided_slice %541 {offsets = [3, 0], sizes = [1, 512], strides = [1, 1]} : vector<4x512xf32> to vector<1x512xf32>
    %561 = vector.broadcast %559 : vector<4x1xf32> to vector<4x512xf32>
    %562 = vector.broadcast %560 : vector<1x512xf32> to vector<4x512xf32>
    %563 = arith.mulf %561, %562 : vector<4x512xf32>
    %564 = arith.addf %558, %563 : vector<4x512xf32>
    %565 = arith.addf %537, %564 : vector<4x512xf32>
    %566 = vector.broadcast %47 : vector<4x1xf32> to vector<4x512xf32>
    %567 = arith.addf %565, %566 : vector<4x512xf32>
    %cst_35 = arith.constant dense<0.000000e+00> : vector<4xf32>
    %568 = vector.multi_reduction <add>, %567, %cst_35 [1] : vector<4x512xf32> to vector<4xf32>
    %569 = vector.shape_cast %568 : vector<4xf32> to vector<4x1xf32>
    %cst_36 = arith.constant 0.001953125 : f32
    %570 = vector.broadcast %cst_36 : f32 to vector<4x1xf32>
    %571 = arith.mulf %569, %570 : vector<4x1xf32>
    %572 = arith.mulf %567, %567 : vector<4x512xf32>
    %cst_37 = arith.constant dense<0.000000e+00> : vector<4xf32>
    %573 = vector.multi_reduction <add>, %572, %cst_37 [1] : vector<4x512xf32> to vector<4xf32>
    %574 = vector.shape_cast %573 : vector<4xf32> to vector<4x1xf32>
    %cst_38 = arith.constant 0.001953125 : f32
    %575 = vector.broadcast %cst_38 : f32 to vector<4x1xf32>
    %576 = arith.mulf %574, %575 : vector<4x1xf32>
    %577 = arith.mulf %571, %571 : vector<4x1xf32>
    %578 = arith.subf %576, %577 : vector<4x1xf32>
    %cst_39 = arith.constant 9.99999974E-6 : f32
    %579 = vector.broadcast %cst_39 : f32 to vector<4x1xf32>
    %580 = arith.addf %578, %579 : vector<4x1xf32>
    %581 = math.rsqrt %580 : vector<4x1xf32>
    %582 = vector.broadcast %571 : vector<4x1xf32> to vector<4x512xf32>
    %583 = arith.subf %567, %582 : vector<4x512xf32>
    %584 = vector.broadcast %48 : vector<4x1xf32> to vector<4x512xf32>
    %585 = arith.mulf %584, %583 : vector<4x512xf32>
    %586 = vector.broadcast %581 : vector<4x1xf32> to vector<4x512xf32>
    %587 = arith.mulf %585, %586 : vector<4x512xf32>
    %588 = vector.broadcast %49 : vector<4x1xf32> to vector<4x512xf32>
    %589 = arith.addf %587, %588 : vector<4x512xf32>
    %590 = arith.addf %589, %0 : vector<4x512xf32>
    %cst_40 = arith.constant 0.000000e+00 : f32
    %591 = vector.broadcast %cst_40 : f32 to vector<4x512xf32>
    %592 = arith.maximumf %590, %591 : vector<4x512xf32>
    %c0_41 = arith.constant 0 : index
    %c0_42 = arith.constant 0 : index
    %593 = vector.load %arg2[%c0_41, %c0_42] : memref<4x512xf32, #tpu.memory_space<vmem>>, vector<4x512xf32>
    tpu.vector_store %arg2[%c0_41, %c0_42], %592 {strides = array<i32>} : memref<4x512xf32, #tpu.memory_space<vmem>>, vector<4x512xf32>,
    return
  }
}

</mosaic_0001>

<bundles_post_ra>
// kernel: tpu_custom_call.1
= control target key start
LH: loop header
LB: loop body
LE: loop exit
PB: predicated region body
PF: predicated region fallthrough
CT: control target
= control target key end

     0   :  { %7 = vsyncpa [#allocation3], 0  ;;  %s4906_s0 = inlined_call_operand.hbm [shape: f32[4,512], index: 0, kind: input, shape index: {}]   ;;  %s4907_s1 = inlined_call_operand.hbm [shape: f32[4,78], index: 1, kind: input, shape index: {}]   ;;  %s4908_s2 = inlined_call_operand.hbm [shape: f32[4,512], index: 2, kind: output, shape index: {}]  }
   0x1   :  { %8 = vsyncpa [#allocation6], 0 }
   0x2   :  { %9 = vsyncpa [#allocation4], 0  ;;  %s2946_s9 = smov [#allocation2]   ;;  %s2947_s11 = smov [#allocation5]  }
   0x3   :  { %s16_s10 = sshll.u32 %s2946_s9, 4  ;;  %s26_s12 = sshll.u32 %s2947_s11, 4  ;;  %s17_s10 = int_to_ptr.vmem [resolvable:$true] %s16_s10  ;;  %s27_s12 = int_to_ptr.vmem [resolvable:$true] %s26_s12 }
   0x4   :  { %s2874_s15 = scalar_lea.hbm %s4906_s0, 256 }
   0x5   :  { %p2875_p0 = scmp.ne.s32.totalorder %s4906_s0, %s2874_s15  ;;  %p2878_p1 = scmp.lt.u32.totalorder %s2874_s15, %s4906_s0 }
   0x7   :  { %p2880_p2 = pnand %p2878_p1, %p2875_p0 }
   0x9   :  { %2883 = shalt.err (!%p2880_p2)
}
   0xa   :  { %s2884_s20 = scalar_lea.vmem %s17_s10, 256  ;;  %p2889_p4 = scmp.lt.s32.totalorder %s17_s10, %s17_s10 }
   0xb   :  { %p2885_p3 = scmp.ne.s32.totalorder %s17_s10, %s2884_s20  ;;  %p2890_p5 = scmp.lt.s32.totalorder %s2884_s20, %s2884_s20 }
   0xd   :  { %p2891_p6 = por %p2890_p5, %p2889_p4 }
   0xf   :  { %p2892_p7 = pnand %p2891_p6, %p2885_p3 }
  0x11   :  { %2895 = shalt.err (!%p2892_p7)
}
  0x12   :  { %19 = dma.hbm_to_vmem [thread:$0]  %s4906_s0, 256, %s17_s10, [#allocation3]  }
  0x13   :  { %s2896_s25 = scalar_lea.hbm %s4907_s1, 64 }
  0x14   :  { %p2897_p8 = scmp.ne.s32.totalorder %s4907_s1, %s2896_s25  ;;  %p2900_p9 = scmp.lt.u32.totalorder %s2896_s25, %s4907_s1 }
  0x16   :  { %p2902_p10 = pnand %p2900_p9, %p2897_p8 }
  0x18   :  { %2905 = shalt.err (!%p2902_p10)
}
  0x19   :  { %s2906_s30 = scalar_lea.vmem %s27_s12, 64  ;;  %p2911_p12 = scmp.lt.s32.totalorder %s27_s12, %s27_s12 }
  0x1a   :  { %p2907_p11 = scmp.ne.s32.totalorder %s27_s12, %s2906_s30  ;;  %p2912_p13 = scmp.lt.s32.totalorder %s2906_s30, %s2906_s30 }
  0x1c   :  { %p2913_p0 = por %p2912_p13, %p2911_p12 }
  0x1e   :  { %p2914_p1 = pnand %p2913_p0, %p2907_p11 }
  0x20   :  { %2917 = shalt.err (!%p2914_p1)
}
  0x21   :  { %29 = dma.hbm_to_vmem [thread:$0]  %s4907_s1, 64, %s27_s12, [#allocation6]  }
  0x22   :  { %2940 = dma.done.wait [#allocation3], 256  }
  0x23   :  { %2941 = vsyncadd [#allocation3], 4294967040 }
  0x24   :  { %2942 = dma.done.wait [#allocation6], 64  }
  0x25   :  { %2943 = vsyncadd [#allocation6], 4294967232  ;;  %v2948_v0 = vmov 0.0   ;;  %s2949_s4 = smov 17   ;;  %v2950_v1 = vmov 0   ;;  %v2951_v2 = vmov 1  }
  0x26   :  { %167 = vrot.lane.b32.xlu0 %v2948_v0, %s2949_s4  ;;  %2785 = vset.pattern.permute.xlu1 %v2950_v1  ;;  %v3077_v3 = vld [vmem:[#allocation2 + $0x8] sm:$0xff]  ;;  %v3079_v4 = vld [vmem:[#allocation2] sm:$0xff]  ;;  %v3089_v6 = vld [vmem:[#allocation5] sm:$0xf]  ;;  %v2952_v8 = vmov 2   ;;  %s2953_s1 = smov 16  }
  0x27   :  { %2786 = vset.pattern.permute.xlu0 %v2951_v2  ;;  %4982 = vst [vmem:[#allocation11_spill] sm:$0xff] %v3077_v3  ;;  %4983 = vst [vmem:[#allocation12_spill] sm:$0xff] %v3079_v4  ;;  %173 = vrot.lane.b32.xlu1 %v3077_v3, %s2949_s4  ;;  %v3087_v5 = vcombine.high %v3077_v3, %v3077_v3  ;;  %v3096_v7 = vcombine.high %v3079_v4, %v3079_v4  ;;  %v2954_v9 = vmov 5   ;;  %v2955_v10 = vmov 3   ;;  %s2957_s5 = smov 15   ;;  %s2962_s6 = smov 1  }
  0x28   :  { %v2956_v11 = vmov 4   ;;  %v2958_v12 = vmov 9   ;;  %v2959_v13 = vmov 6   ;;  %v2960_v14 = vmov 7   ;;  %s2969_s7 = smov 127   ;;  %s2977_s8 = smov 113  }
  0x29   :  { %4984 = vst [vmem:[#allocation13_spill] sm:$0xff] %v3087_v5  ;;  %4985 = vst [vmem:[#allocation14_spill] sm:$0xff] %v3096_v7  ;;  %v2961_v15 = vmov 8   ;;  %v2963_v16 = vmov 13   ;;  %v2964_v17 = vmov 10   ;;  %v2965_v18 = vmov 11  }
  0x2a   :  { %169 = vrot.lane.b32.xlu0 %v3079_v4, %s2949_s4  ;;  %v2966_v19 = vmov 16   ;;  %v2967_v20 = vmov 19   ;;  %v2968_v21 = vmov 12   ;;  %v2970_v22 = vmov 21   ;;  %s2981_s9 = smov 112   ;;  %s2984_s10 = smov 111  }
  0x2b   :  { %192 = vperm.xlu1 %2785, %v3089_v6   ;;  %v2971_v23 = vmov 14   ;;  %v2972_v24 = vmov 15   ;;  %v2973_v25 = vmov 24   ;;  %v2974_v26 = vmov 17   ;;  %s3035_s11 = smov [#allocation7]  }
  0x2c   :  { %v2975_v27 = vmov 28   ;;  %v2976_v28 = vmov 18   ;;  %v2978_v29 = vmov 27   ;;  %v2979_v30 = vmov 20   ;;  %s2685_s12 = sshll.u32 %s3035_s11, 4  ;;  %s2686_s12 = int_to_ptr.vmem [resolvable:$true] %s2685_s12 }
  0x2d   :  { %v2980_v31 = vmov 33   ;;  %v2982_v32 = vmov 31   ;;  %v2983_v33 = vmov 22   ;;  %v2985_v34 = vmov 35   ;;  %s2918_s13 = scalar_lea.vmem %s2686_s12, 256  ;;  %p2923_p3 = scmp.lt.s32.totalorder %s2686_s12, %s2686_s12 }
  0x2e   :  { %175 = vrot.lane.b32.xlu0 %v3087_v5, %s2949_s4  ;;  %v2986_v35 = vmov 23   ;;  %v2987_v36 = vmov 25   ;;  %v2988_v38 = vmov 26   ;;  %v2989_v40 = vmov 29   ;;  %p2919_p2 = scmp.ne.s32.totalorder %s2686_s12, %s2918_s13  ;;  %p2924_p4 = scmp.lt.s32.totalorder %s2918_s13, %s2918_s13 }
  0x2f   :  { %171 = vrot.lane.b32.xlu1 %v3096_v7, %s2949_s4  ;;  %v2990_v43 = vmov 30   ;;  %v2991_v48 = vmov 32   ;;  %v2992_v52 = vmov 34   ;;  %v2993_v59 = vmov 72  }
  0x30   :  { %2787 = vset.pattern.permute.xlu1 %v2952_v8  ;;  %v39_v2 = vlaneseq  ;;  %vm4965_vm2 = vcmask 138240   ;;  %vm4940_vm9 = vcmask 130048   ;;  %vm4961_vm11 = vcmask 121856   ;;  %p2925_p5 = por %p2924_p4, %p2923_p3 }
  0x32   :  { %216 = vperm.xlu0 %2786, %v3089_v6   ;;  %p2926_p6 = pnand %p2925_p5, %p2919_p2 }
  0x33   :  { %244 = vperm.xlu1 %2787, %v3089_v6  }
  0x36   :  { %299 = vrot.lane.b32.xlu0 %v2948_v0, %s2953_s1 }
  0x37   :  { %2790 = vset.pattern.permute.xlu0 %v2954_v9  ;;  %2788 = vset.pattern.permute.xlu1 %v2955_v10  ;;  %v3253_v10 = vand.u32 127, %v39_v2 }
  0x38   :  { %272 = vperm.xlu1 %2788, %v3089_v6  }
  0x3a   :  { %303 = vrot.lane.b32.xlu0 %v3096_v7, %s2953_s1 }
  0x3c   :  { %301 = vrot.lane.b32.xlu1 %v3079_v4, %s2953_s1 }
  0x3d   :  { %2789 = vset.pattern.permute.xlu1 %v2956_v11  ;;  %v3256_v11 = vadd.s32 256, %v3253_v10 }
  0x3e   :  { %307 = vrot.lane.b32.xlu0 %v3087_v5, %s2953_s1 }
  0x40   :  { %305 = vrot.lane.b32.xlu1 %v3077_v3, %s2953_s1 }
  0x42   :  { %347 = vperm.xlu0 %2790, %v3089_v6  }
  0x44   :  { %323 = vperm.xlu1 %2789, %v3089_v6  }
  0x46   :  { %438 = vrot.lane.b32.xlu0 %v2948_v0, %s2957_s5 }
  0x47   :  { %2794 = vset.pattern.permute.xlu0 %v2958_v12 }
  0x48   :  { %2791 = vset.pattern.permute.xlu1 %v2959_v13  ;;  %v3264_v13 = vadd.s32 128, %v3253_v10 }
  0x49   :  { %375 = vperm.xlu1 %2791, %v3089_v6  }
  0x4a   :  { %442 = vrot.lane.b32.xlu0 %v3096_v7, %s2957_s5 }
  0x4d   :  { %2792 = vset.pattern.permute.xlu1 %v2960_v14  ;;  %v62_v14 = vand.u32 255, %v3256_v11 }
  0x4e   :  { %446 = vrot.lane.b32.xlu0 %v3087_v5, %s2957_s5  ;;  %403 = vperm.xlu1 %2792, %v3089_v6  }
  0x4f   :  { %vm3278_vm0 = vcmp.ge.s32.totalorder %v62_v14, 16 }
  0x52   :  { %486 = vperm.xlu0 %2794, %v3089_v6   ;;  %440 = vrot.lane.b32.xlu1 %v3079_v4, %s2957_s5 }
  0x53   :  { %2793 = vset.pattern.permute.xlu1 %v2961_v15  ;;  %v4911_v15 = vand.u32 15, %v3256_v11 }
  0x55   :  { %vm3284_vm1 = vcmp.ge.s32.totalorder %v4911_v15, 1 }
  0x56   :  { %573 = vrot.lane.b32.xlu0 %v2948_v0, %s2962_s6  ;;  %444 = vrot.lane.b32.xlu1 %v3077_v3, %s2957_s5  ;;  %vm4941_vm6 = vmand %vm3278_vm0, %vm3284_vm1 }
  0x57   :  { %2798 = vset.pattern.permute.xlu0 %v2963_v16  ;;  %v3269_v16 = vadd.s32 384, %v3253_v10 }
  0x59   :  { %4989 = vst [vmem:[#allocation18_spill] sm:$0xff] %v3269_v16 }
  0x5a   :  { %577 = vrot.lane.b32.xlu0 %v3096_v7, %s2962_s6  ;;  %462 = vperm.xlu1 %2793, %v3089_v6  }
  0x5e   :  { %581 = vrot.lane.b32.xlu0 %v3087_v5, %s2962_s6  ;;  %2795 = vset.pattern.permute.xlu1 %v2964_v17 }
  0x5f   :  { %514 = vperm.xlu1 %2795, %v3089_v6  }
  0x62   :  { %621 = vperm.xlu0 %2798, %v3089_v6  }
  0x63   :  { %2796 = vset.pattern.permute.xlu1 %v2965_v18  ;;  %v48_v18 = vand.u32 255, %v3253_v10 }
  0x64   :  { %542 = vperm.xlu1 %2796, %v3089_v6  }
  0x65   :  { %vm3291_vm3 = vcmp.ge.s32.totalorder %v48_v18, 16 }
  0x66   :  { %2801 = vset.pattern.permute.xlu0 %v2966_v19  ;;  %v4912_v19 = vand.u32 15, %v3253_v10 }
  0x67   :  { %709 = vperm.xlu0 %2801, %v3089_v6  }
  0x68   :  { %575 = vrot.lane.b32.xlu1 %v3079_v4, %s2962_s6  ;;  %vm3297_vm4 = vcmp.ge.s32.totalorder %v4912_v19, 1 }
  0x69   :  { %2797 = vset.pattern.permute.xlu1 %v2968_v21  ;;  %v196_v21 = vshrl.u32 %v39_v2, 7  ;;  %vm4963_vm7 = vmand %vm3291_vm3, %vm3297_vm4 }
  0x6b   :  { %2804 = vset.pattern.permute.xlu0 %v2967_v20 }
  0x6c   :  { %789 = vperm.xlu0 %2804, %v3089_v6   ;;  %579 = vrot.lane.b32.xlu1 %v3077_v3, %s2962_s6 }
  0x70   :  { %824 = vrot.lane.b32.xlu0 %v3077_v3, %s2969_s7  ;;  %597 = vperm.xlu1 %2797, %v3089_v6  }
  0x71   :  { %2806 = vset.pattern.permute.xlu0 %v2970_v22  ;;  %v4990_v22 = vmov 0 }
  0x72   :  { %v4991_v22 = vsel %vm3278_vm0, 4294967295, %v4990_v22 }
  0x73   :  { %4992 = vst [vmem:[#allocation19_spill] sm:$0xff] %v4991_v22 }
  0x74   :  { %828 = vrot.lane.b32.xlu0 %v2948_v0, %s2969_s7  ;;  %2799 = vset.pattern.permute.xlu1 %v2971_v23  ;;  %v4993_v23 = vmov 0 }
  0x75   :  { %649 = vperm.xlu1 %2799, %v3089_v6   ;;  %v4994_v23 = vsel %vm3284_vm1, 4294967295, %v4993_v23 }
  0x76   :  { %4995 = vst [vmem:[#allocation20_spill] sm:$0xff] %v4994_v23 }
  0x78   :  { %868 = vperm.xlu0 %2806, %v3089_v6  }
  0x79   :  { %2800 = vset.pattern.permute.xlu1 %v2972_v24  ;;  %v4909_v24 = vand.u32 15, %v3269_v16 }
  0x7a   :  { %677 = vperm.xlu1 %2800, %v3089_v6  }
  0x7b   :  { %vm3336_vm8 = vcmp.ge.s32.totalorder %v4909_v24, 1 }
  0x7c   :  { %2809 = vset.pattern.permute.xlu0 %v2973_v25 }
  0x7d   :  { %983 = vperm.xlu0 %2809, %v3089_v6  }
  0x7e   :  { %2802 = vset.pattern.permute.xlu1 %v2974_v26  ;;  %v4997_v26 = vmov 0 }
  0x7f   :  { %733 = vperm.xlu1 %2802, %v3089_v6   ;;  %v4998_v26 = vsel %vm3291_vm3, 4294967295, %v4997_v26 }
  0x80   :  { %4999 = vst [vmem:[#allocation22_spill] sm:$0xff] %v4998_v26 }
  0x81   :  { %2812 = vset.pattern.permute.xlu0 %v2975_v27  ;;  %v5000_v27 = vmov 0 }
  0x82   :  { %1118 = vperm.xlu0 %2812, %v3089_v6   ;;  %v5001_v27 = vsel %vm3297_vm4, 4294967295, %v5000_v27 }
  0x83   :  { %2803 = vset.pattern.permute.xlu1 %v2976_v28  ;;  %5002 = vst [vmem:[#allocation23_spill] sm:$0xff] %v5001_v27  ;;  %v5003_v28 = vmov 0 }
  0x84   :  { %761 = vperm.xlu1 %2803, %v3089_v6  }
  0x86   :  { %961 = vrot.lane.b32.xlu0 %v3096_v7, %s2977_s8 }
  0x87   :  { %2814 = vset.pattern.permute.xlu0 %v2978_v29 }
  0x88   :  { %820 = vrot.lane.b32.xlu1 %v3079_v4, %s2969_s7 }
  0x89   :  { %2805 = vset.pattern.permute.xlu1 %v2979_v30 }
  0x8a   :  { %1063 = vperm.xlu0 %2814, %v3089_v6  }
  0x8c   :  { %822 = vrot.lane.b32.xlu1 %v3096_v7, %s2969_s7 }
  0x8e   :  { %2817 = vset.pattern.permute.xlu0 %v2980_v31  ;;  %v3317_v31 = vsub.s32 0, %v196_v21 }
  0x8f   :  { %1281 = vperm.xlu0 %2817, %v3089_v6  }
  0x90   :  { %826 = vrot.lane.b32.xlu1 %v3087_v5, %s2969_s7 }
  0x93   :  { %1098 = vrot.lane.b32.xlu0 %v3077_v3, %s2981_s9 }
  0x94   :  { %2818 = vset.pattern.permute.xlu0 %v2982_v32  ;;  %844 = vperm.xlu1 %2805, %v3089_v6   ;;  %v3319_v32 = vsub.s32 1, %v196_v21 }
  0x97   :  { %1198 = vperm.xlu0 %2818, %v3089_v6  }
  0x98   :  { %2807 = vset.pattern.permute.xlu1 %v2983_v33  ;;  %v3192_v44 = vpop.permute.xlu0 %167  ;;  %v3321_v33 = vsub.s32 2, %v196_v21 }
  0x99   :  { %896 = vperm.xlu1 %2807, %v3089_v6   ;;  %v3180_v37 = vpop.permute.xlu1 %173  ;;  %4986 = vst [vmem:[#allocation15_spill] sm:$0xff] %v3192_v44 }
  0x9b   :  { %1233 = vrot.lane.b32.xlu0 %v3079_v4, %s2984_s10 }
  0x9c   :  { %2820 = vset.pattern.permute.xlu0 %v2985_v34  ;;  %v3199_v46 = vpop.permute.xlu0 %169  ;;  %v3323_v34 = vsub.s32 3, %v196_v21 }
  0x9d   :  { %2808 = vset.pattern.permute.xlu1 %v2986_v35 }
  0x9e   :  { %924 = vperm.xlu1 %2808, %v3089_v6  }
  0x9f   :  { %1237 = vrot.lane.b32.xlu0 %v3077_v3, %s2984_s10 }
  0xa0   :  { %v3206_v50 = vpop.permute.xlu0 %175 }
  0xa2   :  { %2810 = vset.pattern.permute.xlu1 %v2987_v36  ;;  %v178_v36 = vsel %vm4965_vm2, %v3192_v44, %v3199_v46 }
  0xa3   :  { %1337 = vperm.xlu0 %2820, %v3089_v6   ;;  %1007 = vperm.xlu1 %2810, %v3089_v6   ;;  %v186_v14 = vsel %vm4963_vm7, %v178_v36, 0.0  ;;  %vm4973_vm7 = vcmask 908288  }
  0xa7   :  { %1241 = vrot.lane.b32.xlu0 %v2948_v0, %s2984_s10  ;;  %2811 = vset.pattern.permute.xlu1 %v2988_v38  ;;  %v5006_v38 = vmov 0 }
  0xa8   :  { %1035 = vperm.xlu1 %2811, %v3089_v6   ;;  %v5007_v38 = vsel %vm3336_vm8, 4294967295, %v5006_v38 }
  0xa9   :  { %5008 = vst [vmem:[#allocation25_spill] sm:$0xff] %v5007_v38 }
  0xaa   :  { %v3183_v39 = vpop.permute.xlu1 %192 }
  0xac   :  { %2813 = vset.pattern.permute.xlu1 %v2989_v40 }
  0xad   :  { %1142 = vperm.xlu1 %2813, %v3089_v6  }
  0xae   :  { %v3186_v41 = vpop.permute.xlu1 %171 }
  0xaf   :  { %v179_v29 = vsel %vm4965_vm2, %v3199_v46, %v3186_v41  ;;  %v180_v30 = vsel %vm4965_vm2, %v3186_v41, %v3180_v37  ;;  %v181_v41 = vsel %vm4965_vm2, %v3180_v37, %v3206_v50  ;;  %v250_v37 = vrot.slane %v186_v14, %v3321_v33 }
  0xb0   :  { %v3383_v50 = vsel %vm3336_vm8, %v181_v41, 0.0 }
  0xb1   :  { %959 = vrot.lane.b32.xlu1 %v3079_v4, %s2977_s8  ;;  %v3212_v53 = vpop.permute.xlu0 %216  ;;  %v210_v44 = vrot.slane %v3383_v50, %v3317_v31 }
  0xb2   :  { %v3190_v42 = vpop.permute.xlu1 %244  ;;  %2815 = vset.pattern.permute.xlu1 %v2990_v43  ;;  %v3352_v43 = vsel %vm4941_vm6, %v180_v30, 0.0  ;;  %v234_v30 = vrot.slane %v3383_v50, %v3319_v32  ;;  %vm4958_vm6 = vcmask 7168  }
  0xb3   :  { %v206_v2 = vrot.slane %v3352_v43, %v3317_v31  ;;  %v230_v36 = vrot.slane %v3352_v43, %v3319_v32 }
  0xb5   :  { %963 = vrot.lane.b32.xlu1 %v3077_v3, %s2977_s8  ;;  %v3218_v55 = vpop.permute.xlu0 %299 }
  0xb6   :  { %4987 = vst [vmem:[#allocation16_spill] sm:$0xff] %v3218_v55 }
  0xb7   :  { %v3196_v45 = vpop.permute.xlu1 %272 }
  0xb9   :  { %1170 = vperm.xlu1 %2815, %v3089_v6   ;;  %v3225_v57 = vpop.permute.xlu0 %303 }
  0xbb   :  { %v3201_v47 = vpop.permute.xlu1 %301 }
  0xbd   :  { %2816 = vset.pattern.permute.xlu1 %v2991_v48  ;;  %v3233_v61 = vpop.permute.xlu0 %307  ;;  %v198_v48 = vrot.slane %v186_v14, %v3317_v31 }
  0xbe   :  { %1257 = vperm.xlu1 %2816, %v3089_v6  }
  0xbf   :  { %v3204_v49 = vpop.permute.xlu1 %305  ;;  %v211_v3 = vmul.f32 %v198_v48, %v3183_v39 }
  0xc1   :  { %v3241_v63 = vpop.permute.xlu0 %347 }
  0xc2   :  { %965 = vrot.lane.b32.xlu1 %v3087_v5, %s2977_s8 }
  0xc3   :  { %v3210_v51 = vpop.permute.xlu1 %323  ;;  %2819 = vset.pattern.permute.xlu1 %v2992_v52  ;;  %v222_v52 = vrot.slane %v186_v14, %v3319_v32 }
  0xc5   :  { %v3247_v8 = vpop.permute.xlu0 %438  ;;  %v235_v15 = vmul.f32 %v222_v52, %v3212_v53  ;;  %v263_v52 = vmul.f32 %v250_v37, %v3190_v42 }
  0xc6   :  { %1096 = vrot.lane.b32.xlu1 %v3096_v7, %s2981_s9  ;;  %4988 = vst [vmem:[#allocation17_spill] sm:$0xff] %v3247_v8 }
  0xc7   :  { %v239_v37 = vadd.f32 %v235_v15, %v211_v3 }
  0xc8   :  { %v3216_v54 = vpop.permute.xlu1 %375 }
  0xc9   :  { %v3258_v12 = vpop.permute.xlu0 %442  ;;  %v3459_v15 = vadd.f32 %v263_v52, %v239_v37  ;;  %v5022_v37 = vand.u32 15, %v3264_v13 }
  0xca   :  { %1094 = vrot.lane.b32.xlu1 %v3079_v4, %s2981_s9 }
  0xcb   :  { %vm3511_vm13 = vcmp.lt.s32.totalorder %v5022_v37, 15 }
  0xcd   :  { %v3222_v56 = vpop.permute.xlu1 %403  ;;  %v3276_v20 = vpop.permute.xlu0 %446 }
  0xce   :  { %1309 = vperm.xlu1 %2819, %v3089_v6  }
  0xd1   :  { %v3227_v58 = vpop.permute.xlu1 %440  ;;  %v3325_v35 = vpop.permute.xlu0 %486 }
  0xd2   :  { %967 = vrot.lane.b32.xlu1 %v2948_v0, %s2977_s8 }
  0xd3   :  { %2821 = vset.pattern.permute.xlu1 %v2993_v59 }
  0xd5   :  { %v3231_v60 = vpop.permute.xlu1 %444 }
  0xd6   :  { %1235 = vrot.lane.b32.xlu1 %v3096_v7, %s2984_s10 }
  0xd9   :  { %v3237_v62 = vpop.permute.xlu1 %462 }
  0xda   :  { %1100 = vrot.lane.b32.xlu1 %v3087_v5, %s2981_s9 }
  0xde   :  { %1102 = vrot.lane.b32.xlu1 %v2948_v0, %s2981_s9  ;;  %v3245_v1 = vpop.permute.xlu1 %514 }
  0xe2   :  { %1239 = vrot.lane.b32.xlu1 %v3087_v5, %s2984_s10 }
  0xe3   :  { %v3251_v9 = vpop.permute.xlu1 %542 }
  0xe6   :  { %1369 = vperm.xlu1 %2821, %v3089_v6   ;;  %v4910_v6 = vand.u32 15, %v3264_v13 }
  0xe7   :  { %v3261_v0 = vpop.permute.xlu1 %575 }
  0xe8   :  { %vm3303_vm5 = vcmp.ge.s32.totalorder %v4910_v6, 1  ;;  %v213_v6 = vmul.f32 %v206_v2, %v3183_v39  ;;  %v214_v2 = vmul.f32 %v210_v44, %v3183_v39  ;;  %v262_v44 = vrot.slane %v3383_v50, %v3321_v33 }
  0xe9   :  { %v5004_v28 = vsel %vm3303_vm5, 4294967295, %v5003_v28  ;;  %v3342_v40 = vsel %vm3303_vm5, %v179_v29, 0.0  ;;  %v3377_v29 = vpop.permute.xlu0 %573 }
  0xea   :  { %5005 = vst [vmem:[#allocation24_spill] sm:$0xff] %v5004_v28  ;;  %v202_v18 = vrot.slane %v3342_v40, %v3317_v31  ;;  %v226_v21 = vrot.slane %v3342_v40, %v3319_v32  ;;  %5010 = vst [vmem:[#allocation27_spill] sm:$0xff] %v3377_v29  ;;  %v3457_v3 = vmul.f32 %v262_v44, %v3190_v42 }
  0xeb   :  { %v3271_v17 = vpop.permute.xlu1 %579 }
  0xec   :  { %v212_v41 = vmul.f32 %v202_v18, %v3183_v39  ;;  %v236_v19 = vmul.f32 %v226_v21, %v3212_v53  ;;  %v2994_v21 = vmov 74   ;;  %v278_v39 = vrot.slane %v186_v14, %v3323_v34 }
  0xed   :  { %v3422_v18 = vpop.permute.xlu0 %577  ;;  %2823 = vset.pattern.permute.xlu1 %v2994_v21  ;;  %v286_v21 = vrot.slane %v3352_v43, %v3323_v34 }
  0xee   :  { %5012 = vst [vmem:[#allocation29_spill] sm:$0xff] %v3422_v18  ;;  %v240_v59 = vadd.f32 %v236_v19, %v212_v41  ;;  %v290_v19 = vrot.slane %v3383_v50, %v3323_v34 }
  0xef   :  { %v3289_v25 = vpop.permute.xlu1 %597 }
  0xf0   :  { %4996 = vst [vmem:[#allocation21_spill] sm:$0xff] %v3289_v25  ;;  %v254_v25 = vrot.slane %v3342_v40, %v3321_v33 }
  0xf2   :  { %v264_v28 = vmul.f32 %v254_v25, %v3190_v42  ;;  %v5014_v25 = vand.u32 15, %v3253_v10 }
  0xf4   :  { %v3354_v46 = vpop.permute.xlu1 %649  ;;  %vm3468_vm10 = vcmp.lt.s32.totalorder %v5014_v25, 15 }
  0xf5   :  { %5009 = vst [vmem:[#allocation26_spill] sm:$0xff] %v3354_v46  ;;  %v238_v46 = vmul.f32 %v234_v30, %v3212_v53  ;;  %v312_v30 = vsel %vm4940_vm9, %v3225_v57, %v3204_v49  ;;  %vm4959_vm15 = vmand %vm3291_vm3, %vm3468_vm10 }
  0xf6   :  { %v320_v50 = vsel %vm3278_vm0, %v312_v30, 0.0 }
  0xf7   :  { %v3444_v41 = vadd.f32 %v238_v46, %v214_v2  ;;  %v337_v52 = vrot.slane %v320_v50, %v3317_v31 }
  0xf9   :  { %v3399_v24 = vpop.permute.xlu1 %677  ;;  %v344_v38 = vmul.f32 %v337_v52, %v3210_v51 }
  0xfa   :  { %5011 = vst [vmem:[#allocation28_spill] sm:$0xff] %v3399_v24  ;;  %v237_v24 = vmul.f32 %v230_v36, %v3212_v53  ;;  %v258_v36 = vrot.slane %v3352_v43, %v3321_v33  ;;  %v310_v53 = vsel %vm4940_vm9, %v3218_v55, %v3201_v47  ;;  %v282_v55 = vrot.slane %v3342_v40, %v3323_v34  ;;  %v3472_v43 = vpop.permute.xlu0 %581 }
  0xfb   :  { %5017 = vst [vmem:[#allocation31_spill] sm:$0xff] %v3472_v43 }
  0xfc   :  { %v241_v48 = vadd.f32 %v237_v24, %v213_v6  ;;  %v265_v14 = vmul.f32 %v258_v36, %v3190_v42  ;;  %v3461_v6 = vadd.f32 %v264_v28, %v240_v59  ;;  %v311_v24 = vsel %vm4940_vm9, %v3201_v47, %v3225_v57 }
  0xfd   :  { %v3477_v42 = vmul.f32 %v278_v39, %v3196_v45  ;;  %v3480_v28 = vmul.f32 %v282_v55, %v3196_v45  ;;  %v313_v47 = vsel %vm4940_vm9, %v3204_v49, %v3233_v61  ;;  %v5018_v57 = vand.u32 15, %v3256_v11 }
  0xfe   :  { %v3437_v5 = vpop.permute.xlu1 %733  ;;  %v3474_v46 = vadd.f32 %v265_v14, %v241_v48  ;;  %v361_v55 = vrot.slane %v320_v50, %v3319_v32  ;;  %v3501_v49 = vmul.f32 %v290_v19, %v3196_v45  ;;  %v333_v61 = vrot.slane %v311_v24, %v3317_v31  ;;  %v3531_v23 = vpop.permute.xlu0 %621 }
  0xff   :  { %5013 = vst [vmem:[#allocation30_spill] sm:$0xff] %v3437_v5  ;;  %v318_v5 = vsel %vm3291_vm3, %v310_v53, 0.0  ;;  %vm3487_vm12 = vcmp.lt.s32.totalorder %v5018_v57, 15  ;;  %v3498_v53 = vmul.f32 %v286_v21, %v3196_v45  ;;  %v357_v11 = vrot.slane %v311_v24, %v3319_v32  ;;  %5029 = vst [vmem:[#allocation34_spill] sm:$0xff] %v3531_v23 }
 0x100   :  { %v329_v2 = vrot.slane %v318_v5, %v3317_v31  ;;  %v353_v36 = vrot.slane %v318_v5, %v3319_v32  ;;  %v381_v30 = vrot.slane %v318_v5, %v3321_v33  ;;  %v341_v39 = vrot.slane %v313_v47, %v3317_v31  ;;  %vm4948_vm9 = vmand %vm3278_vm0, %vm3487_vm12 }
 0x101   :  { %v365_v44 = vrot.slane %v313_v47, %v3319_v32  ;;  %v385_v45 = vrot.slane %v311_v24, %v3321_v33  ;;  %v409_v19 = vrot.slane %v318_v5, %v3323_v34  ;;  %v413_v14 = vrot.slane %v311_v24, %v3323_v34 }
 0x102   :  { %v342_v48 = vmul.f32 %v329_v2, %v3210_v51  ;;  %v343_v25 = vmul.f32 %v333_v61, %v3210_v51  ;;  %v5025_v57 = vand.u32 15, %v3269_v16  ;;  %v366_v37 = vmul.f32 %v353_v36, %v3241_v63 }
 0x103   :  { %v3491_v59 = vpop.permute.xlu1 %761  ;;  %v368_v7 = vmul.f32 %v361_v55, %v3241_v63  ;;  %v394_v5 = vmul.f32 %v381_v30, %v3216_v54  ;;  %v367_v24 = vmul.f32 %v357_v11, %v3241_v63  ;;  %v389_v61 = vrot.slane %v320_v50, %v3321_v33 }
 0x104   :  { %5021 = vst [vmem:[#allocation32_spill] sm:$0xff] %v3491_v59  ;;  %vm3521_vm14 = vcmp.lt.s32.totalorder %v5025_v57, 15  ;;  %v393_v57 = vrot.slane %v313_v47, %v3321_v33  ;;  %v395_v16 = vmul.f32 %v385_v45, %v3216_v54  ;;  %v417_v36 = vrot.slane %v320_v50, %v3323_v34 }
 0x105   :  { %v345_v55 = vmul.f32 %v341_v39, %v3210_v51  ;;  %v370_v4 = vadd.f32 %v366_v37, %v342_v48  ;;  %v371_v52 = vadd.f32 %v367_v24, %v343_v25  ;;  %v396_v30 = vmul.f32 %v389_v61, %v3216_v54 }
 0x106   :  { %v422_v23 = vmul.f32 %v409_v19, %v3222_v56  ;;  %v423_v11 = vmul.f32 %v413_v14, %v3222_v56  ;;  %v421_v43 = vrot.slane %v313_v47, %v3323_v34  ;;  %v372_v18 = vadd.f32 %v368_v7, %v344_v38 }
 0x107   :  { %v3525_v2 = vpop.permute.xlu1 %820  ;;  %v397_v45 = vmul.f32 %v393_v57, %v3216_v54  ;;  %v399_v50 = vadd.f32 %v395_v16, %v371_v52  ;;  %v424_v51 = vmul.f32 %v417_v36, %v3222_v56  ;;  %v449_v39 = vsel %vm4961_vm11, %v3247_v8, %v3227_v58 }
 0x108   :  { %5028 = vst [vmem:[#allocation33_spill] sm:$0xff] %v3525_v2  ;;  %v369_v2 = vmul.f32 %v365_v44, %v3241_v63  ;;  %v398_v63 = vadd.f32 %v394_v5, %v370_v4  ;;  %v3547_v44 = vpop.permute.xlu0 %709  ;;  %v425_v7 = vmul.f32 %v421_v43, %v3222_v56  ;;  %v450_v4 = vsel %vm4961_vm11, %v3227_v58, %v3258_v12 }
 0x109   :  { %v451_v54 = vsel %vm4961_vm11, %v3258_v12, %v3231_v60  ;;  %v2995_v16 = vmov 73   ;;  %v400_v38 = vadd.f32 %v396_v30, %v372_v18  ;;  %v427_v19 = vadd.f32 %v423_v11, %v399_v50 }
 0x10a   :  { %v373_v48 = vadd.f32 %v369_v2, %v345_v55  ;;  %2822 = vset.pattern.permute.xlu0 %v2995_v16  ;;  %v426_v47 = vadd.f32 %v422_v23, %v398_v63  ;;  %v452_v56 = vsel %vm4961_vm11, %v3231_v60, %v3276_v20  ;;  %v270_v58 = vadd.f32 %v3457_v3, %v3444_v41 }
 0x10b   :  { %v3543_v27 = vpop.permute.xlu1 %822  ;;  %v295_v14 = vadd.f32 %v3477_v42, %v3459_v15  ;;  %v457_v12 = vsel %vm4959_vm15, %v449_v39, 0.0  ;;  %v296_v23 = vadd.f32 %v3480_v28, %v3461_v6  ;;  %v428_v18 = vadd.f32 %v424_v51, %v400_v38  ;;  %v5054_v6 = vld [vmem:[#allocation34_spill] sm:$0xff] }
 0x10c   :  { %v401_v25 = vadd.f32 %v397_v45, %v373_v48  ;;  %v458_v60 = vsel %vm3511_vm13, %v450_v4, 0.0  ;;  %v459_v20 = vsel %vm4948_vm9, %v451_v54, 0.0  ;;  %v297_v41 = vadd.f32 %v3498_v53, %v3474_v46  ;;  %v3595_v42 = vpop.permute.xlu0 %789 }
 0x10d   :  { %v460_v15 = vsel %vm3521_vm14, %v452_v56, 0.0  ;;  %v298_v28 = vadd.f32 %v3501_v49, %v270_v58  ;;  %v3599_v2 = vadd.f32 %v426_v47, %v295_v14  ;;  %v3601_v37 = vadd.f32 %v427_v19, %v296_v23 }
 0x10e   :  { %v429_v3 = vadd.f32 %v425_v7, %v401_v25  ;;  %v492_v5 = vrot.slane %v457_v12, %v3319_v32  ;;  %v468_v46 = vrot.slane %v457_v12, %v3317_v31  ;;  %v496_v53 = vrot.slane %v458_v60, %v3319_v32 }
 0x10f   :  { %v3571_v43 = vpop.permute.xlu1 %826  ;;  %v476_v61 = vrot.slane %v459_v20, %v3317_v31  ;;  %v500_v57 = vrot.slane %v459_v20, %v3319_v32  ;;  %v3610_v36 = vadd.f32 %v428_v18, %v297_v41  ;;  %v472_v49 = vrot.slane %v458_v60, %v3317_v31 }
 0x110   :  { %v480_v55 = vrot.slane %v460_v15, %v3317_v31  ;;  %v504_v52 = vrot.slane %v460_v15, %v3319_v32  ;;  %v3615_v30 = vadd.f32 %v429_v3, %v298_v28  ;;  %v520_v11 = vrot.slane %v457_v12, %v3321_v33  ;;  %v3628_v38 = vpop.permute.xlu0 %824 }
 0x111   :  { %v524_v45 = vrot.slane %v458_v60, %v3321_v33  ;;  %v481_v63 = vmul.f32 %v468_v46, %v3237_v62  ;;  %v548_v50 = vrot.slane %v457_v12, %v3323_v34  ;;  %v552_v51 = vrot.slane %v458_v60, %v3323_v34 }
 0x112   :  { %v505_v39 = vmul.f32 %v492_v5, %v3325_v35  ;;  %v482_v48 = vmul.f32 %v472_v49, %v3237_v62  ;;  %v506_v7 = vmul.f32 %v496_v53, %v3325_v35  ;;  %v507_v4 = vmul.f32 %v500_v57, %v3325_v35  ;;  %v5033_v57 = vld [vmem:[#allocation31_spill] sm:$0xff] }
 0x113   :  { %v3604_v24 = vpop.permute.xlu1 %844  ;;  %v483_v54 = vmul.f32 %v476_v61, %v3237_v62  ;;  %v533_v16 = vmul.f32 %v520_v11, %v3245_v1  ;;  %v508_v19 = vmul.f32 %v504_v52, %v3325_v35  ;;  %v528_v56 = vrot.slane %v459_v20, %v3321_v33  ;;  %v5032_v61 = vld [vmem:[#allocation29_spill] sm:$0xff] }
 0x114   :  { %5030 = vst [vmem:[#allocation35_spill] sm:$0xff] %v3604_v24  ;;  %v532_v58 = vrot.slane %v460_v15, %v3321_v33  ;;  %v484_v14 = vmul.f32 %v480_v55, %v3237_v62  ;;  %v556_v25 = vrot.slane %v459_v20, %v3323_v34  ;;  %v509_v12 = vadd.f32 %v505_v39, %v481_v63  ;;  %v3659_v63 = vpop.permute.xlu0 %828 }
 0x115   :  { %v534_v23 = vmul.f32 %v524_v45, %v3245_v1  ;;  %v561_v18 = vmul.f32 %v548_v50, %v3251_v9  ;;  %v560_v60 = vrot.slane %v460_v15, %v3323_v34  ;;  %v510_v41 = vadd.f32 %v506_v7, %v482_v48  ;;  %5035 = vst [vmem:[#allocation31_spill] sm:$0xff] %v3659_v63 }
 0x116   :  { %v535_v3 = vmul.f32 %v528_v56, %v3245_v1  ;;  %v536_v35 = vmul.f32 %v532_v58, %v3245_v1  ;;  %v511_v28 = vadd.f32 %v507_v4, %v483_v54  ;;  %v537_v5 = vadd.f32 %v533_v16, %v509_v12  ;;  %v5041_v56 = vld [vmem:[#allocation14_spill] sm:$0xff] }
 0x117   :  { %v562_v46 = vmul.f32 %v552_v51, %v3251_v9  ;;  %v584_v62 = vsel %vm4958_vm6, %v3377_v29, %v3261_v0  ;;  %v512_v20 = vadd.f32 %v508_v19, %v484_v14  ;;  %v563_v53 = vmul.f32 %v556_v25, %v3251_v9 }
 0x118   :  { %v3630_v47 = vpop.permute.xlu1 %896  ;;  %v586_v15 = vsel %vm4958_vm6, %v5032_v61, %v3271_v17  ;;  %v587_v49 = vsel %vm4958_vm6, %v3271_v17, %v5033_v57  ;;  %v538_v55 = vadd.f32 %v534_v23, %v510_v41  ;;  %v564_v52 = vmul.f32 %v560_v60, %v3251_v9  ;;  %v5037_v17 = vld [vmem:[#allocation12_spill] sm:$0xff] }
 0x119   :  { %5031 = vst [vmem:[#allocation36_spill] sm:$0xff] %v3630_v47  ;;  %v565_v11 = vadd.f32 %v561_v18, %v537_v5  ;;  %v585_v45 = vsel %vm4958_vm6, %v3261_v0, %v5032_v61  ;;  %v539_v50 = vadd.f32 %v535_v3, %v511_v28  ;;  %v540_v51 = vadd.f32 %v536_v35, %v512_v20  ;;  %v5044_v18 = vld [vmem:[#allocation11_spill] sm:$0xff]  ;;  %v5046_v3 = vld [vmem:[#allocation13_spill] sm:$0xff] }
 0x11a   :  { %v3663_v48 = vsel %vm3297_vm4, %v584_v62, 0.0  ;;  %v5038_v7 = vrot.slane %v5037_v17, %v3317_v31  ;;  %v566_v9 = vadd.f32 %v562_v46, %v538_v55  ;;  %v594_v16 = vsel %vm3284_vm1, %v586_v15, 0.0 }
 0x11b   :  { %v595_v0 = vsel %vm3336_vm8, %v587_v49, 0.0  ;;  %v5042_v58 = vrot.slane %v5041_v56, %v3317_v31  ;;  %v3681_v25 = vadd.f32 %v563_v53, %v539_v50  ;;  %v3685_v23 = vsel %vm3303_vm5, %v585_v45, 0.0  ;;  %v3723_v45 = vpop.permute.xlu0 %868 }
 0x11c   :  { %v3669_v4 = vmul.f32 %v5038_v7, %v3547_v44  ;;  %v5045_v60 = vrot.slane %v5044_v18, %v3317_v31  ;;  %v5047_v35 = vrot.slane %v5046_v3, %v3317_v31  ;;  %v3695_v5 = vadd.f32 %v564_v52, %v540_v51  ;;  %5050 = vst [vmem:[#allocation24_spill] sm:$0xff] %v3723_v45  ;;  %v5051_v51 = vld [vmem:[#allocation21_spill] sm:$0xff] }
 0x11d   :  { %v3653_v1 = vpop.permute.xlu1 %924  ;;  %v3679_v14 = vmul.f32 %v5042_v58, %v3547_v44  ;;  %v3698_v46 = vadd.f32 %v565_v11, %v3599_v2  ;;  %v603_v62 = vrot.slane %v3663_v48, %v3317_v31  ;;  %v627_v20 = vrot.slane %v3663_v48, %v3319_v32 }
 0x11e   :  { %5034 = vst [vmem:[#allocation29_spill] sm:$0xff] %v3653_v1  ;;  %v730_v41 = vmul.f32 %v5045_v60, %v3547_v44  ;;  %v731_v28 = vmul.f32 %v5047_v35, %v3547_v44  ;;  %v611_v61 = vrot.slane %v594_v16, %v3317_v31  ;;  %v615_v15 = vrot.slane %v595_v0, %v3317_v31 }
 0x11f   :  { %v635_v57 = vrot.slane %v594_v16, %v3319_v32  ;;  %v639_v44 = vrot.slane %v595_v0, %v3319_v32  ;;  %v3711_v49 = vadd.f32 %v566_v9, %v3601_v37  ;;  %v607_v2 = vrot.slane %v3685_v23, %v3317_v31 }
 0x120   :  { %v631_v55 = vrot.slane %v3685_v23, %v3319_v32  ;;  %v5049_v52 = vrot.slane %v5037_v17, %v3323_v34  ;;  %v655_v50 = vrot.slane %v3663_v48, %v3321_v33  ;;  %v616_v37 = vmul.f32 %v603_v62, %v5051_v51 }
 0x121   :  { %v5052_v7 = vrot.slane %v5044_v18, %v3323_v34  ;;  %v5053_v58 = vrot.slane %v5046_v3, %v3323_v34  ;;  %v659_v35 = vrot.slane %v3685_v23, %v3321_v33  ;;  %v640_v62 = vmul.f32 %v627_v20, %v5054_v6 }
 0x122   :  { %v3704_v53 = vpop.permute.xlu1 %1007  ;;  %v3721_v11 = vmul.f32 %v5049_v52, %v3595_v42  ;;  %v683_v52 = vrot.slane %v3663_v48, %v3323_v34  ;;  %v617_v29 = vmul.f32 %v607_v2, %v5051_v51  ;;  %v642_v22 = vmul.f32 %v635_v57, %v5054_v6 }
 0x123   :  { %5048 = vst [vmem:[#allocation12_spill] sm:$0xff] %v3704_v53  ;;  %v3732_v9 = vmul.f32 %v5052_v7, %v3595_v42  ;;  %v3738_v60 = vmul.f32 %v5053_v58, %v3595_v42  ;;  %v643_v7 = vmul.f32 %v639_v44, %v5054_v6  ;;  %v618_v8 = vmul.f32 %v611_v61, %v5051_v51  ;;  %v3757_v53 = vpop.permute.xlu0 %983 }
 0x124   :  { %v619_v26 = vmul.f32 %v615_v15, %v5051_v51  ;;  %vm4960_vm9 = vcmask 1039360   ;;  %v687_v19 = vrot.slane %v3685_v23, %v3323_v34  ;;  %v641_v48 = vmul.f32 %v631_v55, %v5054_v6  ;;  %5056 = vst [vmem:[#allocation21_spill] sm:$0xff] %v3757_v53  ;;  %v5057_v15 = vld [vmem:[#allocation30_spill] sm:$0xff] }
 0x125   :  { %v663_v20 = vrot.slane %v594_v16, %v3321_v33  ;;  %v667_v2 = vrot.slane %v595_v0, %v3321_v33  ;;  %v691_v57 = vrot.slane %v594_v16, %v3323_v34  ;;  %v695_v61 = vrot.slane %v595_v0, %v3323_v34  ;;  %v5059_v23 = vld [vmem:[#allocation26_spill] sm:$0xff] }
 0x126   :  { %v644_v44 = vadd.f32 %v640_v62, %v616_v37  ;;  %v5058_v51 = vrot.slane %v5044_v18, %v3319_v32  ;;  %v645_v54 = vadd.f32 %v641_v48, %v617_v29  ;;  %v5060_v6 = vrot.slane %v5037_v17, %v3319_v32  ;;  %v5063_v29 = vld [vmem:[#allocation32_spill] sm:$0xff] }
 0x127   :  { %v3750_v58 = vpop.permute.xlu1 %1035  ;;  %v670_v1 = vmul.f32 %v663_v20, %v5059_v23  ;;  %v5061_v16 = vrot.slane %v5046_v3, %v3319_v32  ;;  %v646_v0 = vadd.f32 %v642_v22, %v618_v8  ;;  %v647_v37 = vadd.f32 %v643_v7, %v619_v26 }
 0x128   :  { %5055 = vst [vmem:[#allocation11_spill] sm:$0xff] %v3750_v58  ;;  %v754_v58 = vmul.f32 %v5058_v51, %v5057_v15  ;;  %v752_v55 = vmul.f32 %v5060_v6, %v5057_v15  ;;  %v5062_v62 = vrot.slane %v5041_v56, %v3319_v32  ;;  %v5064_v48 = vrot.slane %v5044_v18, %v3321_v33  ;;  %v5065_v6 = vld [vmem:[#allocation28_spill] sm:$0xff] }
 0x129   :  { %v755_v53 = vmul.f32 %v5061_v16, %v5057_v15  ;;  %v671_v47 = vmul.f32 %v667_v2, %v5059_v23  ;;  %v698_v39 = vmul.f32 %v691_v57, %v5065_v6  ;;  %v5066_v16 = vrot.slane %v5037_v17, %v3321_v33 }
 0x12a   :  { %v753_v51 = vmul.f32 %v5062_v62, %v5057_v15  ;;  %v782_v20 = vmul.f32 %v5064_v48, %v5063_v29  ;;  %v5067_v22 = vrot.slane %v5046_v3, %v3321_v33  ;;  %v668_v15 = vmul.f32 %v655_v50, %v5059_v23  ;;  %v3802_v3 = vpop.permute.xlu0 %1118 }
 0x12b   :  { %v780_v8 = vmul.f32 %v5066_v16, %v5063_v29  ;;  %v669_v18 = vmul.f32 %v659_v35, %v5059_v23  ;;  %v758_v62 = vadd.f32 %v754_v58, %v730_v41  ;;  %v5069_v2 = vrot.slane %v5041_v56, %v3321_v33 }
 0x12c   :  { %v783_v26 = vmul.f32 %v5067_v22, %v5063_v29  ;;  %v3792_v7 = vpop.permute.xlu1 %1142  ;;  %v674_v48 = vadd.f32 %v670_v1, %v646_v0  ;;  %v699_v17 = vmul.f32 %v695_v61, %v5065_v6  ;;  %v756_v16 = vadd.f32 %v752_v55, %v3669_v4 }
 0x12d   :  { %5068 = vst [vmem:[#allocation34_spill] sm:$0xff] %v3792_v7  ;;  %v781_v57 = vmul.f32 %v5069_v2, %v5063_v29  ;;  %v759_v24 = vadd.f32 %v755_v53, %v731_v28  ;;  %v696_v22 = vmul.f32 %v683_v52, %v5065_v6  ;;  %v697_v50 = vmul.f32 %v687_v19, %v5065_v6 }
 0x12e   :  { %v757_v35 = vadd.f32 %v753_v51, %v3679_v14  ;;  %v786_v41 = vadd.f32 %v782_v20, %v758_v62  ;;  %v675_v58 = vadd.f32 %v671_v47, %v647_v37  ;;  %v702_v23 = vadd.f32 %v698_v39, %v674_v48  ;;  %v5071_v14 = vld [vmem:[#allocation33_spill] sm:$0xff]  ;;  %v962_v37 = vpop.permute.xlu0 %961 }
 0x12f   :  { %v784_v7 = vadd.f32 %v780_v8, %v756_v16  ;;  %v787_v45 = vadd.f32 %v783_v26, %v759_v24  ;;  %v672_v1 = vadd.f32 %v668_v15, %v644_v44  ;;  %v673_v0 = vadd.f32 %v669_v18, %v645_v54 }
 0x130   :  { %v960_v29 = vpop.permute.xlu1 %959  ;;  %v5070_v4 = vrot.slane %v5041_v56, %v3323_v34  ;;  %v785_v53 = vadd.f32 %v781_v57, %v757_v35  ;;  %v571_v52 = vadd.f32 %v3681_v25, %v3610_v36  ;;  %v703_v19 = vadd.f32 %v699_v17, %v675_v58 }
 0x131   :  { %v831_v47 = vsel %vm4960_vm9, %v5071_v14, %v3543_v27  ;;  %v832_v24 = vsel %vm4960_vm9, %v3543_v27, %v3628_v38  ;;  %v572_v39 = vadd.f32 %v3695_v5, %v3615_v30  ;;  %v700_v54 = vadd.f32 %v696_v22, %v672_v1 }
 0x132   :  { %v809_v28 = vmul.f32 %v5070_v4, %v3595_v42  ;;  %v701_v61 = vadd.f32 %v697_v50, %v673_v0  ;;  %v814_v42 = vadd.f32 %v3732_v9, %v786_v41  ;;  %v706_v44 = vadd.f32 %v702_v23, %v571_v52  ;;  %v3880_v22 = vpop.permute.xlu0 %1063  ;;  %v5077_v0 = vld [vmem:[#allocation24_spill] sm:$0xff] }
 0x133   :  { %v812_v55 = vadd.f32 %v3721_v11, %v784_v7  ;;  %v815_v36 = vadd.f32 %v3738_v60, %v787_v45  ;;  %v833_v25 = vsel %vm4960_vm9, %v3628_v38, %v3571_v43  ;;  %v3831_v30 = vsel %vm3468_vm10, %v831_v47, 0.0  ;;  %v5076_v60 = vld [vmem:[#allocation18_spill] sm:$0xff] }
 0x134   :  { %v3827_v51 = vpop.permute.xlu1 %963  ;;  %v813_v27 = vadd.f32 %v809_v28, %v785_v53  ;;  %v3835_v5 = vsel %vm3511_vm13, %v832_v24, 0.0  ;;  %v834_v11 = vsel %vm4960_vm9, %v3571_v43, %v3659_v63  ;;  %v707_v45 = vadd.f32 %v703_v19, %v572_v39  ;;  %v5078_v53 = vld [vmem:[#allocation35_spill] sm:$0xff] }
 0x135   :  { %vm4966_vm6 = vcmask 924672   ;;  %v5072_v38 = vand.u32 255, %v3264_v13  ;;  %v5073_v9 = vmov 0  ;;  %v69_v20 = vand.u32 255, %v5076_v60 }
 0x136   :  { %v704_v6 = vadd.f32 %v700_v54, %v3698_v46  ;;  %v705_v8 = vadd.f32 %v701_v61, %v3711_v49  ;;  %v3851_v26 = vsel %vm3487_vm12, %v833_v25, 0.0  ;;  %v3853_v7 = vadd.f32 %v814_v42, %v706_v44 }
 0x137   :  { %vm3842_vm15 = vcmp.lt.s32.totalorder %v5072_v38, 240  ;;  %v874_v43 = vrot.slane %v3831_v30, %v3319_v32  ;;  %v878_v13 = vrot.slane %v3835_v5, %v3319_v32  ;;  %v3861_v15 = vsel %vm3521_vm14, %v834_v11, 0.0 }
 0x138   :  { %v5074_v9 = vsel %vm3842_vm15, 4294967295, %v5073_v9  ;;  %v3863_v18 = vadd.f32 %v815_v36, %v707_v45  ;;  %v3865_v46 = vpop.permute.xlu1 %1170  ;;  %v850_v49 = vrot.slane %v3831_v30, %v3317_v31  ;;  %v854_v62 = vrot.slane %v3835_v5, %v3317_v31  ;;  %vm4962_vm9 = vmand %vm3842_vm15, %vm3303_vm5 }
 0x139   :  { %5075 = vst [vmem:[#allocation30_spill] sm:$0xff] %v5074_v9  ;;  %v3871_v2 = vadd.f32 %v813_v27, %v705_v8  ;;  %v3873_v57 = vadd.f32 %v812_v55, %v704_v6  ;;  %v858_v48 = vrot.slane %v3851_v26, %v3317_v31  ;;  %v882_v17 = vrot.slane %v3851_v26, %v3319_v32  ;;  %v3923_v55 = vpop.permute.xlu0 %1281  ;;  %v5080_v8 = vld [vmem:[#allocation36_spill] sm:$0xff] }
 0x13a   :  { %v970_v16 = vsel %vm4966_vm6, %v960_v29, %v962_v37  ;;  %v971_v50 = vsel %vm4966_vm6, %v962_v37, %v3827_v51  ;;  %v902_v35 = vrot.slane %v3831_v30, %v3321_v33  ;;  %v906_v41 = vrot.slane %v3835_v5, %v3321_v33 }
 0x13b   :  { %v862_v58 = vrot.slane %v3861_v15, %v3317_v31  ;;  %v886_v23 = vrot.slane %v3861_v15, %v3319_v32  ;;  %v930_v29 = vrot.slane %v3831_v30, %v3323_v34  ;;  %v934_v1 = vrot.slane %v3835_v5, %v3323_v34 }
 0x13c   :  { %v887_v4 = vmul.f32 %v874_v43, %v5077_v0  ;;  %v888_v28 = vmul.f32 %v878_v13, %v5077_v0  ;;  %vm1104_vm11 = vcmask 916480   ;;  %v863_v52 = vmul.f32 %v850_v49, %v5078_v53 }
 0x13d   :  { %v864_v19 = vmul.f32 %v854_v62, %v5078_v53  ;;  %v3906_v47 = vsel %vm3297_vm4, %v970_v16, 0.0  ;;  %v3913_v24 = vsel %vm4962_vm9, %v971_v50, 0.0  ;;  %v3915_v39 = vpop.permute.xlu1 %1257  ;;  %v889_v54 = vmul.f32 %v882_v17, %v5077_v0  ;;  %v5081_v16 = vld [vmem:[#allocation29_spill] sm:$0xff] }
 0x13e   :  { %v910_v61 = vrot.slane %v3851_v26, %v3321_v33  ;;  %v914_v42 = vrot.slane %v3861_v15, %v3321_v33  ;;  %v865_v44 = vmul.f32 %v858_v48, %v5078_v53  ;;  %v890_v36 = vmul.f32 %v886_v23, %v5077_v0 }
 0x13f   :  { %v938_v25 = vrot.slane %v3851_v26, %v3323_v34  ;;  %v942_v37 = vrot.slane %v3861_v15, %v3323_v34  ;;  %v866_v27 = vmul.f32 %v862_v58, %v5078_v53  ;;  %v989_v30 = vrot.slane %v3906_v47, %v3317_v31 }
 0x140   :  { %v1013_v5 = vrot.slane %v3906_v47, %v3319_v32  ;;  %v993_v11 = vrot.slane %v3913_v24, %v3317_v31  ;;  %v1017_v45 = vrot.slane %v3913_v24, %v3319_v32  ;;  %v891_v38 = vadd.f32 %v887_v4, %v863_v52  ;;  %v5084_v4 = vld [vmem:[#allocation12_spill] sm:$0xff] }
 0x141   :  { %v892_v6 = vadd.f32 %v888_v28, %v864_v19  ;;  %v915_v26 = vmul.f32 %v902_v35, %v5080_v8  ;;  %v916_v43 = vmul.f32 %v906_v41, %v5080_v8  ;;  %v3941_v13 = vpop.permute.xlu1 %965  ;;  %v893_v15 = vadd.f32 %v889_v54, %v865_v44  ;;  %v5083_v41 = vld [vmem:[#allocation21_spill] sm:$0xff]  ;;  %v3958_v19 = vpop.permute.xlu0 %1098 }
 0x142   :  { %v917_v49 = vmul.f32 %v910_v61, %v5080_v8  ;;  %v918_v62 = vmul.f32 %v914_v42, %v5080_v8  ;;  %v972_v48 = vsel %vm4966_vm6, %v3827_v51, %v3941_v13  ;;  %v894_v17 = vadd.f32 %v890_v36, %v866_v27 }
 0x143   :  { %v943_v50 = vmul.f32 %v930_v29, %v5081_v16  ;;  %v944_v58 = vmul.f32 %v934_v1, %v5081_v16  ;;  %v3952_v35 = vsel %vm3284_vm1, %v972_v48, 0.0  ;;  %v1002_v0 = vmul.f32 %v989_v30, %v5083_v41 }
 0x144   :  { %v1026_v28 = vmul.f32 %v1013_v5, %v5084_v4  ;;  %v1003_v53 = vmul.f32 %v993_v11, %v5083_v41  ;;  %v1027_v52 = vmul.f32 %v1017_v45, %v5084_v4  ;;  %v919_v51 = vadd.f32 %v915_v26, %v891_v38 }
 0x145   :  { %v920_v54 = vadd.f32 %v916_v43, %v892_v6  ;;  %v997_v29 = vrot.slane %v3952_v35, %v3317_v31  ;;  %v1021_v1 = vrot.slane %v3952_v35, %v3319_v32  ;;  %v1097_v61 = vpop.permute.xlu1 %1096  ;;  %vm3966_vm9 = vcmp.lt.s32.totalorder %v69_v20, 240 }
 0x146   :  { %v5085_v42 = vmov 0  ;;  %v921_v44 = vadd.f32 %v917_v49, %v893_v15  ;;  %v922_v36 = vadd.f32 %v918_v62, %v894_v17  ;;  %v945_v27 = vmul.f32 %v938_v25, %v5081_v16  ;;  %v5088_v49 = vld [vmem:[#allocation11_spill] sm:$0xff]  ;;  %vm4968_vm2 = vmand %vm3966_vm9, %vm3336_vm8 }
 0x147   :  { %v5086_v42 = vsel %vm3966_vm9, 4294967295, %v5085_v42  ;;  %v1041_v30 = vrot.slane %v3906_v47, %v3321_v33  ;;  %v946_v5 = vmul.f32 %v942_v37, %v5081_v16  ;;  %v947_v11 = vadd.f32 %v943_v50, %v919_v51  ;;  %v3989_v16 = vpop.permute.xlu0 %1198 }
 0x148   :  { %5087 = vst [vmem:[#allocation26_spill] sm:$0xff] %v5086_v42  ;;  %v1045_v45 = vrot.slane %v3913_v24, %v3321_v33  ;;  %v1106_v60 = vsel %vm1104_vm11, %v1097_v61, %v3958_v19  ;;  %v948_v20 = vadd.f32 %v944_v58, %v920_v54  ;;  %v1030_v38 = vadd.f32 %v1026_v28, %v1002_v0 }
 0x149   :  { %v1031_v6 = vadd.f32 %v1027_v52, %v1003_v53  ;;  %v1114_v8 = vsel %vm3842_vm15, %v1106_v60, 0.0  ;;  %v1004_v25 = vmul.f32 %v997_v29, %v5083_v41  ;;  %v1028_v26 = vmul.f32 %v1021_v1, %v5084_v4  ;;  %v1095_v15 = vpop.permute.xlu1 %1094  ;;  %v5089_v53 = vld [vmem:[#allocation34_spill] sm:$0xff] }
 0x14a   :  { %v1128_v43 = vrot.slane %v1114_v8, %v3317_v31  ;;  %v1152_v37 = vrot.slane %v1114_v8, %v3319_v32  ;;  %v1054_v62 = vmul.f32 %v1041_v30, %v5088_v49  ;;  %v1069_v48 = vrot.slane %v3906_v47, %v3323_v34 }
 0x14b   :  { %v1073_v17 = vrot.slane %v3913_v24, %v3323_v34  ;;  %v1105_v50 = vsel %vm1104_vm11, %v1095_v15, %v1097_v61  ;;  %v1055_v58 = vmul.f32 %v1045_v45, %v5088_v49  ;;  %v1049_v0 = vrot.slane %v3952_v35, %v3321_v33 }
 0x14c   :  { %v1138_v28 = vmul.f32 %v1128_v43, %v3802_v3  ;;  %v1162_v52 = vmul.f32 %v1152_v37, %v5089_v53  ;;  %v1058_v51 = vadd.f32 %v1054_v62, %v1030_v38  ;;  %v1180_v47 = vrot.slane %v1114_v8, %v3321_v33 }
 0x14d   :  { %v1124_v54 = vrot.slane %v1105_v50, %v3317_v31  ;;  %v1148_v24 = vrot.slane %v1105_v50, %v3319_v32  ;;  %v949_v29 = vadd.f32 %v945_v27, %v921_v44  ;;  %v1059_v1 = vadd.f32 %v1055_v58, %v1031_v6  ;;  %v4001_v45 = vpop.permute.xlu1 %1309 }
 0x14e   :  { %v1032_v61 = vadd.f32 %v1028_v26, %v1004_v25  ;;  %v1176_v30 = vrot.slane %v1105_v50, %v3321_v33  ;;  %v1082_v60 = vmul.f32 %v1069_v48, %v3880_v22  ;;  %v1166_v43 = vadd.f32 %v1162_v52, %v1138_v28  ;;  %v1234_v48 = vpop.permute.xlu0 %1233 }
 0x14f   :  { %v1137_v37 = vmul.f32 %v1124_v54, %v3802_v3  ;;  %v1161_v38 = vmul.f32 %v1148_v24, %v5089_v53  ;;  %v950_v15 = vadd.f32 %v946_v5, %v922_v36  ;;  %v1083_v62 = vmul.f32 %v1073_v17, %v3880_v22 }
 0x150   :  { %v1056_v56 = vmul.f32 %v1049_v0, %v5088_v49  ;;  %v1077_v44 = vrot.slane %v3952_v35, %v3323_v34  ;;  %v1086_v27 = vadd.f32 %v1082_v60, %v1058_v51  ;;  %v1190_v6 = vmul.f32 %v1180_v47, %v3865_v46 }
 0x151   :  { %v1208_v25 = vrot.slane %v1114_v8, %v3323_v34  ;;  %v1165_v26 = vadd.f32 %v1161_v38, %v1137_v37  ;;  %v1087_v36 = vadd.f32 %v1083_v62, %v1059_v1  ;;  %v1189_v17 = vmul.f32 %v1176_v30, %v3865_v46  ;;  %v4018_v28 = vpop.permute.xlu1 %967 }
 0x152   :  { %v1060_v5 = vadd.f32 %v1056_v56, %v1032_v61  ;;  %v1204_v0 = vrot.slane %v1105_v50, %v3323_v34  ;;  %5091 = vst [vmem:[#allocation32_spill] sm:$0xff] %v4018_v28  ;;  %v952_v35 = vadd.f32 %v948_v20, %v3871_v2  ;;  %v4022_v52 = vadd.f32 %v949_v29, %v3853_v7  ;;  %v1238_v61 = vpop.permute.xlu0 %1237 }
 0x153   :  { %v1194_v8 = vadd.f32 %v1190_v6, %v1166_v43  ;;  %v973_v51 = vsel %vm4966_vm6, %v3941_v13, %v4018_v28  ;;  %v951_v47 = vadd.f32 %v947_v11, %v3873_v57  ;;  %v1084_v56 = vmul.f32 %v1077_v44, %v3880_v22  ;;  %vm4967_vm6 = vmand %vm3842_vm15, %vm3511_vm13 }
 0x154   :  { %v1193_v54 = vadd.f32 %v1189_v17, %v1165_v26  ;;  %v981_v50 = vsel %vm4968_vm2, %v973_v51, 0.0  ;;  %v4035_v2 = vadd.f32 %v950_v15, %v3863_v18  ;;  %v1218_v7 = vmul.f32 %v1208_v25, %v3989_v16 }
 0x155   :  { %v1001_v20 = vrot.slane %v981_v50, %v3317_v31  ;;  %v1025_v13 = vrot.slane %v981_v50, %v3319_v32  ;;  %v1090_v24 = vadd.f32 %v1086_v27, %v951_v47  ;;  %v4040_v57 = vadd.f32 %v1084_v56, %v1060_v5  ;;  %v1236_v29 = vpop.permute.xlu1 %1235 }
 0x156   :  { %v1217_v11 = vmul.f32 %v1204_v0, %v3989_v16  ;;  %v1091_v1 = vadd.f32 %v1087_v36, %v952_v35  ;;  %v1222_v18 = vadd.f32 %v1218_v7, %v1194_v8  ;;  %v1244_v43 = vsel %vm4973_vm7, %v1234_v48, %v1236_v29  ;;  %v4074_v7 = vpop.permute.xlu0 %1337 }
 0x157   :  { %v1005_v30 = vmul.f32 %v1001_v20, %v5083_v41  ;;  %v1029_v60 = vmul.f32 %v1025_v13, %v5084_v4  ;;  %v1053_v38 = vrot.slane %v981_v50, %v3321_v33  ;;  %v1245_v15 = vsel %vm4973_vm7, %v1236_v29, %v1238_v61 }
 0x158   :  { %v1221_v37 = vadd.f32 %v1217_v11, %v1193_v54  ;;  %v1252_v62 = vsel %vm3468_vm10, %v1244_v43, 0.0  ;;  %v1081_v44 = vrot.slane %v981_v50, %v3323_v34  ;;  %v1253_v41 = vsel %vm4967_vm6, %v1245_v15, 0.0  ;;  %vm4970_vm6 = vmand %vm3966_vm9, %vm3521_vm14 }
 0x159   :  { %v1263_v4 = vrot.slane %v1252_v62, %v3317_v31  ;;  %v1287_v27 = vrot.slane %v1252_v62, %v3319_v32  ;;  %v1267_v6 = vrot.slane %v1253_v41, %v3317_v31  ;;  %v1291_v25 = vrot.slane %v1253_v41, %v3319_v32  ;;  %v1101_v36 = vpop.permute.xlu1 %1100 }
 0x15a   :  { %v1315_v26 = vrot.slane %v1252_v62, %v3321_v33  ;;  %v1319_v48 = vrot.slane %v1253_v41, %v3321_v33  ;;  %v1033_v5 = vadd.f32 %v1029_v60, %v1005_v30  ;;  %v1226_v35 = vadd.f32 %v1222_v18, %v1091_v1 }
 0x15b   :  { %v1276_v17 = vmul.f32 %v1263_v4, %v3915_v39  ;;  %v1300_v0 = vmul.f32 %v1287_v27, %v3923_v55  ;;  %v1057_v8 = vmul.f32 %v1053_v38, %v5088_v49  ;;  %v1277_v51 = vmul.f32 %v1267_v6, %v3915_v39  ;;  %v4093_v4 = vpop.permute.xlu0 %1241 }
 0x15c   :  { %v1301_v47 = vmul.f32 %v1291_v25, %v3923_v55  ;;  %v1343_v56 = vrot.slane %v1252_v62, %v3323_v34  ;;  %v1085_v54 = vmul.f32 %v1081_v44, %v3880_v22  ;;  %v1328_v50 = vmul.f32 %v1315_v26, %v4001_v45  ;;  %5093 = vst [vmem:[#allocation33_spill] sm:$0xff] %v4093_v4 }
 0x15d   :  { %v1304_v20 = vadd.f32 %v1300_v0, %v1276_v17  ;;  %v1225_v13 = vadd.f32 %v1221_v37, %v1090_v24  ;;  %v1329_v11 = vmul.f32 %v1319_v48, %v4001_v45  ;;  %v1347_v1 = vrot.slane %v1253_v41, %v3323_v34  ;;  %v4080_v18 = vpop.permute.xlu1 %1102 }
 0x15e   :  { %v1305_v29 = vadd.f32 %v1301_v47, %v1277_v51  ;;  %v1107_v49 = vsel %vm1104_vm11, %v3958_v19, %v1101_v36  ;;  %5092 = vst [vmem:[#allocation28_spill] sm:$0xff] %v4080_v18  ;;  %v1061_v30 = vadd.f32 %v1057_v8, %v1033_v5  ;;  %v1356_v15 = vmul.f32 %v1343_v56, %v4074_v7 }
 0x15f   :  { %v1332_v60 = vadd.f32 %v1328_v50, %v1304_v20  ;;  %v1132_v22 = vrot.slane %v1107_v49, %v3317_v31  ;;  %v1156_v43 = vrot.slane %v1107_v49, %v3319_v32  ;;  %v1184_v24 = vrot.slane %v1107_v49, %v3321_v33 }
 0x160   :  { %v1333_v38 = vadd.f32 %v1329_v11, %v1305_v29  ;;  %v1108_v37 = vsel %vm1104_vm11, %v1101_v36, %v4080_v18  ;;  %v1212_v44 = vrot.slane %v1107_v49, %v3323_v34  ;;  %v1357_v27 = vmul.f32 %v1347_v1, %v4074_v7 }
 0x161   :  { %v1139_v62 = vmul.f32 %v1132_v22, %v3802_v3  ;;  %v1163_v19 = vmul.f32 %v1156_v43, %v5089_v53  ;;  %v1116_v41 = vsel %vm3966_vm9, %v1108_v37, 0.0  ;;  %v1360_v6 = vadd.f32 %v1356_v15, %v1332_v60  ;;  %v1240_v48 = vpop.permute.xlu1 %1239 }
 0x162   :  { %v1191_v25 = vmul.f32 %v1184_v24, %v3865_v46  ;;  %v1136_v26 = vrot.slane %v1116_v41, %v3317_v31  ;;  %v1160_v5 = vrot.slane %v1116_v41, %v3319_v32  ;;  %v1188_v17 = vrot.slane %v1116_v41, %v3321_v33 }
 0x163   :  { %v1167_v36 = vadd.f32 %v1163_v19, %v1139_v62  ;;  %v1216_v0 = vrot.slane %v1116_v41, %v3323_v34  ;;  %v1089_v8 = vadd.f32 %v1085_v54, %v1061_v30  ;;  %v1246_v47 = vsel %vm4973_vm7, %v1238_v61, %v1240_v48 }
 0x164   :  { %v1140_v51 = vmul.f32 %v1136_v26, %v3802_v3  ;;  %v1247_v56 = vsel %vm4973_vm7, %v1240_v48, %v4093_v4  ;;  %v1361_v50 = vadd.f32 %v1357_v27, %v1333_v38  ;;  %v1219_v11 = vmul.f32 %v1212_v44, %v3989_v16  ;;  %vm5104_vm7 = vmand %vm3278_vm0, %vm3284_vm1 }
 0x165   :  { %v1195_v20 = vadd.f32 %v1191_v25, %v1167_v36  ;;  %v1164_v29 = vmul.f32 %v1160_v5, %v5089_v53  ;;  %v1192_v1 = vmul.f32 %v1188_v17, %v3865_v46  ;;  %v1220_v49 = vmul.f32 %v1216_v0, %v3989_v16  ;;  %v1370_v37 = vpop.permute.xlu1 %1369 }
 0x166   :  { %v1254_v54 = vsel %vm3487_vm12, %v1246_v47, 0.0  ;;  %v1255_v3 = vsel %vm4970_vm6, %v1247_v56, 0.0  ;;  %v1364_v22 = vadd.f32 %v1360_v6, %v1225_v13  ;;  %v1365_v62 = vadd.f32 %v1361_v50, %v1226_v35  ;;  %vm5099_vm6 = vmand %vm3291_vm3, %vm3297_vm4 }
 0x167   :  { %v1168_v61 = vadd.f32 %v1164_v29, %v1140_v51  ;;  %v1271_v30 = vrot.slane %v1254_v54, %v3317_v31  ;;  %v1275_v60 = vrot.slane %v1255_v3, %v3317_v31  ;;  %v1295_v53 = vrot.slane %v1254_v54, %v3319_v32 }
 0x168   :  { %v1299_v46 = vrot.slane %v1255_v3, %v3319_v32  ;;  %v1323_v16 = vrot.slane %v1254_v54, %v3321_v33  ;;  %v1327_v43 = vrot.slane %v1255_v3, %v3321_v33  ;;  %v1223_v19 = vadd.f32 %v1219_v11, %v1195_v20 }
 0x169   :  { %v1196_v38 = vadd.f32 %v1192_v1, %v1168_v61  ;;  %v1278_v15 = vmul.f32 %v1271_v30, %v3915_v39  ;;  %v1279_v24 = vmul.f32 %v1275_v60, %v3915_v39  ;;  %v1302_v44 = vmul.f32 %v1295_v53, %v3923_v55 }
 0x16a   :  { %v1303_v13 = vmul.f32 %v1299_v46, %v3923_v55  ;;  %v1351_v41 = vrot.slane %v1254_v54, %v3323_v34  ;;  %v1330_v27 = vmul.f32 %v1323_v16, %v4001_v45  ;;  %v1331_v6 = vmul.f32 %v1327_v43, %v4001_v45 }
 0x16b   :  { %v1355_v25 = vrot.slane %v1255_v3, %v3323_v34  ;;  %v1224_v26 = vadd.f32 %v1220_v49, %v1196_v38  ;;  %v1306_v48 = vadd.f32 %v1302_v44, %v1278_v15  ;;  %v4134_v5 = vadd.f32 %v1370_v37, %v1364_v22 }
 0x16c   :  { %v1307_v36 = vadd.f32 %v1303_v13, %v1279_v24  ;;  %v4136_v39 = vadd.f32 %v1370_v37, %v1365_v62  ;;  %v1092_v35 = vadd.f32 %v4040_v57, %v4022_v52  ;;  %v1093_v55 = vadd.f32 %v1089_v8, %v4035_v2 }
 0x16d   :  { %v1358_v17 = vmul.f32 %v1351_v41, %v4074_v7  ;;  %v1359_v0 = vmul.f32 %v1355_v25, %v4074_v7  ;;  %v1334_v51 = vadd.f32 %v1330_v27, %v1306_v48  ;;  %vm4969_vm2 = vcmask 1043456  }
 0x16e   :  { %v1335_v45 = vadd.f32 %v1331_v6, %v1307_v36  ;;  %v1227_v47 = vadd.f32 %v1223_v19, %v1092_v35  ;;  %v1228_v56 = vadd.f32 %v1224_v26, %v1093_v55  ;;  %v1387_v11 = vmul.f32 %v4134_v5, %v4134_v5 }
 0x16f   :  { %v1362_v50 = vadd.f32 %v1358_v17, %v1334_v51  ;;  %v1388_v29 = vmul.f32 %v4136_v39, %v4136_v39  ;;  %v1377_v2 = vsel %vm4969_vm2, %v4134_v5, 0.0  ;;  %v1378_v7 = vsel %vm4969_vm2, %v4136_v39, 0.0 }
 0x170   :  { %v1363_v20 = vadd.f32 %v1359_v0, %v1335_v45  ;;  %v1391_v49 = vsel %vm4969_vm2, %v1387_v11, 0.0  ;;  %v1379_v3 = vadd.f32 %v1378_v7, %v1377_v2  ;;  %v2996_v62 = vmov 36  }
 0x171   :  { %v1366_v52 = vadd.f32 %v1362_v50, %v1227_v47  ;;  %v1392_v54 = vsel %vm4969_vm2, %v1388_v29, 0.0  ;;  %v2997_v19 = vmov 38   ;;  %v2998_v44 = vmov 37  }
 0x172   :  { %v1367_v57 = vadd.f32 %v1363_v20, %v1228_v56  ;;  %v1393_v53 = vadd.f32 %v1392_v54, %v1391_v49  ;;  %v2999_v13 = vmov 41   ;;  %v3000_v41 = vmov 39  }
 0x173   :  { %v4151_v8 = vadd.f32 %v1370_v37, %v1366_v52  ;;  %v3001_v27 = vmov 44   ;;  %v3002_v6 = vmov 40   ;;  %v3003_v25 = vmov 48  }
 0x174   :  { %v4153_v1 = vadd.f32 %v1370_v37, %v1367_v57  ;;  %v4167_v37 = vld [vmem:[#allocation5] sm:$0xf]  ;;  %v3004_v26 = vmov 42   ;;  %v3005_v48 = vmov 50   ;;  %v3006_v36 = vmov 43  }
 0x175   :  { %v1380_v61 = vsel %vm4969_vm2, %v4151_v8, 0.0  ;;  %v1389_v30 = vmul.f32 %v4151_v8, %v4151_v8  ;;  %v3007_v35 = vmov 51   ;;  %v3008_v55 = vmov 45  }
 0x176   :  { %v1390_v60 = vmul.f32 %v4153_v1, %v4153_v1  ;;  %v1381_v22 = vadd.f32 %v1380_v61, %v1379_v3  ;;  %v1382_v46 = vsel %vm4969_vm2, %v4153_v1, 0.0  ;;  %v3009_v17 = vmov 57  }
 0x177   :  { %v1394_v16 = vsel %vm4969_vm2, %v1389_v30, 0.0  ;;  %v3010_v0 = vmov 46   ;;  %v3011_v51 = vmov 58   ;;  %v3012_v45 = vmov 49  }
 0x178   :  { %v1383_v43 = vadd.f32 %v1382_v46, %v1381_v22  ;;  %v1395_v38 = vadd.f32 %v1394_v16, %v1393_v53  ;;  %v1396_v15 = vsel %vm4969_vm2, %v1390_v60, 0.0  ;;  %v3013_v47 = vmov 59  }
 0x179   :  { %v3014_v56 = vmov 47   ;;  %v3015_v50 = vmov 52   ;;  %v3016_v20 = vmov 53   ;;  %v3017_v11 = vmov 54  }
 0x17a   :  { %1384 = vadd.xlane.f32.xlu0 %v1383_v43  ;;  %v1397_v24 = vadd.f32 %v1396_v15, %v1395_v38  ;;  %v3018_v29 = vmov 56   ;;  %v3019_v52 = vmov 55   ;;  %v3020_v57 = vmov 60  }
 0x17b   :  { %v3021_v2 = vmov 61   ;;  %vm5097_vm2 = vcmask 138240  }
 0x17c   :  { %1398 = vadd.xlane.f32.xlu1 %v1397_v24 }
 0x18d   :  { %1422 = vperm.xlu1 %2823, %v4167_v37  }
 0x190   :  { %1410 = vperm.xlu0 %2822, %v4167_v37  }
 0x191   :  { %2824 = vset.pattern.permute.xlu1 %v2996_v62 }
 0x192   :  { %1458 = vperm.xlu1 %2824, %v4167_v37  }
 0x194   :  { %2826 = vset.pattern.permute.xlu0 %v2997_v19 }
 0x195   :  { %1510 = vperm.xlu0 %2826, %v4167_v37  }
 0x196   :  { %2825 = vset.pattern.permute.xlu1 %v2998_v44 }
 0x197   :  { %1482 = vperm.xlu1 %2825, %v4167_v37  }
 0x199   :  { %2829 = vset.pattern.permute.xlu0 %v2999_v13 }
 0x19a   :  { %1610 = vperm.xlu0 %2829, %v4167_v37  }
 0x19b   :  { %2827 = vset.pattern.permute.xlu1 %v3000_v41 }
 0x19c   :  { %1538 = vperm.xlu1 %2827, %v4167_v37  }
 0x19e   :  { %2832 = vset.pattern.permute.xlu0 %v3001_v27 }
 0x19f   :  { %1718 = vperm.xlu0 %2832, %v4167_v37  }
 0x1a0   :  { %2828 = vset.pattern.permute.xlu1 %v3002_v6 }
 0x1a1   :  { %1586 = vperm.xlu1 %2828, %v4167_v37  }
 0x1a3   :  { %2835 = vset.pattern.permute.xlu0 %v3003_v25 }
 0x1a4   :  { %1850 = vperm.xlu0 %2835, %v4167_v37  }
 0x1a5   :  { %2830 = vset.pattern.permute.xlu1 %v3004_v26 }
 0x1a6   :  { %1638 = vperm.xlu1 %2830, %v4167_v37  }
 0x1a8   :  { %2838 = vset.pattern.permute.xlu0 %v3005_v48 }
 0x1a9   :  { %1902 = vperm.xlu0 %2838, %v4167_v37  }
 0x1aa   :  { %2831 = vset.pattern.permute.xlu1 %v3006_v36 }
 0x1ab   :  { %1666 = vperm.xlu1 %2831, %v4167_v37  }
 0x1ad   :  { %2841 = vset.pattern.permute.xlu0 %v3007_v35 }
 0x1ae   :  { %1930 = vperm.xlu0 %2841, %v4167_v37  }
 0x1af   :  { %2833 = vset.pattern.permute.xlu1 %v3008_v55 }
 0x1b0   :  { %1742 = vperm.xlu1 %2833, %v4167_v37  }
 0x1b2   :  { %2844 = vset.pattern.permute.xlu0 %v3009_v17 }
 0x1b3   :  { %2118 = vperm.xlu0 %2844, %v4167_v37  }
 0x1b4   :  { %2834 = vset.pattern.permute.xlu1 %v3010_v0 }
 0x1b5   :  { %1770 = vperm.xlu1 %2834, %v4167_v37  }
 0x1b7   :  { %2846 = vset.pattern.permute.xlu0 %v3011_v51 }
 0x1b8   :  { %2146 = vperm.xlu0 %2846, %v4167_v37  }
 0x1b9   :  { %2836 = vset.pattern.permute.xlu1 %v3012_v45 }
 0x1ba   :  { %1874 = vperm.xlu1 %2836, %v4167_v37  }
 0x1bc   :  { %2849 = vset.pattern.permute.xlu0 %v3013_v47 }
 0x1be   :  { %2837 = vset.pattern.permute.xlu1 %v3014_v56 }
 0x1bf   :  { %1798 = vperm.xlu1 %2837, %v4167_v37  }
 0x1c3   :  { %2839 = vset.pattern.permute.xlu1 %v3015_v50 }
 0x1c4   :  { %1962 = vperm.xlu1 %2839, %v4167_v37  }
 0x1c8   :  { %2840 = vset.pattern.permute.xlu1 %v3016_v20 }
 0x1c9   :  { %1986 = vperm.xlu1 %2840, %v4167_v37  }
 0x1cd   :  { %2842 = vset.pattern.permute.xlu1 %v3017_v11  ;;  %v3022_v11 = vmov 65  }
 0x1ce   :  { %2014 = vperm.xlu1 %2842, %v4167_v37  }
 0x1d2   :  { %2843 = vset.pattern.permute.xlu1 %v3018_v29 }
 0x1d3   :  { %2094 = vperm.xlu1 %2843, %v4167_v37  }
 0x1d7   :  { %2845 = vset.pattern.permute.xlu1 %v3019_v52 }
 0x1d8   :  { %2042 = vperm.xlu1 %2845, %v4167_v37  }
 0x1dc   :  { %2847 = vset.pattern.permute.xlu1 %v3020_v57 }
 0x1dd   :  { %2226 = vperm.xlu1 %2847, %v4167_v37  }
 0x1e1   :  { %2848 = vset.pattern.permute.xlu1 %v3021_v2 }
 0x207   :  { %v1385_v7 = vpop.xlane.xlu0 %1384 }
 0x208   :  { %v1386_v49 = vmul.f32 0.001953125, %v1385_v7 }
 0x209   :  { %v1399_v54 = vpop.xlane.xlu1 %1398 }
 0x20a   :  { %v1400_v3 = vmul.f32 0.001953125, %v1399_v54  ;;  %v1401_v61 = vmul.f32 %v1386_v49, %v1386_v49  ;;  %v1405_v43 = vsub.f32 %v4134_v5, %v1386_v49  ;;  %v1406_v38 = vsub.f32 %v4136_v39, %v1386_v49 }
 0x20b   :  { %v1408_v15 = vsub.f32 %v4153_v1, %v1386_v49  ;;  %v1407_v13 = vsub.f32 %v4151_v8, %v1386_v49 }
 0x20c   :  { %v1402_v30 = vsub.f32 %v1400_v3, %v1401_v61 }
 0x20d   :  { %v1423_v60 = vpop.permute.xlu1 %1422 }
 0x20e   :  { %v1403_v22 = vadd.f32 1e-05, %v1402_v30  ;;  %v3023_v30 = vmov 63  }
 0x20f   :  { %v1411_v46 = vpop.permute.xlu0 %1410 }
 0x210   :  { %2866 = vrsqrt.f32 %v1403_v22  ;;  %v1413_v24 = vmul.f32 %v1411_v46, %v1405_v43  ;;  %v1414_v62 = vmul.f32 %v1411_v46, %v1406_v38  ;;  %v1416_v19 = vmul.f32 %v1411_v46, %v1408_v15 }
 0x211   :  { %v4195_v53 = vpop.permute.xlu1 %1458  ;;  %v1415_v26 = vmul.f32 %v1411_v46, %v1407_v13 }
 0x216   :  { %v4197_v16 = vpop.permute.xlu1 %1482 }
 0x21a   :  { %v2867_v44 = vpop.eup %2866 }
 0x21b   :  { %v1417_v41 = vmul.f32 %v2867_v44, %v1413_v24  ;;  %v1418_v27 = vmul.f32 %v2867_v44, %v1414_v62  ;;  %v1420_v6 = vmul.f32 %v2867_v44, %v1416_v19  ;;  %v4203_v25 = vpop.permute.xlu1 %1538  ;;  %v1419_v35 = vmul.f32 %v2867_v44, %v1415_v26 }
 0x21d   :  { %v1425_v48 = vadd.f32 %v1423_v60, %v1417_v41  ;;  %v1426_v36 = vadd.f32 %v1423_v60, %v1418_v27  ;;  %v1428_v5 = vadd.f32 %v1423_v60, %v1420_v6  ;;  %v1427_v8 = vadd.f32 %v1423_v60, %v1419_v35 }
 0x21f   :  { %v4205_v55 = vmax.f32 %v1425_v48, 0.0  ;;  %v4207_v39 = vmax.f32 %v1426_v36, 0.0  ;;  %v4215_v17 = vmax.f32 %v1428_v5, 0.0  ;;  %v4223_v51 = vmax.f32 %v1427_v8, 0.0 }
 0x220   :  { %v4209_v1 = vpop.permute.xlu1 %1586 }
 0x221   :  { %1567 = vrot.lane.b32.xlu0 %v4207_v39, %s2953_s1  ;;  %1437 = vrot.lane.b32.xlu1 %v4205_v55, %s2949_s4  ;;  %v1968_v52 = vrot.slane %v4205_v55, %v3317_v31  ;;  %v1972_v57 = vrot.slane %v4207_v39, %v3317_v31  ;;  %v1976_v2 = vrot.slane %v4223_v51, %v3317_v31 }
 0x222   :  { %v1980_v7 = vrot.slane %v4215_v17, %v3317_v31  ;;  %v1992_v49 = vrot.slane %v4205_v55, %v3319_v32  ;;  %v1996_v54 = vrot.slane %v4207_v39, %v3319_v32  ;;  %v2000_v3 = vrot.slane %v4223_v51, %v3319_v32 }
 0x223   :  { %v2004_v61 = vrot.slane %v4215_v17, %v3319_v32  ;;  %v2020_v6 = vrot.slane %v4205_v55, %v3321_v33  ;;  %v2024_v26 = vrot.slane %v4207_v39, %v3321_v33  ;;  %v2028_v48 = vrot.slane %v4223_v51, %v3321_v33 }
 0x224   :  { %v2032_v36 = vrot.slane %v4215_v17, %v3321_v33 }
 0x225   :  { %1571 = vrot.lane.b32.xlu0 %v4215_v17, %s2953_s1  ;;  %1439 = vrot.lane.b32.xlu1 %v4207_v39, %s2949_s4  ;;  %v4221_v0 = vpop.permute.xlu1 %1638 }
 0x229   :  { %1697 = vrot.lane.b32.xlu0 %v4205_v55, %s2957_s5  ;;  %1441 = vrot.lane.b32.xlu1 %v4223_v51, %s2949_s4 }
 0x22a   :  { %v4229_v45 = vpop.permute.xlu1 %1666 }
 0x22d   :  { %1701 = vrot.lane.b32.xlu0 %v4223_v51, %s2957_s5  ;;  %1443 = vrot.lane.b32.xlu1 %v4215_v17, %s2949_s4 }
 0x22f   :  { %v4235_v47 = vpop.permute.xlu1 %1742 }
 0x231   :  { %1829 = vrot.lane.b32.xlu0 %v4205_v55, %s2962_s6  ;;  %1565 = vrot.lane.b32.xlu1 %v4205_v55, %s2953_s1 }
 0x234   :  { %v4241_v56 = vpop.permute.xlu1 %1770 }
 0x235   :  { %1835 = vrot.lane.b32.xlu0 %v4215_v17, %s2962_s6  ;;  %1569 = vrot.lane.b32.xlu1 %v4223_v51, %s2953_s1 }
 0x239   :  { %2075 = vrot.lane.b32.xlu0 %v4207_v39, %s2969_s7  ;;  %1699 = vrot.lane.b32.xlu1 %v4207_v39, %s2957_s5  ;;  %v4251_v50 = vpop.permute.xlu1 %1874 }
 0x23d   :  { %2174 = vperm.xlu0 %2849, %v4167_v37   ;;  %1703 = vrot.lane.b32.xlu1 %v4215_v17, %s2957_s5 }
 0x23e   :  { %v4256_v20 = vpop.permute.xlu1 %1798 }
 0x241   :  { %2852 = vset.pattern.permute.xlu0 %v3022_v11  ;;  %1831 = vrot.lane.b32.xlu1 %v4207_v39, %s2962_s6 }
 0x242   :  { %2382 = vperm.xlu0 %2852, %v4167_v37  }
 0x243   :  { %v1963_v29 = vpop.permute.xlu1 %1962 }
 0x244   :  { %v1981_v60 = vmul.f32 %v1968_v52, %v1963_v29  ;;  %v1982_v22 = vmul.f32 %v1972_v57, %v1963_v29  ;;  %v1983_v46 = vmul.f32 %v1976_v2, %v1963_v29  ;;  %v1984_v43 = vmul.f32 %v1980_v7, %v1963_v29 }
 0x245   :  { %1833 = vrot.lane.b32.xlu1 %v4223_v51, %s2962_s6  ;;  %v3024_v52 = vmov 69   ;;  %v3025_v57 = vmov 62  }
 0x246   :  { %2207 = vrot.lane.b32.xlu0 %v4207_v39, %s2977_s8 }
 0x247   :  { %2853 = vset.pattern.permute.xlu0 %v3023_v30  ;;  %v2048_v30 = vrot.slane %v4205_v55, %v3323_v34 }
 0x248   :  { %v1987_v38 = vpop.permute.xlu1 %1986 }
 0x249   :  { %v2005_v15 = vmul.f32 %v1992_v49, %v1987_v38  ;;  %v2006_v24 = vmul.f32 %v1996_v54, %v1987_v38  ;;  %v2007_v62 = vmul.f32 %v2000_v3, %v1987_v38  ;;  %v2008_v19 = vmul.f32 %v2004_v61, %v1987_v38  ;;  %2250 = vperm.xlu1 %2848, %v4167_v37  }
 0x24a   :  { %2306 = vperm.xlu0 %2853, %v4167_v37   ;;  %v3026_v61 = vmov 67  }
 0x24b   :  { %v2009_v44 = vadd.f32 %v2005_v15, %v1981_v60  ;;  %v2010_v13 = vadd.f32 %v2006_v24, %v1982_v22  ;;  %v2011_v41 = vadd.f32 %v2007_v62, %v1983_v46  ;;  %v2012_v27 = vadd.f32 %v2008_v19, %v1984_v43 }
 0x24c   :  { %v2052_v60 = vrot.slane %v4207_v39, %v3323_v34  ;;  %v2056_v22 = vrot.slane %v4223_v51, %v3323_v34  ;;  %v2060_v46 = vrot.slane %v4215_v17, %v3323_v34  ;;  %v3027_v19 = vmov 64  }
 0x24d   :  { %v2015_v35 = vpop.permute.xlu1 %2014  ;;  %2073 = vrot.lane.b32.xlu1 %v4205_v55, %s2969_s7 }
 0x24e   :  { %v2033_v5 = vmul.f32 %v2020_v6, %v2015_v35  ;;  %v2034_v8 = vmul.f32 %v2024_v26, %v2015_v35  ;;  %v2035_v11 = vmul.f32 %v2028_v48, %v2015_v35  ;;  %v2036_v29 = vmul.f32 %v2032_v36, %v2015_v35  ;;  %2856 = vset.pattern.permute.xlu0 %v3024_v52  ;;  %v4329_v26 = vpop.permute.xlu0 %1510 }
 0x24f   :  { %2514 = vperm.xlu0 %2856, %v4167_v37   ;;  %2850 = vset.pattern.permute.xlu1 %v3025_v57  ;;  %v3028_v6 = vmov 66   ;;  %v3029_v36 = vmov 68  }
 0x250   :  { %v2037_v2 = vadd.f32 %v2033_v5, %v2009_v44  ;;  %v2038_v7 = vadd.f32 %v2034_v8, %v2010_v13  ;;  %v2039_v49 = vadd.f32 %v2035_v11, %v2011_v41  ;;  %v2040_v54 = vadd.f32 %v2036_v29, %v2012_v27 }
 0x251   :  { %2077 = vrot.lane.b32.xlu1 %v4223_v51, %s2969_s7  ;;  %v3030_v5 = vmov 70  }
 0x252   :  { %v4296_v3 = vpop.permute.xlu1 %2094  ;;  %v4333_v48 = vpop.permute.xlu0 %1610 }
 0x253   :  { %2341 = vrot.lane.b32.xlu0 %v4223_v51, %s2981_s9 }
 0x254   :  { %2857 = vset.pattern.permute.xlu0 %v3026_v61 }
 0x255   :  { %2278 = vperm.xlu1 %2850, %v4167_v37  }
 0x256   :  { %v4337_v35 = vpop.permute.xlu0 %1718 }
 0x257   :  { %v2043_v43 = vpop.permute.xlu1 %2042  ;;  %2438 = vperm.xlu0 %2857, %v4167_v37  }
 0x258   :  { %v2061_v38 = vmul.f32 %v2048_v30, %v2043_v43  ;;  %v2062_v15 = vmul.f32 %v2052_v60, %v2043_v43  ;;  %v2063_v24 = vmul.f32 %v2056_v22, %v2043_v43  ;;  %v2064_v62 = vmul.f32 %v2060_v46, %v2043_v43 }
 0x259   :  { %2851 = vset.pattern.permute.xlu1 %v3027_v19 }
 0x25a   :  { %v4310_v44 = vadd.f32 %v2061_v38, %v2037_v2  ;;  %v4312_v13 = vadd.f32 %v2062_v15, %v2038_v7  ;;  %v4314_v41 = vadd.f32 %v2063_v24, %v2039_v49  ;;  %v4316_v27 = vadd.f32 %v2064_v62, %v2040_v54  ;;  %2358 = vperm.xlu1 %2851, %v4167_v37   ;;  %v4341_v8 = vpop.permute.xlu0 %1850 }
 0x25b   :  { %2471 = vrot.lane.b32.xlu0 %v4207_v39, %s2984_s10  ;;  %v3032_v2 = vmov 75  }
 0x25e   :  { %2079 = vrot.lane.b32.xlu1 %v4215_v17, %s2969_s7  ;;  %v4347_v11 = vpop.permute.xlu0 %1902 }
 0x25f   :  { %2343 = vrot.lane.b32.xlu0 %v4215_v17, %s2981_s9  ;;  %2854 = vset.pattern.permute.xlu1 %v3028_v6 }
 0x262   :  { %2205 = vrot.lane.b32.xlu1 %v4205_v55, %s2977_s8  ;;  %v4350_v29 = vpop.permute.xlu0 %1930 }
 0x263   :  { %2475 = vrot.lane.b32.xlu0 %v4215_v17, %s2984_s10 }
 0x266   :  { %2209 = vrot.lane.b32.xlu1 %v4223_v51, %s2977_s8  ;;  %v4356_v52 = vpop.permute.xlu0 %2118 }
 0x26a   :  { %2410 = vperm.xlu1 %2854, %v4167_v37   ;;  %v4361_v57 = vpop.permute.xlu0 %2146 }
 0x26b   :  { %5095 = vst [vmem:[#allocation24_spill] sm:$0xff] %v4361_v57 }
 0x26e   :  { %2855 = vset.pattern.permute.xlu1 %v3029_v36 }
 0x26f   :  { %2490 = vperm.xlu1 %2855, %v4167_v37  }
 0x273   :  { %2211 = vrot.lane.b32.xlu1 %v4215_v17, %s2977_s8  ;;  %v3031_v17 = vmov 71  }
 0x274   :  { %2858 = vset.pattern.permute.xlu1 %v3030_v5 }
 0x277   :  { %2339 = vrot.lane.b32.xlu1 %v4207_v39, %s2981_s9  ;;  %v4359_v39 = vpop.permute.xlu1 %2226 }
 0x278   :  { %5094 = vst [vmem:[#allocation18_spill] sm:$0xff] %v4359_v39 }
 0x27b   :  { %2337 = vrot.lane.b32.xlu1 %v4205_v55, %s2981_s9 }
 0x27f   :  { %2542 = vperm.xlu1 %2858, %v4167_v37  }
 0x283   :  { %2469 = vrot.lane.b32.xlu1 %v4205_v55, %s2984_s10  ;;  %v5096_v55 = vld [vmem:[#allocation15_spill] sm:$0xff] }
 0x284   :  { %2859 = vset.pattern.permute.xlu1 %v3031_v17 }
 0x287   :  { %2473 = vrot.lane.b32.xlu1 %v4223_v51, %s2984_s10 }
 0x28b   :  { %2570 = vperm.xlu1 %2859, %v4167_v37  }
 0x28f   :  { %2860 = vset.pattern.permute.xlu1 %v3032_v2 }
 0x290   :  { %2602 = vperm.xlu1 %2860, %v4167_v37  }
 0x293   :  { %v1438_v7 = vpop.permute.xlu1 %1437  ;;  %v4364_v49 = vpop.permute.xlu0 %1567 }
 0x294   :  { %v1445_v54 = vsel %vm5097_vm2, %v5096_v55, %v1438_v7 }
 0x295   :  { %v1453_v51 = vsel %vm5099_vm6, %v1445_v54, 0.0  ;;  %vm5100_vm6 = vmmov %vm5097_vm2 }
 0x296   :  { %v1464_v30 = vrot.slane %v1453_v51, %v3317_v31  ;;  %v1488_v60 = vrot.slane %v1453_v51, %v3319_v32  ;;  %v1516_v22 = vrot.slane %v1453_v51, %v3321_v33  ;;  %v1544_v15 = vrot.slane %v1453_v51, %v3323_v34 }
 0x297   :  { %v1440_v46 = vpop.permute.xlu1 %1439  ;;  %v4376_v37 = vpop.permute.xlu0 %1571 }
 0x298   :  { %v1477_v43 = vmul.f32 %v1464_v30, %v4195_v53  ;;  %v1501_v38 = vmul.f32 %v1488_v60, %v4197_v16  ;;  %v1446_v24 = vsel %vm5097_vm2, %v1438_v7, %v1440_v46  ;;  %v1529_v19 = vmul.f32 %v1516_v22, %v4329_v26  ;;  %v5101_v60 = vld [vmem:[#allocation17_spill] sm:$0xff] }
 0x299   :  { %v1454_v6 = vsel %vm3303_vm5, %v1446_v24, 0.0  ;;  %v1557_v7 = vmul.f32 %v1544_v15, %v4203_v25  ;;  %vm5102_vm2 = vcmask 121856  }
 0x29a   :  { %v1505_v62 = vadd.f32 %v1501_v38, %v1477_v43  ;;  %v1468_v36 = vrot.slane %v1454_v6, %v3317_v31  ;;  %v1492_v5 = vrot.slane %v1454_v6, %v3319_v32  ;;  %v1520_v17 = vrot.slane %v1454_v6, %v3321_v33 }
 0x29b   :  { %v1548_v2 = vrot.slane %v1454_v6, %v3323_v34  ;;  %v1442_v55 = vpop.permute.xlu1 %1441  ;;  %v4389_v54 = vpop.permute.xlu0 %1697 }
 0x29c   :  { %v1533_v51 = vadd.f32 %v1529_v19, %v1505_v62  ;;  %v1447_v30 = vsel %vm5100_vm6, %v1440_v46, %v1442_v55  ;;  %v1705_v22 = vsel %vm5102_vm2, %v5101_v60, %v4389_v54  ;;  %v1478_v43 = vmul.f32 %v1468_v36, %v4195_v53  ;;  %vm5105_vm6 = vmand %vm3291_vm3, %vm3468_vm10 }
 0x29d   :  { %v1502_v38 = vmul.f32 %v1492_v5, %v4197_v16  ;;  %v1530_v24 = vmul.f32 %v1520_v17, %v4329_v26  ;;  %v1558_v6 = vmul.f32 %v1548_v2, %v4203_v25  ;;  %v1455_v46 = vsel %vm5104_vm7, %v1447_v30, 0.0 }
 0x29e   :  { %v4399_v28 = vadd.f32 %v1557_v7, %v1533_v51  ;;  %v1713_v15 = vsel %vm5105_vm6, %v1705_v22, 0.0  ;;  %v1472_v19 = vrot.slane %v1455_v46, %v3317_v31  ;;  %v1496_v36 = vrot.slane %v1455_v46, %v3319_v32 }
 0x29f   :  { %v1506_v62 = vadd.f32 %v1502_v38, %v1478_v43  ;;  %v1524_v5 = vrot.slane %v1455_v46, %v3321_v33  ;;  %v1444_v17 = vpop.permute.xlu1 %1443  ;;  %v1552_v2 = vrot.slane %v1455_v46, %v3323_v34  ;;  %v1724_v51 = vrot.slane %v1713_v15, %v3317_v31 }
 0x2a0   :  { %v1748_v7 = vrot.slane %v1713_v15, %v3319_v32  ;;  %v1776_v30 = vrot.slane %v1713_v15, %v3321_v33  ;;  %v1479_v9 = vmul.f32 %v1472_v19, %v4195_v53  ;;  %v1503_v22 = vmul.f32 %v1496_v36, %v4197_v16 }
 0x2a1   :  { %v1534_v60 = vadd.f32 %v1530_v24, %v1506_v62  ;;  %v1531_v43 = vmul.f32 %v1524_v5, %v4329_v26  ;;  %v1559_v38 = vmul.f32 %v1552_v2, %v4203_v25  ;;  %v1737_v4 = vmul.f32 %v1724_v51, %v4337_v35  ;;  %v4430_v62 = vpop.permute.xlu0 %1701  ;;  %v5107_v2 = vld [vmem:[#allocation16_spill] sm:$0xff] }
 0x2a2   :  { %v1761_v42 = vmul.f32 %v1748_v7, %v4235_v47  ;;  %v1789_v46 = vmul.f32 %v1776_v30, %v4241_v56  ;;  %v1507_v63 = vadd.f32 %v1503_v22, %v1479_v9  ;;  %v1804_v57 = vrot.slane %v1713_v15, %v3323_v34 }
 0x2a3   :  { %v4426_v18 = vadd.f32 %v1558_v6, %v1534_v60  ;;  %vm5106_vm7 = vcmask 138240   ;;  %v1566_v19 = vpop.permute.xlu1 %1565  ;;  %vm5108_vm2 = vcmask 130048  }
 0x2a4   :  { %v1448_v24 = vsel %vm5106_vm7, %v1442_v55, %v1444_v17  ;;  %v1765_v36 = vadd.f32 %v1761_v42, %v1737_v4  ;;  %v1573_v51 = vsel %vm5108_vm2, %v5107_v2, %v1566_v19  ;;  %vm5109_vm6 = vmmov %vm5108_vm2  ;;  %v1535_v6 = vadd.f32 %v1531_v43, %v1507_v63 }
 0x2a5   :  { %v1456_v5 = vsel %vm3336_vm8, %v1448_v24, 0.0  ;;  %v1574_v7 = vsel %vm5109_vm6, %v1566_v19, %v4364_v49  ;;  %v1817_v9 = vmul.f32 %v1804_v57, %v4256_v20  ;;  %v1581_v4 = vsel %vm3291_vm3, %v1573_v51, 0.0  ;;  %vm5112_vm7 = vmmov %vm5108_vm2 }
 0x2a6   :  { %v1476_v15 = vrot.slane %v1456_v5, %v3317_v31  ;;  %v1500_v55 = vrot.slane %v1456_v5, %v3319_v32  ;;  %v1793_v17 = vadd.f32 %v1789_v46, %v1765_v36  ;;  %v1528_v30 = vrot.slane %v1456_v5, %v3321_v33 }
 0x2a7   :  { %v1556_v42 = vrot.slane %v1456_v5, %v3323_v34  ;;  %v4445_v60 = vadd.f32 %v1559_v38, %v1535_v6  ;;  %v1592_v57 = vrot.slane %v1581_v4, %v3317_v31  ;;  %v1570_v43 = vpop.permute.xlu1 %1569  ;;  %v1596_v36 = vrot.slane %v1574_v7, %v3317_v31 }
 0x2a8   :  { %v1480_v22 = vmul.f32 %v1476_v15, %v4195_v53  ;;  %v1504_v63 = vmul.f32 %v1500_v55, %v4197_v16  ;;  %v1821_v24 = vadd.f32 %v1817_v9, %v1793_v17  ;;  %v1532_v19 = vmul.f32 %v1528_v30, %v4329_v26  ;;  %v4456_v53 = vpop.permute.xlu0 %1829 }
 0x2a9   :  { %v1560_v46 = vmul.f32 %v1556_v42, %v4203_v25  ;;  %v1605_v61 = vmul.f32 %v1592_v57, %v4209_v1  ;;  %v1616_v38 = vrot.slane %v1581_v4, %v3319_v32  ;;  %v1620_v2 = vrot.slane %v1574_v7, %v3319_v32 }
 0x2aa   :  { %v1508_v5 = vadd.f32 %v1504_v63, %v1480_v22  ;;  %v1606_v16 = vmul.f32 %v1596_v36, %v4209_v1  ;;  %v1644_v51 = vrot.slane %v1581_v4, %v3321_v33  ;;  %v1648_v6 = vrot.slane %v1574_v7, %v3321_v33  ;;  %v5110_v63 = vld [vmem:[#allocation27_spill] sm:$0xff] }
 0x2ab   :  { %v1672_v26 = vrot.slane %v1581_v4, %v3323_v34  ;;  %v1629_v9 = vmul.f32 %v1616_v38, %v4333_v48  ;;  %v1630_v15 = vmul.f32 %v1620_v2, %v4333_v48  ;;  %v1676_v55 = vrot.slane %v1574_v7, %v3323_v34  ;;  %v1700_v17 = vpop.permute.xlu1 %1699 }
 0x2ac   :  { %v1536_v25 = vadd.f32 %v1532_v19, %v1508_v5  ;;  %v1657_v30 = vmul.f32 %v1644_v51, %v4221_v0  ;;  %v1658_v42 = vmul.f32 %v1648_v6, %v4221_v0  ;;  %vm5111_vm3 = vcmask 7168  }
 0x2ad   :  { %v1685_v22 = vmul.f32 %v1672_v26, %v4229_v45  ;;  %v1837_v57 = vsel %vm5111_vm3, %v5110_v63, %v4456_v53  ;;  %v1633_v4 = vadd.f32 %v1629_v9, %v1605_v61  ;;  %v1634_v19 = vadd.f32 %v1630_v15, %v1606_v16 }
 0x2ae   :  { %v4471_v36 = vadd.f32 %v1560_v46, %v1536_v25  ;;  %v1686_v5 = vmul.f32 %v1676_v55, %v4229_v45  ;;  %v1845_v7 = vsel %vm3297_vm4, %v1837_v57, 0.0  ;;  %v1575_v38 = vsel %vm5112_vm7, %v4364_v49, %v1570_v43  ;;  %v4495_v57 = vpop.permute.xlu0 %1835  ;;  %vm5115_vm7 = vmand %vm3278_vm0, %vm3487_vm12 }
 0x2af   :  { %v1576_v2 = vsel %vm5108_vm2, %v1570_v43, %v4376_v37  ;;  %vm5113_vm6 = vcmask 121856   ;;  %v1661_v6 = vadd.f32 %v1657_v30, %v1633_v4  ;;  %v1662_v26 = vadd.f32 %v1658_v42, %v1634_v19  ;;  %v1704_v4 = vpop.permute.xlu1 %1703 }
 0x2b0   :  { %v1706_v51 = vsel %vm5113_vm6, %v4389_v54, %v1700_v17  ;;  %v1856_v46 = vrot.slane %v1845_v7, %v3317_v31  ;;  %v1880_v61 = vrot.slane %v1845_v7, %v3319_v32  ;;  %v1908_v16 = vrot.slane %v1845_v7, %v3321_v33  ;;  %vm5114_vm3 = vmmov %vm5113_vm6 }
 0x2b1   :  { %v1936_v25 = vrot.slane %v1845_v7, %v3323_v34  ;;  %v1583_v9 = vsel %vm3278_vm0, %v1575_v38, 0.0  ;;  %v1604_v49 = vrot.slane %v1576_v2, %v3317_v31  ;;  %v1689_v15 = vadd.f32 %v1685_v22, %v1661_v6  ;;  %vm5116_vm0 = vmmov %vm5114_vm3 }
 0x2b2   :  { %v1690_v37 = vadd.f32 %v1686_v5, %v1662_v26  ;;  %v1869_v43 = vmul.f32 %v1856_v46, %v4341_v8  ;;  %v1893_v54 = vmul.f32 %v1880_v61, %v4251_v50  ;;  %v1921_v55 = vmul.f32 %v1908_v16, %v4347_v11 }
 0x2b3   :  { %v1949_v30 = vmul.f32 %v1936_v25, %v4350_v29  ;;  %v1600_v42 = vrot.slane %v1583_v9, %v3317_v31  ;;  %v1608_v63 = vmul.f32 %v1604_v49, %v4209_v1  ;;  %v1693_v19 = vadd.f32 %v1689_v15, %v4399_v28 }
 0x2b4   :  { %v4499_v22 = vadd.f32 %v1690_v37, %v4426_v18  ;;  %v1897_v5 = vadd.f32 %v1893_v54, %v1869_v43  ;;  %v1624_v7 = vrot.slane %v1583_v9, %v3319_v32  ;;  %v1628_v6 = vrot.slane %v1576_v2, %v3319_v32 }
 0x2b5   :  { %v1607_v38 = vmul.f32 %v1600_v42, %v4209_v1  ;;  %v1652_v26 = vrot.slane %v1583_v9, %v3321_v33  ;;  %v1656_v46 = vrot.slane %v1576_v2, %v3321_v33  ;;  %v1825_v61 = vadd.f32 %v1821_v24, %v1693_v19 }
 0x2b6   :  { %v1925_v16 = vadd.f32 %v1921_v55, %v1897_v5  ;;  %v1631_v25 = vmul.f32 %v1624_v7, %v4333_v48  ;;  %v1680_v28 = vrot.slane %v1583_v9, %v3323_v34  ;;  %v1632_v18 = vmul.f32 %v1628_v6, %v4333_v48  ;;  %v4523_v48 = vpop.permute.xlu0 %2075 }
 0x2b7   :  { %v1659_v49 = vmul.f32 %v1652_v26, %v4221_v0  ;;  %v1660_v15 = vmul.f32 %v1656_v46, %v4221_v0  ;;  %v1684_v1 = vrot.slane %v1576_v2, %v3323_v34  ;;  %v1707_v24 = vsel %vm5114_vm3, %v1700_v17, %v4430_v62  ;;  %v1832_v2 = vpop.permute.xlu1 %1831 }
 0x2b8   :  { %v1953_v37 = vadd.f32 %v1949_v30, %v1925_v16  ;;  %v1635_v43 = vadd.f32 %v1631_v25, %v1607_v38  ;;  %v1687_v54 = vmul.f32 %v1680_v28, %v4229_v45  ;;  %v1636_v55 = vadd.f32 %v1632_v18, %v1608_v63 }
 0x2b9   :  { %v1688_v42 = vmul.f32 %v1684_v1, %v4229_v45  ;;  %v1714_v9 = vsel %vm3511_vm13, %v1706_v51, 0.0  ;;  %v1715_v0 = vsel %vm5115_vm7, %v1707_v24, 0.0  ;;  %v1708_v24 = vsel %vm5116_vm0, %v4430_v62, %v1704_v4 }
 0x2ba   :  { %v4525_v30 = vadd.f32 %v1953_v37, %v1825_v61  ;;  %v1663_v19 = vadd.f32 %v1659_v49, %v1635_v43  ;;  %v1728_v17 = vrot.slane %v1714_v9, %v3317_v31  ;;  %v1732_v63 = vrot.slane %v1715_v0, %v3317_v31 }
 0x2bb   :  { %v1664_v45 = vadd.f32 %v1660_v15, %v1636_v55  ;;  %v1752_v5 = vrot.slane %v1714_v9, %v3319_v32  ;;  %v1756_v51 = vrot.slane %v1715_v0, %v3319_v32  ;;  %v1780_v39 = vrot.slane %v1714_v9, %v3321_v33  ;;  %v1834_v55 = vpop.permute.xlu1 %1833 }
 0x2bc   :  { %v1691_v7 = vadd.f32 %v1687_v54, %v1663_v19  ;;  %v1738_v38 = vmul.f32 %v1728_v17, %v4337_v35  ;;  %v1739_v6 = vmul.f32 %v1732_v63, %v4337_v35  ;;  %v1784_v26 = vrot.slane %v1715_v0, %v3321_v33  ;;  %v4538_v28 = vpop.permute.xlu0 %2174 }
 0x2bd   :  { %v1692_v46 = vadd.f32 %v1688_v42, %v1664_v45  ;;  %v1762_v61 = vmul.f32 %v1752_v5, %v4235_v47  ;;  %v1763_v16 = vmul.f32 %v1756_v51, %v4235_v47  ;;  %v1790_v25 = vmul.f32 %v1780_v39, %v4241_v56 }
 0x2be   :  { %v1695_v18 = vadd.f32 %v1691_v7, %v4445_v60  ;;  %v1791_v49 = vmul.f32 %v1784_v26, %v4241_v56  ;;  %v1808_v15 = vrot.slane %v1714_v9, %v3323_v34  ;;  %v1812_v1 = vrot.slane %v1715_v0, %v3323_v34 }
 0x2bf   :  { %v1696_v37 = vadd.f32 %v1692_v46, %v4471_v36  ;;  %v1766_v43 = vadd.f32 %v1762_v61, %v1738_v38  ;;  %v1767_v54 = vadd.f32 %v1763_v16, %v1739_v6  ;;  %v1716_v60 = vsel %vm3521_vm14, %v1708_v24, 0.0 }
 0x2c0   :  { %v1818_v42 = vmul.f32 %v1808_v15, %v4256_v20  ;;  %v1819_v19 = vmul.f32 %v1812_v1, %v4256_v20  ;;  %vm5117_vm2 = vcmask 7168   ;;  %v1736_v36 = vrot.slane %v1716_v60, %v3317_v31 }
 0x2c1   :  { %v1838_v9 = vsel %vm5117_vm2, %v4456_v53, %v1832_v2  ;;  %v1794_v17 = vadd.f32 %v1790_v25, %v1766_v43  ;;  %v1795_v0 = vadd.f32 %v1791_v49, %v1767_v54  ;;  %v1760_v63 = vrot.slane %v1716_v60, %v3319_v32  ;;  %vm5118_vm6 = vmmov %vm5117_vm2  ;;  %v4560_v51 = vpop.permute.xlu0 %2382 }
 0x2c2   :  { %v1788_v45 = vrot.slane %v1716_v60, %v3321_v33  ;;  %v1816_v62 = vrot.slane %v1716_v60, %v3323_v34  ;;  %v1846_v4 = vsel %vm3303_vm5, %v1838_v9, 0.0  ;;  %v1839_v5 = vsel %vm5118_vm6, %v1832_v2, %v1834_v55  ;;  %vm5119_vm3 = vmmov %vm5117_vm2 }
 0x2c3   :  { %v1822_v39 = vadd.f32 %v1818_v42, %v1794_v17  ;;  %v1823_v7 = vadd.f32 %v1819_v19, %v1795_v0  ;;  %v1740_v53 = vmul.f32 %v1736_v36, %v4337_v35  ;;  %v1764_v38 = vmul.f32 %v1760_v63, %v4235_v47 }
 0x2c4   :  { %v1792_v6 = vmul.f32 %v1788_v45, %v4241_v56  ;;  %v1820_v26 = vmul.f32 %v1816_v62, %v4256_v20  ;;  %v1860_v46 = vrot.slane %v1846_v4, %v3317_v31  ;;  %v1884_v61 = vrot.slane %v1846_v4, %v3319_v32 }
 0x2c5   :  { %v1826_v16 = vadd.f32 %v1822_v39, %v4499_v22  ;;  %v1827_v25 = vadd.f32 %v1823_v7, %v1695_v18  ;;  %v1768_v2 = vadd.f32 %v1764_v38, %v1740_v53  ;;  %v1912_v49 = vrot.slane %v1846_v4, %v3321_v33  ;;  %v4575_v20 = vpop.permute.xlu0 %2207 }
 0x2c6   :  { %v1870_v15 = vmul.f32 %v1860_v46, %v4341_v8  ;;  %v1894_v35 = vmul.f32 %v1884_v61, %v4251_v50  ;;  %v1940_v47 = vrot.slane %v1846_v4, %v3323_v34  ;;  %v1840_v56 = vsel %vm5119_vm3, %v1834_v55, %v4495_v57 }
 0x2c7   :  { %v1796_v1 = vadd.f32 %v1792_v6, %v1768_v2  ;;  %v1922_v43 = vmul.f32 %v1912_v49, %v4347_v11  ;;  %v1847_v22 = vsel %vm3284_vm1, %v1839_v5, 0.0  ;;  %v1848_v18 = vsel %vm3336_vm8, %v1840_v56, 0.0 }
 0x2c8   :  { %v1898_v54 = vadd.f32 %v1894_v35, %v1870_v15  ;;  %v1950_v24 = vmul.f32 %v1940_v47, %v4350_v29  ;;  %v1864_v42 = vrot.slane %v1847_v22, %v3317_v31  ;;  %v1868_v19 = vrot.slane %v1848_v18, %v3317_v31  ;;  %v4588_v17 = vpop.permute.xlu1 %2250 }
 0x2c9   :  { %v1824_v60 = vadd.f32 %v1820_v26, %v1796_v1  ;;  %v1888_v57 = vrot.slane %v1847_v22, %v3319_v32  ;;  %v1892_v55 = vrot.slane %v1848_v18, %v3319_v32  ;;  %v1916_v9 = vrot.slane %v1847_v22, %v3321_v33  ;;  %v4593_v62 = vpop.permute.xlu0 %2306 }
 0x2ca   :  { %v1926_v0 = vadd.f32 %v1922_v43, %v1898_v54  ;;  %v1871_v36 = vmul.f32 %v1864_v42, %v4341_v8  ;;  %v1872_v63 = vmul.f32 %v1868_v19, %v4341_v8  ;;  %v1920_v45 = vrot.slane %v1848_v18, %v3321_v33 }
 0x2cb   :  { %v1828_v4 = vadd.f32 %v1824_v60, %v1696_v37  ;;  %v1895_v5 = vmul.f32 %v1888_v57, %v4251_v50  ;;  %v1896_v39 = vmul.f32 %v1892_v55, %v4251_v50  ;;  %v1923_v7 = vmul.f32 %v1916_v9, %v4347_v11 }
 0x2cc   :  { %v1954_v53 = vadd.f32 %v1950_v24, %v1926_v0  ;;  %v1924_v38 = vmul.f32 %v1920_v45, %v4347_v11  ;;  %v1944_v6 = vrot.slane %v1847_v22, %v3323_v34  ;;  %v1948_v26 = vrot.slane %v1848_v18, %v3323_v34  ;;  %v2074_v61 = vpop.permute.xlu1 %2073 }
 0x2cd   :  { %v1899_v46 = vadd.f32 %v1895_v5, %v1871_v36  ;;  %v1900_v8 = vadd.f32 %v1896_v39, %v1872_v63  ;;  %v4603_v2 = vadd.f32 %v4310_v44, %v4525_v30  ;;  %vm5120_vm7 = vcmask 1039360  }
 0x2ce   :  { %v1958_v37 = vadd.f32 %v1954_v53, %v1826_v16  ;;  %v1951_v49 = vmul.f32 %v1944_v6, %v4350_v29  ;;  %v2081_v50 = vsel %vm5120_vm7, %v2074_v61, %v4523_v48  ;;  %v3033_v15 = vmov 76   ;;  %v4609_v56 = vpop.permute.xlu0 %2514  ;;  %vm5121_vm0 = vmmov %vm5120_vm7  ;;  %v5122_v53 = vld [vmem:[#allocation24_spill] sm:$0xff] }
 0x2cf   :  { %2861 = vset.pattern.permute.xlu0 %v3033_v15  ;;  %v1927_v11 = vadd.f32 %v1923_v7, %v1899_v46  ;;  %v1928_v35 = vadd.f32 %v1924_v38, %v1900_v8  ;;  %v1952_v47 = vmul.f32 %v1948_v26, %v4350_v29  ;;  %v3034_v1 = vmov 77   ;;  %vm5123_vm2 = vmmov %vm5121_vm0 }
 0x2d0   :  { %2862 = vset.pattern.permute.xlu1 %v3034_v1  ;;  %v2089_v30 = vsel %vm3468_vm10, %v2081_v50, 0.0  ;;  %v2078_v16 = vpop.permute.xlu1 %2077  ;;  %v2070_v22 = vadd.f32 %v4312_v13, %v1958_v37  ;;  %v5124_v37 = vld [vmem:[#allocation31_spill] sm:$0xff]  ;;  %vm5125_vm6 = vmmov %vm5121_vm0  ;;  %vm5128_vm3 = vcmask 924672   ;;  %vm5130_vm7 = vcmask 908288  }
 0x2d1   :  { %v1955_v43 = vadd.f32 %v1951_v49, %v1927_v11  ;;  %v1956_v44 = vadd.f32 %v1952_v47, %v1928_v35  ;;  %v2082_v24 = vsel %vm5121_vm0, %v4523_v48, %v2078_v16  ;;  %v2100_v29 = vrot.slane %v2089_v30, %v3317_v31  ;;  %vm5132_vm0 = vmand %vm3966_vm9, %vm3521_vm14 }
 0x2d2   :  { %v4617_v42 = vpop.permute.xlu0 %2341  ;;  %v2124_v19 = vrot.slane %v2089_v30, %v3319_v32  ;;  %v2090_v60 = vsel %vm3511_vm13, %v2082_v24, 0.0  ;;  %v2180_v6 = vrot.slane %v2089_v30, %v3323_v34 }
 0x2d3   :  { %v1959_v18 = vadd.f32 %v1955_v43, %v1827_v25  ;;  %v1960_v54 = vadd.f32 %v1956_v44, %v1828_v4  ;;  %v2104_v57 = vrot.slane %v2090_v60, %v3317_v31  ;;  %v2128_v55 = vrot.slane %v2090_v60, %v3319_v32 }
 0x2d4   :  { %v4625_v9 = vpop.permute.xlu1 %2278  ;;  %v2113_v0 = vmul.f32 %v2100_v29, %v4296_v3  ;;  %v2137_v36 = vmul.f32 %v2124_v19, %v4356_v52  ;;  %v2152_v4 = vrot.slane %v2089_v30, %v3321_v33  ;;  %v2156_v5 = vrot.slane %v2090_v60, %v3321_v33 }
 0x2d5   :  { %v4628_v13 = vadd.f32 %v4314_v41, %v1959_v18  ;;  %v4631_v48 = vadd.f32 %v4316_v27, %v1960_v54  ;;  %v2114_v63 = vmul.f32 %v2104_v57, %v4296_v3  ;;  %v2138_v45 = vmul.f32 %v2128_v55, %v4356_v52 }
 0x2d6   :  { %v4633_v25 = vpop.permute.xlu0 %2438  ;;  %v2141_v27 = vadd.f32 %v2137_v36, %v2113_v0  ;;  %v2165_v38 = vmul.f32 %v2152_v4, %v5122_v53  ;;  %v2166_v26 = vmul.f32 %v2156_v5, %v5122_v53  ;;  %v2184_v46 = vrot.slane %v2090_v60, %v3323_v34 }
 0x2d7   :  { %v2142_v7 = vadd.f32 %v2138_v45, %v2114_v63  ;;  %v2193_v18 = vmul.f32 %v2180_v6, %v4538_v28  ;;  %v5126_v63 = vld [vmem:[#allocation28_spill] sm:$0xff] }
 0x2d8   :  { %v2169_v50 = vadd.f32 %v2165_v38, %v2141_v27  ;;  %v2194_v54 = vmul.f32 %v2184_v46, %v4538_v28 }
 0x2d9   :  { %v4641_v39 = vpop.permute.xlu1 %2358  ;;  %v2170_v15 = vadd.f32 %v2166_v26, %v2142_v7 }
 0x2da   :  { %v4643_v41 = vpop.permute.xlu0 %2471  ;;  %v2197_v36 = vadd.f32 %v2193_v18, %v2169_v50 }
 0x2db   :  { %v2198_v4 = vadd.f32 %v2194_v54, %v2170_v15 }
 0x2dd   :  { %v2080_v8 = vpop.permute.xlu1 %2079 }
 0x2de   :  { %v2083_v61 = vsel %vm5123_vm2, %v2078_v16, %v2080_v8  ;;  %v2084_v49 = vsel %vm5125_vm6, %v2080_v8, %v5124_v37  ;;  %v2344_v16 = vpop.permute.xlu0 %2343  ;;  %v4685_v37 = vadd.f32 %v2198_v4, %v2070_v22  ;;  %vm5134_vm2 = vmand %vm3842_vm15, %vm3303_vm5 }
 0x2df   :  { %v2091_v11 = vsel %vm3487_vm12, %v2083_v61, 0.0  ;;  %v2092_v35 = vsel %vm3521_vm14, %v2084_v49, 0.0  ;;  %v2348_v45 = vsel %vm1104_vm11, %v2344_v16, %v5126_v63  ;;  %v4673_v38 = vsel %vm1104_vm11, %v4617_v42, %v2344_v16  ;;  %vm5136_vm5 = vmmov %vm5128_vm3 }
 0x2e0   :  { %v2108_v47 = vrot.slane %v2091_v11, %v3317_v31  ;;  %v2112_v43 = vrot.slane %v2092_v35, %v3317_v31  ;;  %v2132_v44 = vrot.slane %v2091_v11, %v3319_v32  ;;  %v2136_v30 = vrot.slane %v2092_v35, %v3319_v32  ;;  %vm5138_vm14 = vmmov %vm5128_vm3 }
 0x2e1   :  { %v2160_v24 = vrot.slane %v2091_v11, %v3321_v33  ;;  %v2164_v29 = vrot.slane %v2092_v35, %v3321_v33  ;;  %v2206_v19 = vpop.permute.xlu1 %2205  ;;  %v2188_v7 = vrot.slane %v2091_v11, %v3323_v34  ;;  %v4680_v8 = vsel %vm3966_vm9, %v2348_v45, 0.0  ;;  %vm5139_vm6 = vmand %vm3966_vm9, %vm3336_vm8 }
 0x2e2   :  { %v2115_v60 = vmul.f32 %v2108_v47, %v4296_v3  ;;  %v2116_v57 = vmul.f32 %v2112_v43, %v4296_v3  ;;  %v2139_v55 = vmul.f32 %v2132_v44, %v4356_v52  ;;  %v2140_v0 = vmul.f32 %v2136_v30, %v4356_v52  ;;  %v4689_v11 = vpop.permute.xlu0 %2475 }
 0x2e3   :  { %v2167_v3 = vmul.f32 %v2160_v24, %v5122_v53  ;;  %v2168_v26 = vmul.f32 %v2164_v29, %v5122_v53  ;;  %v2192_v52 = vrot.slane %v2092_v35, %v3323_v34  ;;  %v4683_v61 = vadd.f32 %v2197_v36, %v4603_v2  ;;  %v5129_v24 = vld [vmem:[#allocation33_spill] sm:$0xff] }
 0x2e4   :  { %v2143_v5 = vadd.f32 %v2139_v55, %v2115_v60  ;;  %v2144_v27 = vadd.f32 %v2140_v0, %v2116_v57  ;;  %v2213_v15 = vsel %vm5128_vm3, %v2206_v19, %v4575_v20  ;;  %v2372_v53 = vrot.slane %v4673_v38, %v3317_v31 }
 0x2e5   :  { %v2210_v6 = vpop.permute.xlu1 %2209  ;;  %v2376_v35 = vrot.slane %v4680_v8, %v3317_v31  ;;  %v2396_v47 = vrot.slane %v4673_v38, %v3319_v32  ;;  %v2221_v2 = vsel %vm3297_vm4, %v2213_v15, 0.0  ;;  %v2195_v43 = vmul.f32 %v2188_v7, %v4538_v28  ;;  %vm5131_vm4 = vmmov %vm5128_vm3 }
 0x2e6   :  { %v2171_v49 = vadd.f32 %v2167_v3, %v2143_v5  ;;  %v2172_v50 = vadd.f32 %v2168_v26, %v2144_v27  ;;  %v2196_v44 = vmul.f32 %v2192_v52, %v4538_v28  ;;  %v2400_v30 = vrot.slane %v4680_v8, %v3319_v32  ;;  %v5135_v26 = vld [vmem:[#allocation18_spill] sm:$0xff] }
 0x2e7   :  { %v2452_v16 = vrot.slane %v4673_v38, %v3323_v34  ;;  %v2232_v18 = vrot.slane %v2221_v2, %v3317_v31  ;;  %v2256_v54 = vrot.slane %v2221_v2, %v3319_v32  ;;  %v2480_v14 = vsel %vm5130_vm7, %v4689_v11, %v5129_v24 }
 0x2e8   :  { %v2214_v29 = vsel %vm5131_vm4, %v4575_v20, %v2210_v6  ;;  %v2199_v19 = vadd.f32 %v2195_v43, %v2171_v49  ;;  %v2200_v60 = vadd.f32 %v2196_v44, %v2172_v50  ;;  %v2424_v28 = vrot.slane %v4673_v38, %v3321_v33 }
 0x2e9   :  { %v4699_v22 = vpop.permute.xlu1 %2410  ;;  %v2456_v57 = vrot.slane %v4680_v8, %v3323_v34  ;;  %v2379_v55 = vmul.f32 %v2372_v53, %v4641_v39  ;;  %v2380_v0 = vmul.f32 %v2376_v35, %v4641_v39  ;;  %v2403_v36 = vmul.f32 %v2396_v47, %v4560_v51 }
 0x2ea   :  { %v2428_v63 = vrot.slane %v4680_v8, %v3321_v33  ;;  %v2284_v45 = vrot.slane %v2221_v2, %v3321_v33  ;;  %v2312_v20 = vrot.slane %v2221_v2, %v3323_v34  ;;  %v4730_v4 = vsel %vm5132_vm0, %v2480_v14, 0.0 }
 0x2eb   :  { %v2222_v27 = vsel %vm5134_vm2, %v2214_v29, 0.0  ;;  %v2404_v38 = vmul.f32 %v2400_v30, %v4560_v51  ;;  %v4741_v3 = vmul.f32 %v2452_v16, %v4633_v25  ;;  %v2245_v52 = vmul.f32 %v2232_v18, %v5135_v26 }
 0x2ec   :  { %v2269_v59 = vmul.f32 %v2256_v54, %v4588_v17  ;;  %v4746_v8 = vadd.f32 %v2199_v19, %v4628_v13  ;;  %v4749_v49 = vadd.f32 %v2200_v60, %v4631_v48  ;;  %v4752_v12 = vmul.f32 %v2456_v57, %v4633_v25  ;;  %v5137_v54 = vld [vmem:[#allocation32_spill] sm:$0xff] }
 0x2ed   :  { %v2236_v50 = vrot.slane %v2222_v27, %v3317_v31  ;;  %v2508_v15 = vrot.slane %v4730_v4, %v3317_v31  ;;  %v2532_v53 = vrot.slane %v4730_v4, %v3319_v32  ;;  %v2560_v35 = vrot.slane %v4730_v4, %v3321_v33 }
 0x2ee   :  { %v4737_v7 = vpop.permute.xlu1 %2490  ;;  %v2260_v13 = vrot.slane %v2222_v27, %v3319_v32  ;;  %v2297_v47 = vmul.f32 %v2284_v45, %v4625_v9  ;;  %v2325_v48 = vmul.f32 %v2312_v20, %v4593_v62  ;;  %v2588_v2 = vrot.slane %v4730_v4, %v3323_v34 }
 0x2ef   :  { %v2407_v43 = vadd.f32 %v2403_v36, %v2379_v55  ;;  %v2273_v30 = vadd.f32 %v2269_v59, %v2245_v52  ;;  %v2408_v16 = vadd.f32 %v2404_v38, %v2380_v0  ;;  %v2246_v14 = vmul.f32 %v2236_v50, %v5135_v26 }
 0x2f0   :  { %v2288_v29 = vrot.slane %v2222_v27, %v3321_v33  ;;  %v2270_v57 = vmul.f32 %v2260_v13, %v4588_v17  ;;  %v2316_v36 = vrot.slane %v2222_v27, %v3323_v34  ;;  %v2431_v45 = vmul.f32 %v2424_v28, %v4699_v22 }
 0x2f1   :  { %v2432_v50 = vmul.f32 %v2428_v63, %v4699_v22  ;;  %v2512_v13 = vmul.f32 %v2508_v15, %v4737_v7 }
 0x2f2   :  { %v2212_v44 = vpop.permute.xlu1 %2211 }
 0x2f3   :  { %v2215_v18 = vsel %vm5136_vm5, %v2210_v6, %v2212_v44  ;;  %v2216_v24 = vsel %vm5138_vm14, %v2212_v44, %v5137_v54  ;;  %v2301_v44 = vadd.f32 %v2297_v47, %v2273_v30 }
 0x2f4   :  { %v2223_v19 = vsel %vm3284_vm1, %v2215_v18, 0.0  ;;  %v2224_v60 = vsel %vm5139_vm6, %v2216_v24, 0.0  ;;  %v2274_v18 = vadd.f32 %v2270_v57, %v2246_v14  ;;  %v2326_v14 = vmul.f32 %v2316_v36, %v4593_v62  ;;  %vm5140_vm1 = vmmov %vm5130_vm7 }
 0x2f5   :  { %v2240_v6 = vrot.slane %v2223_v19, %v3317_v31  ;;  %v2244_v55 = vrot.slane %v2224_v60, %v3317_v31  ;;  %v2264_v0 = vrot.slane %v2223_v19, %v3319_v32  ;;  %v2268_v23 = vrot.slane %v2224_v60, %v3319_v32  ;;  %vm5141_vm8 = vmmov %vm5140_vm1 }
 0x2f6   :  { %v2296_v46 = vrot.slane %v2224_v60, %v3321_v33  ;;  %v2340_v20 = vpop.permute.xlu1 %2339  ;;  %v2292_v59 = vrot.slane %v2223_v19, %v3321_v33  ;;  %v2324_v28 = vrot.slane %v2224_v60, %v3323_v34  ;;  %v2329_v36 = vadd.f32 %v2325_v48, %v2301_v44  ;;  %vm5142_vm9 = vmmov %vm5140_vm1 }
 0x2f7   :  { %v2247_v58 = vmul.f32 %v2240_v6, %v5135_v26  ;;  %v2248_v38 = vmul.f32 %v2244_v55, %v5135_v26  ;;  %v2271_v52 = vmul.f32 %v2264_v0, %v4588_v17  ;;  %v2272_v27 = vmul.f32 %v2268_v23, %v4588_v17 }
 0x2f8   :  { %v2346_v24 = vsel %vm1104_vm11, %v2340_v20, %v4617_v42  ;;  %v2298_v26 = vmul.f32 %v2288_v29, %v4625_v9  ;;  %v2300_v55 = vmul.f32 %v2296_v46, %v4625_v9  ;;  %v2299_v15 = vmul.f32 %v2292_v59, %v4625_v9 }
 0x2f9   :  { %v2275_v54 = vadd.f32 %v2271_v52, %v2247_v58  ;;  %v2276_v6 = vadd.f32 %v2272_v27, %v2248_v38  ;;  %v2354_v63 = vsel %vm3842_vm15, %v2346_v24, 0.0  ;;  %v2320_v17 = vrot.slane %v2223_v19, %v3323_v34 }
 0x2fa   :  { %v2338_v0 = vpop.permute.xlu1 %2337  ;;  %v2368_v47 = vrot.slane %v2354_v63, %v3317_v31  ;;  %v2392_v30 = vrot.slane %v2354_v63, %v3319_v32  ;;  %v2328_v29 = vmul.f32 %v2324_v28, %v4593_v62  ;;  %v2302_v57 = vadd.f32 %v2298_v26, %v2274_v18 }
 0x2fb   :  { %v2304_v42 = vadd.f32 %v2300_v55, %v2276_v6  ;;  %v2345_v60 = vsel %vm1104_vm11, %v2338_v0, %v2340_v20  ;;  %v2435_v23 = vadd.f32 %v2431_v45, %v2407_v43  ;;  %v2303_v46 = vadd.f32 %v2299_v15, %v2275_v54 }
 0x2fc   :  { %v2378_v58 = vmul.f32 %v2368_v47, %v4641_v39  ;;  %v2402_v9 = vmul.f32 %v2392_v30, %v4560_v51  ;;  %v2364_v19 = vrot.slane %v2345_v60, %v3317_v31  ;;  %v2388_v52 = vrot.slane %v2345_v60, %v3319_v32 }
 0x2fd   :  { %v2332_v38 = vadd.f32 %v2328_v29, %v2304_v42  ;;  %v2436_v27 = vadd.f32 %v2432_v50, %v2408_v16  ;;  %v2327_v28 = vmul.f32 %v2320_v17, %v4593_v62  ;;  %v2416_v20 = vrot.slane %v2345_v60, %v3321_v33 }
 0x2fe   :  { %v4811_v59 = vpop.permute.xlu1 %2542  ;;  %v2420_v43 = vrot.slane %v2354_v63, %v3321_v33  ;;  %v2377_v45 = vmul.f32 %v2364_v19, %v4641_v39  ;;  %v2401_v18 = vmul.f32 %v2388_v52, %v4560_v51  ;;  %v2536_v24 = vmul.f32 %v2532_v53, %v4609_v56 }
 0x2ff   :  { %v4819_v54 = vadd.f32 %v2332_v38, %v4749_v49  ;;  %v2330_v48 = vadd.f32 %v2326_v14, %v2302_v57  ;;  %v2331_v16 = vadd.f32 %v2327_v28, %v2303_v46  ;;  %v2448_v62 = vrot.slane %v2354_v63, %v3323_v34 }
 0x300   :  { %v2406_v50 = vadd.f32 %v2402_v9, %v2378_v58  ;;  %v2405_v44 = vadd.f32 %v2401_v18, %v2377_v45  ;;  %v2429_v26 = vmul.f32 %v2416_v20, %v4699_v22  ;;  %v2444_v39 = vrot.slane %v2345_v60, %v3323_v34 }
 0x301   :  { %v4829_v51 = vadd.f32 %v4741_v3, %v2435_v23  ;;  %v2464_v49 = vadd.f32 %v4752_v12, %v2436_v27  ;;  %v2540_v55 = vadd.f32 %v2536_v24, %v2512_v13  ;;  %v2430_v0 = vmul.f32 %v2420_v43, %v4699_v22 }
 0x302   :  { %v2470_v6 = vpop.permute.xlu1 %2469  ;;  %v2433_v15 = vadd.f32 %v2429_v26, %v2405_v44  ;;  %v2333_v17 = vadd.f32 %v2329_v36, %v4683_v61  ;;  %v2458_v47 = vmul.f32 %v2448_v62, %v4633_v25  ;;  %v2334_v12 = vadd.f32 %v2330_v48, %v4685_v37 }
 0x303   :  { %v2477_v53 = vsel %vm5140_vm1, %v2470_v6, %v4643_v41  ;;  %v2434_v13 = vadd.f32 %v2430_v0, %v2406_v50  ;;  %v2457_v14 = vmul.f32 %v2444_v39, %v4633_v25  ;;  %v2564_v22 = vmul.f32 %v2560_v35, %v4811_v59 }
 0x304   :  { %v2485_v63 = vsel %vm3468_vm10, %v2477_v53, 0.0  ;;  %v2335_v42 = vadd.f32 %v2331_v16, %v4746_v8  ;;  %vm5143_vm10 = vmand %vm3842_vm15, %vm3511_vm13  ;;  %v2468_v53 = vadd.f32 %v2464_v49, %v4819_v54  ;;  %vm5144_vm11 = vcmask 1043456  }
 0x305   :  { %v2496_v30 = vrot.slane %v2485_v63, %v3317_v31  ;;  %v2520_v3 = vrot.slane %v2485_v63, %v3319_v32  ;;  %v2548_v60 = vrot.slane %v2485_v63, %v3321_v33  ;;  %v2461_v57 = vadd.f32 %v2457_v14, %v2433_v15  ;;  %vm5146_vm13 = vmmov %vm5144_vm11 }
 0x306   :  { %v2474_v40 = vpop.permute.xlu1 %2473  ;;  %v2576_v25 = vrot.slane %v2485_v63, %v3323_v34  ;;  %v2462_v27 = vadd.f32 %v2458_v47, %v2434_v13  ;;  %v2568_v18 = vadd.f32 %v2564_v22, %v2540_v55  ;;  %vm5147_vm15 = vmmov %vm5144_vm11 }
 0x307   :  { %v2509_v61 = vmul.f32 %v2496_v30, %v4737_v7  ;;  %v2533_v29 = vmul.f32 %v2520_v3, %v4609_v56  ;;  %v2478_v37 = vsel %vm5141_vm8, %v4643_v41, %v2474_v40  ;;  %v2479_v23 = vsel %vm5142_vm9, %v2474_v40, %v4689_v11  ;;  %vm5148_vm3 = vmmov %vm5144_vm11 }
 0x308   :  { %v2486_v8 = vsel %vm5143_vm10, %v2478_v37, 0.0  ;;  %v2487_v46 = vsel %vm3487_vm12, %v2479_v23, 0.0  ;;  %v2561_v21 = vmul.f32 %v2548_v60, %v4811_v59  ;;  %v2465_v44 = vadd.f32 %v2461_v57, %v2333_v17  ;;  %vm5145_vm12 = vmmov %vm5144_vm11 }
 0x309   :  { %v2537_v35 = vadd.f32 %v2533_v29, %v2509_v61  ;;  %v2500_v58 = vrot.slane %v2486_v8, %v3317_v31  ;;  %v2524_v41 = vrot.slane %v2486_v8, %v3319_v32  ;;  %v2504_v38 = vrot.slane %v2487_v46, %v3317_v31  ;;  %vm5149_vm7 = vmmov %vm5148_vm3 }
 0x30a   :  { %v2528_v9 = vrot.slane %v2487_v46, %v3319_v32  ;;  %v2552_v11 = vrot.slane %v2486_v8, %v3321_v33  ;;  %v2556_v5 = vrot.slane %v2487_v46, %v3321_v33  ;;  %v2571_v19 = vpop.permute.xlu1 %2570  ;;  %v2580_v36 = vrot.slane %v2486_v8, %v3323_v34  ;;  %vm5150_vm4 = vmmov %vm5148_vm3 }
 0x30b   :  { %v2510_v52 = vmul.f32 %v2500_v58, %v4737_v7  ;;  %v2534_v10 = vmul.f32 %v2524_v41, %v4609_v56  ;;  %v2511_v28 = vmul.f32 %v2504_v38, %v4737_v7  ;;  %v2584_v32 = vrot.slane %v2487_v46, %v3323_v34  ;;  %vm5151_vm0 = vmmov %vm5148_vm3  ;;  %v2871_v46 = vld [vmem:[#allocation5] sm:$0xf] }
 0x30c   :  { %v2535_v31 = vmul.f32 %v2528_v9, %v4609_v56  ;;  %v2562_v43 = vmul.f32 %v2552_v11, %v4811_v59  ;;  %v2565_v33 = vadd.f32 %v2561_v21, %v2537_v35  ;;  %v2589_v45 = vmul.f32 %v2576_v25, %v2571_v19 }
 0x30d   :  { %v2538_v20 = vadd.f32 %v2534_v10, %v2510_v52  ;;  %v2563_v48 = vmul.f32 %v2556_v5, %v4811_v59  ;;  %v2592_v16 = vmul.f32 %v2588_v2, %v2571_v19  ;;  %v2590_v50 = vmul.f32 %v2580_v36, %v2571_v19 }
 0x30e   :  { %v2539_v24 = vadd.f32 %v2535_v31, %v2511_v28  ;;  %v2593_v7 = vadd.f32 %v2589_v45, %v2565_v33  ;;  %v2591_v26 = vmul.f32 %v2584_v32, %v2571_v19  ;;  %v2466_v15 = vadd.f32 %v2462_v27, %v2334_v12 }
 0x30f   :  { %v2566_v62 = vadd.f32 %v2562_v43, %v2538_v20  ;;  %v2596_v39 = vadd.f32 %v2592_v16, %v2568_v18  ;;  %v2603_v6 = vpop.permute.xlu1 %2602  ;;  %v2467_v59 = vadd.f32 %v4829_v51, %v2335_v42 }
 0x310   :  { %v2567_v56 = vadd.f32 %v2563_v48, %v2539_v24  ;;  %v2597_v55 = vadd.f32 %v2593_v7, %v2465_v44  ;;  %v2872_v7 = vld [vmem:[#allocation2] sm:$0xff] }
 0x311   :  { %v2594_v0 = vadd.f32 %v2590_v50, %v2566_v62  ;;  %v2600_v47 = vadd.f32 %v2596_v39, %v2468_v53  ;;  %v2873_v39 = vld [vmem:[#allocation2 + $0x8] sm:$0xff]  ;;  %v5153_v53 = vld [vmem:[#allocation13_spill] sm:$0xff] }
 0x312   :  { %v2595_v63 = vadd.f32 %v2591_v26, %v2567_v56  ;;  %v2605_v34 = vadd.f32 %v2603_v6, %v2597_v55  ;;  %v5152_v56 = vld [vmem:[#allocation14_spill] sm:$0xff] }
 0x313   :  { %v2598_v30 = vadd.f32 %v2594_v0, %v2466_v15  ;;  %v2608_v3 = vadd.f32 %v2603_v6, %v2600_v47 }
 0x314   :  { %v2599_v4 = vadd.f32 %v2595_v63, %v2467_v59  ;;  %v2619_v13 = vmul.f32 %v2605_v34, %v2605_v34  ;;  %v2609_v22 = vsel %vm5144_vm11, %v2605_v34, 0.0 }
 0x315   :  { %v2606_v2 = vadd.f32 %v2603_v6, %v2598_v30  ;;  %v2622_v61 = vmul.f32 %v2608_v3, %v2608_v3  ;;  %v2614_v37 = vsel %vm5149_vm7, %v2608_v3, 0.0 }
 0x316   :  { %v2607_v17 = vadd.f32 %v2603_v6, %v2599_v4  ;;  %v2623_v51 = vsel %vm5147_vm15, %v2619_v13, 0.0 }
 0x317   :  { %v2620_v14 = vmul.f32 %v2606_v2, %v2606_v2  ;;  %v2610_v40 = vsel %vm5145_vm12, %v2606_v2, 0.0  ;;  %v2628_v8 = vsel %vm5151_vm0, %v2622_v61, 0.0 }
 0x318   :  { %v2611_v54 = vadd.f32 %v2610_v40, %v2609_v22  ;;  %v2621_v49 = vmul.f32 %v2607_v17, %v2607_v17  ;;  %v2612_v12 = vsel %vm5146_vm13, %v2607_v17, 0.0 }
 0x319   :  { %v2624_v42 = vsel %vm5148_vm3, %v2620_v14, 0.0 }
 0x31a   :  { %v2613_v29 = vadd.f32 %v2612_v12, %v2611_v54  ;;  %v2625_v60 = vadd.f32 %v2624_v42, %v2623_v51  ;;  %v2626_v57 = vsel %vm5150_vm4, %v2621_v49, 0.0 }
 0x31c   :  { %v2615_v25 = vadd.f32 %v2614_v37, %v2613_v29  ;;  %v2627_v23 = vadd.f32 %v2626_v57, %v2625_v60 }
 0x31e   :  { %2616 = vadd.xlane.f32.xlu0 %v2615_v25  ;;  %v2629_v35 = vadd.f32 %v2628_v8, %v2627_v23 }
 0x320   :  { %2630 = vadd.xlane.f32.xlu1 %v2629_v35 }
 0x331   :  { %2654 = vperm.xlu1 %2862, %v2871_v46  }
 0x334   :  { %2642 = vperm.xlu0 %2861, %v2871_v46  }
 0x338   :  { %2863 = vset.pattern.permute.xlu0 %v3034_v1 }
 0x3ab   :  { %v2617_v58 = vpop.xlane.xlu0 %2616 }
 0x3ac   :  { %v2618_v41 = vmul.f32 0.001953125, %v2617_v58 }
 0x3ad   :  { %v2631_v38 = vpop.xlane.xlu1 %2630 }
 0x3ae   :  { %v2632_v9 = vmul.f32 0.001953125, %v2631_v38  ;;  %v2633_v11 = vmul.f32 %v2618_v41, %v2618_v41  ;;  %v2637_v52 = vsub.f32 %v2605_v34, %v2618_v41  ;;  %v2638_v10 = vsub.f32 %v2606_v2, %v2618_v41 }
 0x3af   :  { %v2639_v36 = vsub.f32 %v2607_v17, %v2618_v41  ;;  %v2640_v27 = vsub.f32 %v2608_v3, %v2618_v41 }
 0x3b0   :  { %v2634_v5 = vsub.f32 %v2632_v9, %v2633_v11 }
 0x3b1   :  { %v2655_v33 = vpop.permute.xlu1 %2654 }
 0x3b2   :  { %v2635_v19 = vadd.f32 1e-05, %v2634_v5 }
 0x3b3   :  { %v2643_v21 = vpop.permute.xlu0 %2642 }
 0x3b4   :  { %2868 = vrsqrt.f32 %v2635_v19  ;;  %v2645_v28 = vmul.f32 %v2643_v21, %v2637_v52  ;;  %v2646_v31 = vmul.f32 %v2643_v21, %v2638_v10  ;;  %v2647_v32 = vmul.f32 %v2643_v21, %v2639_v36 }
 0x3b5   :  { %v2648_v20 = vmul.f32 %v2643_v21, %v2640_v27 }
 0x3be   :  { %v2869_v43 = vpop.eup %2868 }
 0x3bf   :  { %v2649_v1 = vmul.f32 %v2869_v43, %v2645_v28  ;;  %v2650_v45 = vmul.f32 %v2869_v43, %v2646_v31  ;;  %v2651_v18 = vmul.f32 %v2869_v43, %v2647_v32  ;;  %v2652_v24 = vmul.f32 %v2869_v43, %v2648_v20 }
 0x3c1   :  { %v2657_v48 = vadd.f32 %v2655_v33, %v2649_v1  ;;  %v2658_v16 = vadd.f32 %v2655_v33, %v2650_v45  ;;  %v2659_v62 = vadd.f32 %v2655_v33, %v2651_v18  ;;  %v2660_v50 = vadd.f32 %v2655_v33, %v2652_v24 }
 0x3c3   :  { %v2661_v44 = vadd.f32 %v2872_v7, %v2657_v48  ;;  %v2662_v26 = vadd.f32 %v2658_v16, %v5152_v56  ;;  %v2663_v6 = vadd.f32 %v2873_v39, %v2659_v62  ;;  %v2664_v0 = vadd.f32 %v2660_v50, %v5153_v53 }
 0x3c5   :  { %v2665_v15 = vmax.f32 %v2661_v44, 0.0  ;;  %v2666_v55 = vmax.f32 %v2662_v26, 0.0  ;;  %v2667_v63 = vmax.f32 %v2663_v6, 0.0  ;;  %v2668_v59 = vmax.f32 %v2664_v0, 0.0 }
 0x3c7   :  { %v2673_v47 = vcombine.low %v2665_v15, %v2666_v55  ;;  %v2674_v30 = vcombine.low %v2667_v63, %v2668_v59 }
 0x3c9   :  { %2677 = vst [vmem:[#allocation7] sm:$0xff] %v2673_v47  ;;  %2678 = vst [vmem:[#allocation7 + $0x8] sm:$0xff] %v2674_v30 }
 0x3ca   :  { %2929 = shalt.err (!%p2926_p6)
}
 0x3cb   :  { %s2930_s16 = scalar_lea.hbm %s4908_s2, 256 }
 0x3cc   :  { %p2931_p7 = scmp.ne.s32.totalorder %s4908_s2, %s2930_s16  ;;  %p2934_p8 = scmp.lt.u32.totalorder %s2930_s16, %s4908_s2 }
 0x3ce   :  { %p2936_p9 = pnand %p2934_p8, %p2931_p7 }
 0x3d0   :  { %2939 = shalt.err (!%p2936_p9)
}
 0x3d1   :  { %2688 = dma.vmem_to_hbm [thread:$0]  %s2686_s12, 256, %s4908_s2, [#allocation4]  }
 0x3d2   :  { %2944 = dma.done.wait [#allocation4], 256  }
 0x3d3   :  { %2945 = vsyncadd [#allocation4], 4294967040 }
 0x3d4   :  { %2692 = vsyncpa [#allocation3], 1 }
 0x3d5   :  { %2693 = vsyncpa [#allocation6], 1 }
 0x3d6   :  { %2694 = vsyncpa [#allocation4], 1 }

</bundles_post_ra>
